<compile_context>
chip_gen: v6e
topology: v6e:2x2x1
jax: 0.10.0
libtpu: 0.0.40
codegen_flags: <defaults>
</compile_context>

<pallas_src>
import jax
import jax.numpy as jnp
from jax.experimental import pallas as pl
from jax.experimental.pallas import tpu as pltpu

D_IN = 1024 * 3   # 3072
D_H1 = 512
D_H2 = 256
D_OUT = 1


def mlp_kernel(x_ref, w1_ref, b1_ref, w2_ref, b2_ref, w3_ref, b3_ref,
               o_ref, acc_ref):
    k = pl.program_id(1)

    @pl.when(k == 0)
    def _():
        acc_ref[...] = jnp.zeros_like(acc_ref)

    # Layer 1 (partial over this K chunk): f32 x tile is cast to bf16 on the
    # VPU right after load (free); MXU matmul with f32 accumulation.
    acc_ref[...] += jnp.dot(
        x_ref[...].astype(jnp.bfloat16), w1_ref[...],
        preferred_element_type=jnp.float32)

    @pl.when(k == pl.num_programs(1) - 1)
    def _():
        h = jnp.maximum(acc_ref[...] + b1_ref[...], 0.0)

        # Layer 2: bf16 x bf16 on the MXU, f32 accumulation.
        h = jnp.dot(h.astype(jnp.bfloat16), w2_ref[...],
                    preferred_element_type=jnp.float32)
        h = jnp.maximum(h + b2_ref[...], 0.0).astype(jnp.bfloat16)

        # Head: w3 (1, 256) bf16 contracted with h (tm, 256) bf16 along the
        # feature axis -> (1, tm).  The per-row scalar result lands on lanes,
        # so the store below is a lane-dense 128-wide vst, not a masked
        # (tm, 1) partial store.
        out = jax.lax.dot_general(
            w3_ref[...], h,
            dimension_numbers=(((1,), (1,)), ((), ())),
            preferred_element_type=jnp.float32)
        o_ref[...] = (out + b3_ref[...]).astype(o_ref.dtype)


def _pick_tm(B, tm_max=512):
    """Batch tile: multiple of 128, <= tm_max; keeps >= 2 grid steps whenever
    B > 128 so the parallel batch axis can shard across both v7x TensorCores."""
    chunks = (B + 127) // 128
    if chunks <= 1:
        return 128
    half = (chunks + 1) // 2
    return min(tm_max, 128 * half)


def mlp_forward(x, w1, b1, w2, b2, w3, b3, *, tm=None, tk_latency=1024):
    """x: (B, 3072) f32.  w1 (3072,512) / w2 (512,256) stored (in, out);
    w3 stored PyTorch-style (1, 256).  Biases: (1,512), (1,256), (1,1) f32."""
    B = x.shape[0]
    assert x.shape[1] == D_IN
    if tm is None:
        tm = _pick_tm(B)
    assert tm % 128 == 0, "tm must be a multiple of 128 (lane-dense out tile)"
    n_tiles = pl.cdiv(B, tm)

    # Only the (tiny, one-off) weight tensors are cast to bf16 in the wrapper;
    # x is NOT touched here (the in-kernel cast avoids an extra HBM pass).
    w1 = w1.astype(jnp.bfloat16)
    w2 = w2.astype(jnp.bfloat16)
    w3 = w3.astype(jnp.bfloat16)

    # Single batch tile (small-batch / latency): stream w1 along K so its DMA
    # overlaps the MXU work.  Multi-tile (throughput): one K step, w1 loaded
    # once and resident for all batch tiles.
    tk = tk_latency if n_tiles == 1 else D_IN
    assert D_IN % tk == 0 and tk % 128 == 0
    n_k = D_IN // tk

    def _const_spec(shape):
        # Block whose index never changes across the grid: DMA'd once,
        # single-buffered to save VMEM.
        return pl.BlockSpec(shape, lambda i, k: (0, 0),
                            pipeline_mode=pl.Buffered(1))

    if n_k == 1:
        w1_spec = _const_spec((D_IN, D_H1))
    else:
        w1_spec = pl.BlockSpec((tk, D_H1), lambda i, k: (k, 0))

    cost = pl.CostEstimate(
        flops=2 * B * (D_IN * D_H1 + D_H1 * D_H2 + D_H2 * D_OUT),
        transcendentals=0,
        bytes_accessed=(x.size * 4 + w1.size * 2 + w2.size * 2 + w3.size * 2
                        + (b1.size + b2.size + b3.size) * 4 + B * 4),
    )

    out = pl.pallas_call(
        mlp_kernel,
        out_shape=jax.ShapeDtypeStruct((1, B), jnp.float32),
        grid_spec=pltpu.PrefetchScalarGridSpec(
            num_scalar_prefetch=0,
            grid=(n_tiles, n_k),
            in_specs=[
                # x tile: f32, default double-buffered pipelining.
                # (v6e micro-opt candidate: pipeline_mode=pl.Buffered(3))
                pl.BlockSpec((tm, tk), lambda i, k: (i, k)),
                w1_spec,                                       # w1 (bf16)
                _const_spec((1, D_H1)),                        # b1 (f32)
                _const_spec((D_H1, D_H2)),                     # w2 (bf16)
                _const_spec((1, D_H2)),                        # b2 (f32)
                _const_spec((1, D_H2)),                        # w3 (bf16, (out,in))
                _const_spec((1, D_OUT)),                       # b3 (f32)
            ],
            out_specs=pl.BlockSpec((1, tm), lambda i, k: (0, i)),  # lane-dense
            scratch_shapes=[pltpu.VMEM((tm, D_H1), jnp.float32)],  # layer-1 acc
        ),
        compiler_params=pltpu.CompilerParams(
            dimension_semantics=("parallel", "arbitrary"),
            vmem_limit_bytes=32 << 20,
        ),
        cost_estimate=cost,
    )(x, w1, b1, w2, b2, w3, b3)

    return out[0, :B].reshape(B, 1)


def init_params(key):
    """Deterministic init mimicking nn.Linear's uniform(+-1/sqrt(fan_in)) scale."""
    k1, k2, k3, k4, k5, k6 = jax.random.split(key, 6)

    def lin(kw, kb, fan_in, fan_out):
        bound = 1.0 / jnp.sqrt(fan_in)
        # stored as (in, out) so the kernel does x @ W
        w = jax.random.uniform(kw, (fan_in, fan_out), jnp.float32, -bound, bound)
        b = jax.random.uniform(kb, (1, fan_out), jnp.float32, -bound, bound)
        return w, b

    w1, b1 = lin(k1, k2, D_IN, D_H1)          # (3072, 512), (1, 512)
    w2, b2 = lin(k3, k4, D_H1, D_H2)          # (512, 256),  (1, 256)
    # Head kept PyTorch-style (out_features, in_features) = (1, 256).
    bound = 1.0 / jnp.sqrt(D_H2)
    w3 = jax.random.uniform(k5, (D_OUT, D_H2), jnp.float32, -bound, bound)
    b3 = jax.random.uniform(k6, (1, D_OUT), jnp.float32, -bound, bound)
    return w1, b1, w2, b2, w3, b3


def reference_forward(x, w1, b1, w2, b2, w3, b3):
    """Pure-JAX reference mirroring the kernel numerics (bf16 matmuls, f32 accum)."""
    h = jnp.dot(x.astype(jnp.bfloat16), w1.astype(jnp.bfloat16),
                preferred_element_type=jnp.float32)
    h = jnp.maximum(h + b1, 0.0)
    h = jnp.dot(h.astype(jnp.bfloat16), w2.astype(jnp.bfloat16),
                preferred_element_type=jnp.float32)
    h = jnp.maximum(h + b2, 0.0)
    return jnp.dot(h.astype(jnp.bfloat16), w3.astype(jnp.bfloat16).T,
                   preferred_element_type=jnp.float32) + b3


if __name__ == "__main__":
    key = jax.random.PRNGKey(0)
    kx, kp = jax.random.split(key)
    params = init_params(kp)

    # Small-batch / latency path: single batch tile, w1 streamed over K,
    # partial (B < 128) batch block handled by Pallas masked block I/O.
    B1 = 10
    x1 = jax.random.normal(kx, (B1, D_IN), dtype=jnp.float32)
    out1 = jax.block_until_ready(mlp_forward(x1, *params))
    ref1 = reference_forward(x1, *params)
    assert out1.shape == (B1, 1)
    assert jnp.allclose(out1, ref1, atol=1e-2, rtol=1e-2)

    # Multi-tile / throughput path: two batch tiles incl. a partial tail tile.
    B2 = 300
    x2 = jax.random.normal(kx, (B2, D_IN), dtype=jnp.float32)
    out2 = jax.block_until_ready(mlp_forward(x2, *params))
    ref2 = reference_forward(x2, *params)
    assert out2.shape == (B2, 1)
    assert jnp.allclose(out2, ref2, atol=1e-2, rtol=1e-2)

    print("KERNEL_OK")
</pallas_src>

<mosaic_0001>
module attributes {stable_mosaic.version = 11 : i64} {
  func.func @mlp_kernel(%arg0: i32, %arg1: i32, %arg2: memref<128x1024xf32, #tpu.memory_space<vmem>>, %arg3: memref<1024x512xbf16, #tpu.memory_space<vmem>>, %arg4: memref<1x512xf32, #tpu.memory_space<vmem>>, %arg5: memref<512x256xbf16, #tpu.memory_space<vmem>>, %arg6: memref<1x256xf32, #tpu.memory_space<vmem>>, %arg7: memref<1x256xbf16, #tpu.memory_space<vmem>>, %arg8: memref<1x1xf32, #tpu.memory_space<vmem>>, %arg9: memref<1x128xf32, #tpu.memory_space<vmem>>, %arg10: memref<128x512xf32, #tpu.memory_space<vmem>>) attributes {dimension_semantics = [#tpu.dimension_semantics<parallel>, #tpu.dimension_semantics<arbitrary>], iteration_bounds = array<i64: 1, 3>, scalar_prefetch = 0 : i64, scratch_operands = 1 : i64, tpu.core_type = #tpu.core_type<tc>, window_params = [{transform_indices = @transform_0, window_bounds = array<i64: 128, 1024>}, {transform_indices = @transform_1, window_bounds = array<i64: 1024, 512>}, {pipeline_mode = #tpu.pipeline_mode<synchronous>, transform_indices = @transform_2, window_bounds = array<i64: 1, 512>}, {pipeline_mode = #tpu.pipeline_mode<synchronous>, transform_indices = @transform_3, window_bounds = array<i64: 512, 256>}, {pipeline_mode = #tpu.pipeline_mode<synchronous>, transform_indices = @transform_4, window_bounds = array<i64: 1, 256>}, {pipeline_mode = #tpu.pipeline_mode<synchronous>, transform_indices = @transform_5, window_bounds = array<i64: 1, 256>}, {pipeline_mode = #tpu.pipeline_mode<synchronous>, transform_indices = @transform_6, window_bounds = array<i64: 1, 1>}, {transform_indices = @transform_7, window_bounds = array<i64: 1, 128>}]} {
    %c0_i32 = arith.constant 0 : i32
    %0 = arith.cmpi eq, %arg1, %c0_i32 : i32
    %1 = arith.extui %0 : i1 to i32
    %c0_i32_0 = arith.constant 0 : i32
    %2 = arith.cmpi ne, %1, %c0_i32_0 : i32
    scf.if %2 {
      %cst_9 = arith.constant 0.000000e+00 : f32
      %13 = vector.broadcast %cst_9 : f32 to vector<128x512xf32>
      %c0_10 = arith.constant 0 : index
      %c0_11 = arith.constant 0 : index
      %14 = vector.load %arg10[%c0_10, %c0_11] : memref<128x512xf32, #tpu.memory_space<vmem>>, vector<128x512xf32>
      tpu.vector_store %arg10[%c0_10, %c0_11], %13 {strides = array<i32>} : memref<128x512xf32, #tpu.memory_space<vmem>>, vector<128x512xf32>,
    } else {
    }
    %c0 = arith.constant 0 : index
    %c0_1 = arith.constant 0 : index
    %3 = vector.load %arg10[%c0, %c0_1] : memref<128x512xf32, #tpu.memory_space<vmem>>, vector<128x512xf32>
    %c0_2 = arith.constant 0 : index
    %c0_3 = arith.constant 0 : index
    %4 = vector.load %arg2[%c0_2, %c0_3] : memref<128x1024xf32, #tpu.memory_space<vmem>>, vector<128x1024xf32>
    %5 = arith.truncf %4 : vector<128x1024xf32> to vector<128x1024xbf16>
    %c0_4 = arith.constant 0 : index
    %c0_5 = arith.constant 0 : index
    %6 = vector.load %arg3[%c0_4, %c0_5] : memref<1024x512xbf16, #tpu.memory_space<vmem>>, vector<1024x512xbf16>
    %cst = arith.constant dense<0.000000e+00> : vector<128x512xf32>
    %7 = tpu.matmul %5, %6, %cst {dimension_numbers = #tpu.dot_dimension_numbers<[1], [0], [0], [1], [0, 0, 1, 1], [], []>} : vector<128x1024xbf16>, vector<1024x512xbf16>, vector<128x512xf32> -> vector<128x512xf32>
    %8 = arith.addf %3, %7 : vector<128x512xf32>
    %c0_6 = arith.constant 0 : index
    %c0_7 = arith.constant 0 : index
    %9 = vector.load %arg10[%c0_6, %c0_7] : memref<128x512xf32, #tpu.memory_space<vmem>>, vector<128x512xf32>
    tpu.vector_store %arg10[%c0_6, %c0_7], %8 {strides = array<i32>} : memref<128x512xf32, #tpu.memory_space<vmem>>, vector<128x512xf32>,
    %c2_i32 = arith.constant 2 : i32
    %10 = arith.cmpi eq, %arg1, %c2_i32 : i32
    %11 = arith.extui %10 : i1 to i32
    %c0_i32_8 = arith.constant 0 : i32
    %12 = arith.cmpi ne, %11, %c0_i32_8 : i32
    scf.if %12 {
      %c0_9 = arith.constant 0 : index
      %c0_10 = arith.constant 0 : index
      %13 = vector.load %arg10[%c0_9, %c0_10] : memref<128x512xf32, #tpu.memory_space<vmem>>, vector<128x512xf32>
      %c0_11 = arith.constant 0 : index
      %c0_12 = arith.constant 0 : index
      %14 = vector.load %arg4[%c0_11, %c0_12] : memref<1x512xf32, #tpu.memory_space<vmem>>, vector<1x512xf32>
      %15 = vector.broadcast %14 : vector<1x512xf32> to vector<128x512xf32>
      %16 = arith.addf %13, %15 : vector<128x512xf32>
      %cst_13 = arith.constant 0.000000e+00 : f32
      %17 = vector.broadcast %cst_13 : f32 to vector<128x512xf32>
      %18 = arith.maximumf %16, %17 : vector<128x512xf32>
      %19 = arith.truncf %18 : vector<128x512xf32> to vector<128x512xbf16>
      %c0_14 = arith.constant 0 : index
      %c0_15 = arith.constant 0 : index
      %20 = vector.load %arg5[%c0_14, %c0_15] : memref<512x256xbf16, #tpu.memory_space<vmem>>, vector<512x256xbf16>
      %cst_16 = arith.constant dense<0.000000e+00> : vector<128x256xf32>
      %21 = tpu.matmul %19, %20, %cst_16 {dimension_numbers = #tpu.dot_dimension_numbers<[1], [0], [0], [1], [0, 0, 1, 1], [], []>} : vector<128x512xbf16>, vector<512x256xbf16>, vector<128x256xf32> -> vector<128x256xf32>
      %c0_17 = arith.constant 0 : index
      %c0_18 = arith.constant 0 : index
      %22 = vector.load %arg6[%c0_17, %c0_18] : memref<1x256xf32, #tpu.memory_space<vmem>>, vector<1x256xf32>
      %23 = vector.broadcast %22 : vector<1x256xf32> to vector<128x256xf32>
      %24 = arith.addf %21, %23 : vector<128x256xf32>
      %cst_19 = arith.constant 0.000000e+00 : f32
      %25 = vector.broadcast %cst_19 : f32 to vector<128x256xf32>
      %26 = arith.maximumf %24, %25 : vector<128x256xf32>
      %27 = arith.truncf %26 : vector<128x256xf32> to vector<128x256xbf16>
      %c0_20 = arith.constant 0 : index
      %c0_21 = arith.constant 0 : index
      %28 = vector.load %arg7[%c0_20, %c0_21] : memref<1x256xbf16, #tpu.memory_space<vmem>>, vector<1x256xbf16>
      %cst_22 = arith.constant dense<0.000000e+00> : vector<1x128xf32>
      %29 = tpu.matmul %28, %27, %cst_22 {dimension_numbers = #tpu.dot_dimension_numbers<[1], [1], [0], [0], [0, 0, 1, 0], [], []>} : vector<1x256xbf16>, vector<128x256xbf16>, vector<1x128xf32> -> vector<1x128xf32>
      %c0_23 = arith.constant 0 : index
      %c0_24 = arith.constant 0 : index
      %30 = vector.load %arg8[%c0_23, %c0_24] : memref<1x1xf32, #tpu.memory_space<vmem>>, vector<1x1xf32>
      %31 = vector.broadcast %30 : vector<1x1xf32> to vector<1x128xf32>
      %32 = arith.addf %29, %31 : vector<1x128xf32>
      %c0_25 = arith.constant 0 : index
      %c0_26 = arith.constant 0 : index
      %33 = vector.load %arg9[%c0_25, %c0_26] : memref<1x128xf32, #tpu.memory_space<vmem>>, vector<1x128xf32>
      tpu.vector_store %arg9[%c0_25, %c0_26], %32 {strides = array<i32>} : memref<1x128xf32, #tpu.memory_space<vmem>>, vector<1x128xf32>,
    } else {
    }
    return
  }
  func.func @transform_0(%arg0: i32, %arg1: i32) -> (i32, i32) {
    %c0_i32 = arith.constant 0 : i32
    return %arg0, %arg1 : i32, i32
  }
  func.func @transform_1(%arg0: i32, %arg1: i32) -> (i32, i32) {
    %c0_i32 = arith.constant 0 : i32
    %c0_i32_0 = arith.constant 0 : i32
    return %arg1, %c0_i32 : i32, i32
  }
  func.func @transform_2(%arg0: i32, %arg1: i32) -> (i32, i32) {
    %c0_i32 = arith.constant 0 : i32
    %c0_i32_0 = arith.constant 0 : i32
    %c0_i32_1 = arith.constant 0 : i32
    return %c0_i32, %c0_i32_0 : i32, i32
  }
  func.func @transform_3(%arg0: i32, %arg1: i32) -> (i32, i32) {
    %c0_i32 = arith.constant 0 : i32
    %c0_i32_0 = arith.constant 0 : i32
    %c0_i32_1 = arith.constant 0 : i32
    return %c0_i32, %c0_i32_0 : i32, i32
  }
  func.func @transform_4(%arg0: i32, %arg1: i32) -> (i32, i32) {
    %c0_i32 = arith.constant 0 : i32
    %c0_i32_0 = arith.constant 0 : i32
    %c0_i32_1 = arith.constant 0 : i32
    return %c0_i32, %c0_i32_0 : i32, i32
  }
  func.func @transform_5(%arg0: i32, %arg1: i32) -> (i32, i32) {
    %c0_i32 = arith.constant 0 : i32
    %c0_i32_0 = arith.constant 0 : i32
    %c0_i32_1 = arith.constant 0 : i32
    return %c0_i32, %c0_i32_0 : i32, i32
  }
  func.func @transform_6(%arg0: i32, %arg1: i32) -> (i32, i32) {
    %c0_i32 = arith.constant 0 : i32
    %c0_i32_0 = arith.constant 0 : i32
    %c0_i32_1 = arith.constant 0 : i32
    return %c0_i32, %c0_i32_0 : i32, i32
  }
  func.func @transform_7(%arg0: i32, %arg1: i32) -> (i32, i32) {
    %c0_i32 = arith.constant 0 : i32
    %c0_i32_0 = arith.constant 0 : i32
    return %c0_i32, %arg0 : i32, i32
  }
}

</mosaic_0001>

<bundles_post_ra>
// kernel: tpu_custom_call.1
= control target key start
LH: loop header
LB: loop body
LE: loop exit
PB: predicated region body
PF: predicated region fallthrough
CT: control target
= control target key end

     0   :  { %s7148_s0 = inlined_call_operand.hbm [shape: f32[10,3072], index: 0, kind: input, shape index: {}]   ;;  %s7149_s1 = inlined_call_operand.hbm [shape: bf16[3072,512], index: 1, kind: input, shape index: {}]   ;;  %s7150_s2 = inlined_call_operand.hbm [shape: f32[1,512], index: 2, kind: input, shape index: {}]   ;;  %s7151_s3 = inlined_call_operand.hbm [shape: bf16[512,256], index: 3, kind: input, shape index: {}]   ;;  %s7152_s4 = inlined_call_operand.hbm [shape: f32[1,256], index: 4, kind: input, shape index: {}]   ;;  %s7153_s5 = inlined_call_operand.hbm [shape: bf16[1,256], index: 5, kind: input, shape index: {}]   ;;  %s7154_s6 = inlined_call_operand.<no memory space> [shape: f32[1,1], index: 6, kind: input, shape index: {}]   ;;  %s7155_s7 = inlined_call_operand.hbm [shape: f32[1,10], index: 7, kind: output, shape index: {}]  }
   0x1   :  { %7174 = sst [smem:[#allocation39_spill]] %s7148_s0  ;;  %v12_v0 = vstv %s7154_s6 }
   0x2   :  { %7175 = sst [smem:[#allocation40_spill]] %s7150_s2  ;;  %13 = vst [vmem:[#allocation3] sm:$0x1] %v12_v0 }
   0x3   :  { %7176 = sst [smem:[#allocation41_spill]] %s7151_s3 }
   0x4   :  { %7177 = sst [smem:[#allocation42_spill]] %s7152_s4 }
   0x5   :  { %14 = vsyncpa [#allocation5], 0 }
   0x6   :  { %16 = vsyncpa [#allocation5 + $0x1], 0 }
   0x7   :  { %17 = vsyncpa [#allocation8], 0 }
   0x8   :  { %19 = vsyncpa [#allocation8 + $0x1], 0 }
   0x9   :  { %20 = vsyncpa [#allocation11], 0 }
   0xa   :  { %21 = vsyncpa [#allocation14], 0 }
   0xb   :  { %22 = vsyncpa [#allocation6], 0  ;;  %s5686_s26 = smov 0   ;;  %s5688_s27 = smov 0  }
   0xc   :  { %s5690_s28 = smov 0   ;;  %s5692_s29 = smov 0  }
   0xd   :  { %s5694_s30 = smov 0   ;;  %s5696_s8 = smov 0  }
   0xe LB: > { %s5715_s6 = sadd.s32 4294967295, %s5624_s8   ;;  %s37_s9 = sadd.s32 1, %s5620_s30  ;;  %s5624_s8 = sphi %s5696_s8, %s28_s8   ;;  %s5620_s30 = sphi %s5694_s30, %s7296_s30   ;;  %s5616_s29 = sphi %s5692_s29, %s7295_s29   ;;  %s5612_s28 = sphi %s5690_s28, %s7294_s28   ;;  %s5608_s27 = sphi %s5688_s27, %s7293_s27   ;;  %s5604_s26 = sphi %s5686_s26, %s7292_s26  }
   0xf   : > { %p38_p0 = scmp.ge.s32.totalorder %s37_s9, 3  ;;  %s49_s10 = sadd.s32 1, %s5612_s28 }
  0x10   : > { %p56_p1 = scmp.ne.s32.totalorder %s5612_s28, %s5608_s27  ;;  %p57_p2 = scmp.eq.s32.totalorder %s5624_s8, 0 }
  0x11   : > { %s7298_s9 = smov (%p38_p0, %s37_s9), 0  ;;  %p62_p4 = scmp.ne.s32.totalorder %s5608_s27, %s5604_s26 }
  0x12   : > { %p5724_p3 = por %p57_p2, %p56_p1  ;;  %s45_s12 = ssub.s32 %s5620_s30, %s7298_s9 }
  0x13   : > { %p7156_p5 = scmp.eq.s32.totalorder %s5715_s6, 0  ;;  %p47_p6 = scmp.eq.s32.totalorder %s45_s12, 0 }
  0x14   : > { %p4438_p7 = scmp.ge.s32.totalorder %s5624_s8, 1  ;;  %p230_p9 = scmp.lt.s32.totalorder %s5624_s8, 4 }
  0x15   : > { %p5735_p8 = por %p7156_p5, %p62_p4  ;;  %s5626_s16 = smov [#allocation10]  }
  0x16   : > { %s5741_s14 = scalar_select %p47_p6, %s5612_s28, %s49_s10  }
  0x17   : > { %s7179_s13 = scalar_select %p5735_p8, 1, 0 }
  0x18   : > { %p5743_p10 = pnand %p4438_p7, %p230_p9  ;;  %s253_s17 = sshll.u32 %s5626_s16, 4  ;;  %s254_s17 = int_to_ptr.vmem [resolvable:$true] %s253_s17 }
  0x19   : > { %s5627_s19 = smov [#allocation9]   ;;  %s5389_s21 = scalar_lea.vmem %s254_s17, 8192 }
  0x1a   : > { %s7180_s15 = scalar_select %p5743_p10, 1, 0 }
  0x1b   : > { %p4811_p11 = pneg %p5743_p10  ;;  %s243_s20 = sshll.u32 %s5627_s19, 4  ;;  %s244_s20 = int_to_ptr.vmem [resolvable:$true] %s243_s20 }
  0x1c   : > { %p5390_p0 = scmp.ne.s32.totalorder %s254_s17, %s5389_s21  ;;  %p5397_p4 = scmp.lt.s32.totalorder %s254_s17, %s254_s17 }
  0x1d   : > { %p5751_p12 = pnand %p4811_p11, %p7156_p5  ;;  %p5398_p6 = scmp.lt.s32.totalorder %s5389_s21, %s5389_s21 }
  0x1f   : > { %p5380_p13 = pneg %p5751_p12  ;;  %p5399_p7 = por %p5398_p6, %p5397_p4 }
  0x21   : > { %p5392_p1 = pnand %p5390_p0, %p5380_p13 }
  0x23   : > { %p5393_p2 = pneg %p5392_p1 }
  0x25   : > { %p5400_p9 = pnand %p5399_p7, %p5393_p2 }
  0x27   : > { %5403 = shalt.err (!%p5400_p9)
}
  0x28   : > { %s5628_s22 = smov 128   ;;  %s5629_s23 = smov 8  }
  0x29   : > { %s7182_s3 = sld [smem:[#allocation41_spill]]  ;;  %s5415_s26 = scalar_lea.vmem %s244_s20, 64 }
  0x2a   : > { %p5416_p11 = scmp.ne.s32.totalorder %s244_s20, %s5415_s26  ;;  %p5423_p5 = scmp.lt.s32.totalorder %s244_s20, %s244_s20 }
  0x2b   : > { %p5424_p4 = scmp.lt.s32.totalorder %s5415_s26, %s5415_s26 }
  0x2c   : > { %p5418_p0 = pnand %p5416_p11, %p5380_p13 }
  0x2d   : > { %p5425_p2 = por %p5424_p4, %p5423_p5 }
  0x2e   : > { %p5419_p1 = pneg %p5418_p0 }
  0x2f   : > { %4817 = dma.hbm_to_vmem [thread:$0]  (!%p5751_p12), %s7182_s3, 8192, %s254_s17, [#allocation11], %s5628_s22, %s5628_s22, %s5629_s23  }
  0x30   : > { %p5426_p6 = pnand %p5425_p2, %p5419_p1 }
  0x32   : > { %5429 = shalt.err (!%p5426_p6)
}
  0x33   : > { %s7183_s2 = sld [smem:[#allocation40_spill]]  ;;  %s5630_s16 = smov [#allocation12]  }
  0x34   : > { %s267_s17 = sshll.u32 %s5630_s16, 4  ;;  %s5631_s19 = smov [#allocation13]   ;;  %s268_s17 = int_to_ptr.vmem [resolvable:$true] %s267_s17 }
  0x35   : > { %s278_s21 = sshll.u32 %s5631_s19, 4  ;;  %s5441_s22 = scalar_lea.vmem %s268_s17, 32  ;;  %s279_s21 = int_to_ptr.vmem [resolvable:$true] %s278_s21 }
  0x36   : > { %p5442_p7 = scmp.ne.s32.totalorder %s268_s17, %s5441_s22  ;;  %p5449_p11 = scmp.lt.s32.totalorder %s268_s17, %s268_s17 }
  0x37   : > { %p5450_p0 = scmp.lt.s32.totalorder %s5441_s22, %s5441_s22 }
  0x38   : > { %p5444_p9 = pnand %p5442_p7, %p5380_p13 }
  0x39   : > { %4814 = dma.hbm_to_vmem [thread:$0]  (!%p5751_p12), %s7183_s2, 64, %s244_s20, [#allocation8]  }
  0x3a   : > { %p5445_p5 = pneg %p5444_p9  ;;  %p5451_p1 = por %p5450_p0, %p5449_p11 }
  0x3c   : > { %p5452_p4 = pnand %p5451_p1, %p5445_p5 }
  0x3e   : > { %5455 = shalt.err (!%p5452_p4)
}
  0x3f   : > { %s7184_s4 = sld [smem:[#allocation42_spill]]  ;;  %s5467_s24 = scalar_lea.vmem %s279_s21, 32 }
  0x40   : > { %p5468_p2 = scmp.ne.s32.totalorder %s279_s21, %s5467_s24  ;;  %p5475_p9 = scmp.lt.s32.totalorder %s279_s21, %s279_s21 }
  0x41   : > { %p5476_p8 = scmp.lt.s32.totalorder %s5467_s24, %s5467_s24 }
  0x42   : > { %p5470_p6 = pnand %p5468_p2, %p5380_p13 }
  0x43   : > { %p5477_p10 = por %p5476_p8, %p5475_p9 }
  0x44   : > { %p5471_p7 = pneg %p5470_p6 }
  0x45   : > { %4820 = dma.hbm_to_vmem [thread:$0]  (!%p5751_p12), %s7184_s4, 32, %s268_s17, [#allocation11]  }
  0x46   : > { %p5478_p11 = pnand %p5477_p10, %p5471_p7 }
  0x48   : > { %5481 = shalt.err (!%p5478_p11)
}
  0x49   : > { %4823 = dma.hbm_to_vmem [thread:$0]  (!%p5751_p12), %s7153_s5, 32, %s279_s21, [#allocation14]  }
  0x4a   : > { %p4443_p5 = scmp.ge.s32.totalorder %s5624_s8, 3 }
  0x4c   : > { %288 = sbr.rel (%p4443_p5) target bundleno = 117 (0x75), region = 36 }
  0x51   : > { %291 = sbr.rel (!%p5724_p3) target bundleno = 101 (0x65), region = 40  ;;  %s292_s10 = sand.u32 (%p5724_p3), 1, %s5612_s28  }
  0x52   : > { %s4444_s12 = sshll.u32 (%p5724_p3), %s292_s10, 10  ;;  %s293_s16 = scalar_lea.sflag (%p5724_p3), [#allocation5], %s292_s10 }
  0x53   : > { %s296_s17 = scalar_lea.vmem (%p5724_p3), [#allocation4], %s4444_s12 }
  0x56   : > { %304 = vsyncadd %s293_s16, 14336  ;;  %s4785_s19 = sshll.u32 %s5620_s30, 10  ;;  %s311_s22 = sshll.u32 %s296_s17, 4  ;;  %s312_s22 = int_to_ptr.vmem [resolvable:$true] %s311_s22 }
  0x57   : > { %s7185_s0 = sld [smem:[#allocation39_spill]]  ;;  %s5492_s21 = scalar_lea.vmem %s312_s22, 2048 }
  0x58   : > { %p5493_p8 = scmp.ne.s32.totalorder %s312_s22, %s5492_s21  ;;  %s5632_s24 = smov [#allocation4]  }
  0x59   : > { %s5494_s25 = sshll.u32 %s5632_s24, 4  ;;  %s5495_s25 = int_to_ptr.vmem [resolvable:$false] %s5494_s25 }
  0x5a   : > { %s5496_s26 = scalar_lea.vmem %s5495_s25, 32768  ;;  %p5497_p10 = scmp.lt.s32.totalorder %s312_s22, %s5495_s25 }
  0x5b   : > { %p5498_p12 = scmp.lt.s32.totalorder %s5496_s26, %s5492_s21 }
  0x5d   : > { %s309_s20 = scalar_lea.hbm %s7185_s0, %s4785_s19  ;;  %p5499_p13 = por %p5498_p12, %p5497_p10 }
  0x5f   : > { %p5500_p0 = pnand %p5499_p13, %p5493_p8 }
  0x61   : > { %5503 = shalt.err (!%p5500_p0)
}
  0x62   : > { %s5633_s10 = smov 3072   ;;  %s5634_s12 = smov 1024  }
  0x63   : > { %s5635_s2 = smov 64  }
  0x64   : > { %317 = dma.hbm_to_vmem [thread:$0]  %s309_s20, 2048, %s312_s22, %s293_s16, %s5633_s10, %s5634_s12, %s5635_s2  }
  0x65 PF: > { %s321_s17 = sand.u32 1, %s5624_s8   ;;  %s323_s19 = sand.u32 1, %s5612_s28  }
  0x66   : > { %s4447_s18 = sshll.u32 %s323_s19, 11  ;;  %s4787_s23 = sshll.u32 %s5620_s30, 15 }
  0x67   : > { %s332_s21 = scalar_lea.hbm %s7149_s1, %s4787_s23  ;;  %s325_s25 = scalar_lea.vmem [#allocation7], %s4447_s18 }
  0x68   : > { %s333_s26 = sshll.u32 %s325_s25, 4  ;;  %s322_s3 = scalar_lea.sflag [#allocation8], %s321_s17  ;;  %s334_s26 = int_to_ptr.vmem [resolvable:$true] %s333_s26 }
  0x69   : > { %s5516_s4 = scalar_lea.vmem %s334_s26, 32768  ;;  %s5636_s2 = smov [#allocation7]  }
  0x6a   : > { %p5517_p1 = scmp.ne.s32.totalorder %s334_s26, %s5516_s4  ;;  %s5520_s16 = sshll.u32 %s5636_s2, 4  ;;  %s5521_s16 = int_to_ptr.vmem [resolvable:$false] %s5520_s16 }
  0x6b   : > { %s5522_s22 = scalar_lea.vmem %s5521_s16, 65536  ;;  %p5523_p6 = scmp.lt.s32.totalorder %s334_s26, %s5521_s16 }
  0x6c   : > { %p5518_p4 = pnand %p5517_p1, %p5724_p3  ;;  %p5524_p7 = scmp.lt.s32.totalorder %s5522_s22, %s5516_s4 }
  0x6e   : > { %p5519_p2 = pneg %p5518_p4  ;;  %p5525_p9 = por %p5524_p7, %p5523_p6 }
  0x70   : > { %p5526_p11 = pnand %p5525_p9, %p5519_p2 }
  0x72   : > { %5529 = shalt.err (!%p5526_p11)
}
  0x73   : > { %s5637_s0 = smov 256   ;;  %s5638_s20 = smov 16  }
  0x74   : > { %4796 = dma.hbm_to_vmem [thread:$0]  (%p5724_p3), %s332_s21, 32768, %s334_s26, %s322_s3, %s5637_s0, %s5637_s0, %s5638_s20  }
  0x75 PF: > { %p7186_p5 = scmp.ne.s32.totalorder %s7180_s15, 0 }
  0x77   : > { %345 = sbr.rel (%p7186_p5) target bundleno = 1305 (0x519), region = 48 }
  0x7c   : > { %s347_s10 = sand.u32 1, %s5608_s27   ;;  %p7187_p8 = scmp.ne.s32.totalorder %s7179_s13, 0 }
  0x7d   : > { %s4452_s12 = sshll.u32 %s347_s10, 10  ;;  %s348_s17 = scalar_lea.sflag [#allocation5], %s347_s10 }
  0x7e   : > { %s5810_s19 = scalar_lea.vmem [#allocation4], %s4452_s12 }
  0x7f   : > { %5579 = dma.done.wait (%p7187_p8), %s348_s17, 16384  }
  0x80   : > { %5581 = vsyncadd (%p7187_p8), %s348_s17, 4294950912  ;;  %s356_s4 = sand.u32 1, %s5715_s6   ;;  %s4453_s3 = sshll.u32 %s347_s10, 11 }
  0x81   : > { %s357_s11 = scalar_lea.sflag [#allocation8], %s356_s4  ;;  %s5817_s18 = scalar_lea.vmem [#allocation7], %s4453_s3 }
  0x82   : > { %5583 = dma.done.wait (%p7187_p8), %s357_s11, 32768  }
  0x83   : > { %5585 = vsyncadd (%p7187_p8), %s357_s11, 4294934528  ;;  %p7188_p3 = scmp.eq.s32.totalorder %s5715_s6, 0 }
  0x85   : > { %5587 = dma.done.wait (%p7188_p3), [#allocation8], 64   ;;  %p7189_p10 = pmov %p7188_p3 }
  0x86   : > { %p7190_p12 = pmov %p7188_p3 }
  0x87   : > { %5589 = vsyncadd (%p7189_p10), [#allocation8], 4294967232 }
  0x88   : > { %5591 = dma.done.wait (%p7190_p12), [#allocation11], 8224   ;;  %p7191_p13 = pmov %p7188_p3 }
  0x89   : > { %p7192_p0 = pmov %p7188_p3 }
  0x8a   : > { %5593 = vsyncadd (%p7191_p13), [#allocation11], 4294959072 }
  0x8b   : > { %5595 = dma.done.wait (%p7192_p0), [#allocation14], 32   ;;  %p7193_p1 = pmov %p7192_p0 }
  0x8c   : > { %p4458_p4 = scmp.ne.s32.totalorder %s5616_s29, 0 }
  0x8d   : > { %5597 = vsyncadd (%p7193_p1), [#allocation14], 4294967264 }
  0x8e   : > { %417 = sbr.rel (%p4458_p4) target bundleno = 180 (0xb4), region = 76 }
  0x93   : > { %v5639_v1 = vmov 0.0  }
  0x94   : > { %418 = vst [vmem:[#allocation2 + $0xb0] sm:$0xff] %v5639_v1  ;;  %419 = vst [vmem:[#allocation2 + $0x1b0] sm:$0xff] %v5639_v1 }
  0x95   : > { %420 = vst [vmem:[#allocation2 + $0xd8] sm:$0xff] %v5639_v1  ;;  %421 = vst [vmem:[#allocation2 + $0x18] sm:$0xff] %v5639_v1 }
  0x96   : > { %422 = vst [vmem:[#allocation2 + $0x50] sm:$0xff] %v5639_v1  ;;  %423 = vst [vmem:[#allocation2 + $0x168] sm:$0xff] %v5639_v1 }
  0x97   : > { %424 = vst [vmem:[#allocation2 + $0x130] sm:$0xff] %v5639_v1  ;;  %425 = vst [vmem:[#allocation2 + $0x48] sm:$0xff] %v5639_v1 }
  0x98   : > { %426 = vst [vmem:[#allocation2 + $0x180] sm:$0xff] %v5639_v1  ;;  %427 = vst [vmem:[#allocation2 + $0x110] sm:$0xff] %v5639_v1 }
  0x99   : > { %428 = vst [vmem:[#allocation2 + $0x118] sm:$0xff] %v5639_v1  ;;  %429 = vst [vmem:[#allocation2 + $0x98] sm:$0xff] %v5639_v1 }
  0x9a   : > { %430 = vst [vmem:[#allocation2 + $0x120] sm:$0xff] %v5639_v1  ;;  %431 = vst [vmem:[#allocation2 + $0x150] sm:$0xff] %v5639_v1 }
  0x9b   : > { %432 = vst [vmem:[#allocation2 + $0x108] sm:$0xff] %v5639_v1  ;;  %433 = vst [vmem:[#allocation2 + $0x60] sm:$0xff] %v5639_v1 }
  0x9c   : > { %434 = vst [vmem:[#allocation2 + $0xe0] sm:$0xff] %v5639_v1  ;;  %435 = vst [vmem:[#allocation2 + $0x188] sm:$0xff] %v5639_v1 }
  0x9d   : > { %436 = vst [vmem:[#allocation2 + $0x138] sm:$0xff] %v5639_v1  ;;  %437 = vst [vmem:[#allocation2 + $0x140] sm:$0xff] %v5639_v1 }
  0x9e   : > { %438 = vst [vmem:[#allocation2 + $0x80] sm:$0xff] %v5639_v1  ;;  %439 = vst [vmem:[#allocation2 + $0x1a8] sm:$0xff] %v5639_v1 }
  0x9f   : > { %440 = vst [vmem:[#allocation2 + $0x1b8] sm:$0xff] %v5639_v1  ;;  %441 = vst [vmem:[#allocation2 + $0x28] sm:$0xff] %v5639_v1 }
  0xa0   : > { %442 = vst [vmem:[#allocation2 + $0x1e8] sm:$0xff] %v5639_v1  ;;  %443 = vst [vmem:[#allocation2 + $0xf8] sm:$0xff] %v5639_v1 }
  0xa1   : > { %444 = vst [vmem:[#allocation2 + $0x160] sm:$0xff] %v5639_v1  ;;  %445 = vst [vmem:[#allocation2 + $0x30] sm:$0xff] %v5639_v1 }
  0xa2   : > { %446 = vst [vmem:[#allocation2 + $0x1e0] sm:$0xff] %v5639_v1  ;;  %447 = vst [vmem:[#allocation2] sm:$0xff] %v5639_v1 }
  0xa3   : > { %448 = vst [vmem:[#allocation2 + $0xf0] sm:$0xff] %v5639_v1  ;;  %449 = vst [vmem:[#allocation2 + $0x8] sm:$0xff] %v5639_v1 }
  0xa4   : > { %450 = vst [vmem:[#allocation2 + $0x148] sm:$0xff] %v5639_v1  ;;  %451 = vst [vmem:[#allocation2 + $0x1d0] sm:$0xff] %v5639_v1 }
  0xa5   : > { %452 = vst [vmem:[#allocation2 + $0x100] sm:$0xff] %v5639_v1  ;;  %453 = vst [vmem:[#allocation2 + $0xc8] sm:$0xff] %v5639_v1 }
  0xa6   : > { %454 = vst [vmem:[#allocation2 + $0x40] sm:$0xff] %v5639_v1  ;;  %455 = vst [vmem:[#allocation2 + $0x1f8] sm:$0xff] %v5639_v1 }
  0xa7   : > { %456 = vst [vmem:[#allocation2 + $0x20] sm:$0xff] %v5639_v1  ;;  %457 = vst [vmem:[#allocation2 + $0x128] sm:$0xff] %v5639_v1 }
  0xa8   : > { %458 = vst [vmem:[#allocation2 + $0x1a0] sm:$0xff] %v5639_v1  ;;  %459 = vst [vmem:[#allocation2 + $0x1f0] sm:$0xff] %v5639_v1 }
  0xa9   : > { %460 = vst [vmem:[#allocation2 + $0xe8] sm:$0xff] %v5639_v1  ;;  %461 = vst [vmem:[#allocation2 + $0x78] sm:$0xff] %v5639_v1 }
  0xaa   : > { %462 = vst [vmem:[#allocation2 + $0x70] sm:$0xff] %v5639_v1  ;;  %463 = vst [vmem:[#allocation2 + $0x90] sm:$0xff] %v5639_v1 }
  0xab   : > { %464 = vst [vmem:[#allocation2 + $0x1d8] sm:$0xff] %v5639_v1  ;;  %465 = vst [vmem:[#allocation2 + $0xd0] sm:$0xff] %v5639_v1 }
  0xac   : > { %466 = vst [vmem:[#allocation2 + $0xb8] sm:$0xff] %v5639_v1  ;;  %467 = vst [vmem:[#allocation2 + $0x88] sm:$0xff] %v5639_v1 }
  0xad   : > { %468 = vst [vmem:[#allocation2 + $0xa8] sm:$0xff] %v5639_v1  ;;  %469 = vst [vmem:[#allocation2 + $0x1c8] sm:$0xff] %v5639_v1 }
  0xae   : > { %470 = vst [vmem:[#allocation2 + $0x170] sm:$0xff] %v5639_v1  ;;  %471 = vst [vmem:[#allocation2 + $0x178] sm:$0xff] %v5639_v1 }
  0xaf   : > { %472 = vst [vmem:[#allocation2 + $0x68] sm:$0xff] %v5639_v1  ;;  %473 = vst [vmem:[#allocation2 + $0x190] sm:$0xff] %v5639_v1 }
  0xb0   : > { %474 = vst [vmem:[#allocation2 + $0x198] sm:$0xff] %v5639_v1  ;;  %475 = vst [vmem:[#allocation2 + $0x38] sm:$0xff] %v5639_v1 }
  0xb1   : > { %476 = vst [vmem:[#allocation2 + $0xc0] sm:$0xff] %v5639_v1  ;;  %477 = vst [vmem:[#allocation2 + $0x1c0] sm:$0xff] %v5639_v1 }
  0xb2   : > { %478 = vst [vmem:[#allocation2 + $0x158] sm:$0xff] %v5639_v1  ;;  %479 = vst [vmem:[#allocation2 + $0x10] sm:$0xff] %v5639_v1 }
  0xb3   : > { %480 = vst [vmem:[#allocation2 + $0x58] sm:$0xff] %v5639_v1  ;;  %481 = vst [vmem:[#allocation2 + $0xa0] sm:$0xff] %v5639_v1 }
  0xb4 PF: > { %v4897_v2 = vld [vmem:[%s5817_s18 + $0xe4] ss:$16 sps:$4 sm:$0xff]   ;;  %v4901_v4 = vld [vmem:[%s5817_s18 + $0xe0] ss:$16 sps:$4 sm:$0xff]   ;;  %v547_v48 = vld [vmem:[%s5810_s19 + $0x8] sm:$0xff]  ;;  %p4715_p2 = scmp.ne.s32.totalorder %s5616_s29, 2 }
  0xb5   : > { %v4899_v3 = vld [vmem:[%s5817_s18 + $0x2e4] ss:$16 sps:$4 sm:$0xff]   ;;  %2274 = vmatprep.subr.bf16.mxu0 %v4897_v2  ;;  %v4902_v5 = vld [vmem:[%s5817_s18 + $0x2e0] ss:$16 sps:$4 sm:$0xff]   ;;  %v555_v49 = vld [vmem:[%s5810_s19 + $0x48] sm:$0xff] }
  0xb6   : > { %2387 = vmatprep.subr.bf16.mxu1 %v4899_v3  ;;  %v4903_v6 = vld [vmem:[%s5817_s18 + $0xc4] ss:$16 sps:$4 sm:$0xff]   ;;  %2275 = vmatpush1.bf16.msra.mxu0 %v4901_v4  ;;  %v4907_v8 = vld [vmem:[%s5817_s18 + $0xc0] ss:$16 sps:$4 sm:$0xff]   ;;  %v549_v50 = vld [vmem:[%s5810_s19 + $0x18] sm:$0xff]  ;;  %v5953_v55 = vpack.c.bf16 %v555_v49, %v547_v48 }
  0xb7   : > { %2388 = vmatpush1.bf16.msra.mxu1 %v4902_v5  ;;  %v4905_v7 = vld [vmem:[%s5817_s18 + $0x2c4] ss:$16 sps:$4 sm:$0xff]   ;;  %2276 = vmatprep.subr.bf16.mxu0 %v4903_v6  ;;  %v4908_v9 = vld [vmem:[%s5817_s18 + $0x2c0] ss:$16 sps:$4 sm:$0xff]   ;;  %v557_v51 = vld [vmem:[%s5810_s19 + $0x58] sm:$0xff] }
  0xb8   : > { %2389 = vmatprep.subr.bf16.mxu1 %v4905_v7  ;;  %v4909_v10 = vld [vmem:[%s5817_s18 + $0xa4] ss:$16 sps:$4 sm:$0xff]   ;;  %v4913_v12 = vld [vmem:[%s5817_s18 + $0xa0] ss:$16 sps:$4 sm:$0xff]   ;;  %v5955_v56 = vpack.c.bf16 %v557_v51, %v549_v50  ;;  %2306 = vmatprep.mubr.bf16.mxu0 %v5953_v55 }
  0xb9   : > { %v4911_v11 = vld [vmem:[%s5817_s18 + $0x2a4] ss:$16 sps:$4 sm:$0xff]   ;;  %v4914_v13 = vld [vmem:[%s5817_s18 + $0x2a0] ss:$16 sps:$4 sm:$0xff]  }
  0xba   : > { %2277 = vmatpush1.bf16.msra.mxu0 %v4907_v8  ;;  %v4915_v14 = vld [vmem:[%s5817_s18 + $0x84] ss:$16 sps:$4 sm:$0xff]   ;;  %v4919_v16 = vld [vmem:[%s5817_s18 + $0x80] ss:$16 sps:$4 sm:$0xff]   ;;  %2419 = vmatprep.mubr.bf16.mxu1 %v5955_v56 }
  0xbb   : > { %2390 = vmatpush1.bf16.msra.mxu1 %v4908_v9  ;;  %2278 = vmatprep.subr.bf16.mxu0 %v4909_v10  ;;  %v4917_v15 = vld [vmem:[%s5817_s18 + $0x284] ss:$16 sps:$4 sm:$0xff]   ;;  %v4920_v17 = vld [vmem:[%s5817_s18 + $0x280] ss:$16 sps:$4 sm:$0xff]  }
  0xbc   : > { %2391 = vmatprep.subr.bf16.mxu1 %v4911_v11  ;;  %v4921_v18 = vld [vmem:[%s5817_s18 + $0x64] ss:$16 sps:$4 sm:$0xff]   ;;  %v4925_v20 = vld [vmem:[%s5817_s18 + $0x60] ss:$16 sps:$4 sm:$0xff]  }
  0xbd   : > { %v4923_v19 = vld [vmem:[%s5817_s18 + $0x264] ss:$16 sps:$4 sm:$0xff]   ;;  %v4926_v21 = vld [vmem:[%s5817_s18 + $0x260] ss:$16 sps:$4 sm:$0xff]  }
  0xbe   : > { %2279 = vmatpush1.bf16.msra.mxu0 %v4913_v12  ;;  %v4927_v22 = vld [vmem:[%s5817_s18 + $0x44] ss:$16 sps:$4 sm:$0xff]   ;;  %v4931_v24 = vld [vmem:[%s5817_s18 + $0x40] ss:$16 sps:$4 sm:$0xff]  }
  0xbf   : > { %2392 = vmatpush1.bf16.msra.mxu1 %v4914_v13  ;;  %2280 = vmatprep.subr.bf16.mxu0 %v4915_v14  ;;  %v4929_v23 = vld [vmem:[%s5817_s18 + $0x244] ss:$16 sps:$4 sm:$0xff]   ;;  %v4932_v25 = vld [vmem:[%s5817_s18 + $0x240] ss:$16 sps:$4 sm:$0xff]  }
  0xc0   : > { %2393 = vmatprep.subr.bf16.mxu1 %v4917_v15  ;;  %v4933_v26 = vld [vmem:[%s5817_s18 + $0x24] ss:$16 sps:$4 sm:$0xff]   ;;  %v4937_v28 = vld [vmem:[%s5817_s18 + $0x20] ss:$16 sps:$4 sm:$0xff]  }
  0xc1   : > { %v4935_v27 = vld [vmem:[%s5817_s18 + $0x224] ss:$16 sps:$4 sm:$0xff]   ;;  %v4938_v29 = vld [vmem:[%s5817_s18 + $0x220] ss:$16 sps:$4 sm:$0xff]  }
  0xc2   : > { %2281 = vmatpush1.bf16.msra.mxu0 %v4919_v16  ;;  %v4939_v30 = vld [vmem:[%s5817_s18 + $0x4] ss:$16 sps:$4 sm:$0xff]   ;;  %v4943_v32 = vld [vmem:[%s5817_s18] ss:$16 sps:$4 sm:$0xff]   ;;  %v563_v16 = vld [vmem:[%s5810_s19 + $0x88] sm:$0xff] }
  0xc3   : > { %2394 = vmatpush1.bf16.msra.mxu1 %v4920_v17  ;;  %2282 = vmatprep.subr.bf16.mxu0 %v4921_v18  ;;  %v4941_v31 = vld [vmem:[%s5817_s18 + $0x204] ss:$16 sps:$4 sm:$0xff]   ;;  %v4944_v33 = vld [vmem:[%s5817_s18 + $0x200] ss:$16 sps:$4 sm:$0xff]   ;;  %v571_v17 = vld [vmem:[%s5810_s19 + $0xc8] sm:$0xff] }
  0xc4   : > { %2395 = vmatprep.subr.bf16.mxu1 %v4923_v19  ;;  %v4945_v34 = vld [vmem:[%s5817_s18 + $0x1e4] ss:$16 sps:$4 sm:$0xff]   ;;  %v4949_v36 = vld [vmem:[%s5817_s18 + $0x1e0] ss:$16 sps:$4 sm:$0xff]  }
  0xc5   : > { %v4947_v35 = vld [vmem:[%s5817_s18 + $0x3e4] ss:$16 sps:$4 sm:$0xff]   ;;  %v4950_v37 = vld [vmem:[%s5817_s18 + $0x3e0] ss:$16 sps:$4 sm:$0xff]  }
  0xc6   : > { %2283 = vmatpush1.bf16.msra.mxu0 %v4925_v20  ;;  %v4951_v38 = vld [vmem:[%s5817_s18 + $0x1c4] ss:$16 sps:$4 sm:$0xff]   ;;  %v4955_v40 = vld [vmem:[%s5817_s18 + $0x1c0] ss:$16 sps:$4 sm:$0xff]   ;;  %v565_v20 = vld [vmem:[%s5810_s19 + $0x98] sm:$0xff] }
  0xc7   : > { %2396 = vmatpush1.bf16.msra.mxu1 %v4926_v21  ;;  %2284 = vmatprep.subr.bf16.mxu0 %v4927_v22  ;;  %v4953_v39 = vld [vmem:[%s5817_s18 + $0x3c4] ss:$16 sps:$4 sm:$0xff]   ;;  %v4956_v41 = vld [vmem:[%s5817_s18 + $0x3c0] ss:$16 sps:$4 sm:$0xff]   ;;  %v573_v21 = vld [vmem:[%s5810_s19 + $0xd8] sm:$0xff] }
  0xc8   : > { %2397 = vmatprep.subr.bf16.mxu1 %v4929_v23  ;;  %v4957_v42 = vld [vmem:[%s5817_s18 + $0x1a4] ss:$16 sps:$4 sm:$0xff]   ;;  %v4961_v44 = vld [vmem:[%s5817_s18 + $0x1a0] ss:$16 sps:$4 sm:$0xff]  }
  0xc9   : > { %v4959_v43 = vld [vmem:[%s5817_s18 + $0x3a4] ss:$16 sps:$4 sm:$0xff]   ;;  %v4962_v45 = vld [vmem:[%s5817_s18 + $0x3a0] ss:$16 sps:$4 sm:$0xff]  }
  0xca   : > { %2285 = vmatpush1.bf16.msra.mxu0 %v4931_v24  ;;  %v4963_v46 = vld [vmem:[%s5817_s18 + $0x184] ss:$16 sps:$4 sm:$0xff]   ;;  %v4967_v52 = vld [vmem:[%s5817_s18 + $0x180] ss:$16 sps:$4 sm:$0xff]  }
  0xcb   : > { %2398 = vmatpush1.bf16.msra.mxu1 %v4932_v25  ;;  %2286 = vmatprep.subr.bf16.mxu0 %v4933_v26  ;;  %v4965_v47 = vld [vmem:[%s5817_s18 + $0x384] ss:$16 sps:$4 sm:$0xff]   ;;  %v4968_v53 = vld [vmem:[%s5817_s18 + $0x380] ss:$16 sps:$4 sm:$0xff]   ;;  %v5993_v25 = vpack.c.bf16 %v571_v17, %v563_v16  ;;  %v5995_v26 = vpack.c.bf16 %v573_v21, %v565_v20  ;;  %v613_v20 = vld [vmem:[%s5810_s19 + $0x218] sm:$0xff] }
  0xcc   : > { %2399 = vmatprep.subr.bf16.mxu1 %v4935_v27  ;;  %v4969_v54 = vld [vmem:[%s5817_s18 + $0x164] ss:$16 sps:$4 sm:$0xff]   ;;  %v4973_v58 = vld [vmem:[%s5817_s18 + $0x160] ss:$16 sps:$4 sm:$0xff]   ;;  %v621_v21 = vld [vmem:[%s5810_s19 + $0x258] sm:$0xff] }
  0xcd   : > { %v4971_v57 = vld [vmem:[%s5817_s18 + $0x364] ss:$16 sps:$4 sm:$0xff]   ;;  %v4974_v59 = vld [vmem:[%s5817_s18 + $0x360] ss:$16 sps:$4 sm:$0xff]  }
  0xce   : > { %2287 = vmatpush1.bf16.msra.mxu0 %v4937_v28  ;;  %v4975_v60 = vld [vmem:[%s5817_s18 + $0x144] ss:$16 sps:$4 sm:$0xff]   ;;  %v4979_v62 = vld [vmem:[%s5817_s18 + $0x140] ss:$16 sps:$4 sm:$0xff]  }
  0xcf   : > { %2400 = vmatpush1.bf16.msra.mxu1 %v4938_v29  ;;  %2288 = vmatprep.subr.bf16.mxu0 %v4939_v30  ;;  %v4977_v61 = vld [vmem:[%s5817_s18 + $0x344] ss:$16 sps:$4 sm:$0xff]   ;;  %v4980_v63 = vld [vmem:[%s5817_s18 + $0x340] ss:$16 sps:$4 sm:$0xff]  }
  0xd0   : > { %2401 = vmatprep.subr.bf16.mxu1 %v4941_v31  ;;  %v4981_v0 = vld [vmem:[%s5817_s18 + $0x124] ss:$16 sps:$4 sm:$0xff]   ;;  %v4985_v2 = vld [vmem:[%s5817_s18 + $0x120] ss:$16 sps:$4 sm:$0xff]  }
  0xd1   : > { %v4983_v1 = vld [vmem:[%s5817_s18 + $0x324] ss:$16 sps:$4 sm:$0xff]   ;;  %v4986_v3 = vld [vmem:[%s5817_s18 + $0x320] ss:$16 sps:$4 sm:$0xff]  }
  0xd2   : > { %2289 = vmatpush1.bf16.msra.mxu0 %v4943_v32  ;;  %v4987_v4 = vld [vmem:[%s5817_s18 + $0x104] ss:$16 sps:$4 sm:$0xff]   ;;  %v4991_v6 = vld [vmem:[%s5817_s18 + $0x100] ss:$16 sps:$4 sm:$0xff]  }
  0xd3   : > { %2402 = vmatpush1.bf16.msra.mxu1 %v4944_v33  ;;  %2290 = vmatprep.subr.bf16.mxu0 %v4945_v34  ;;  %v4989_v5 = vld [vmem:[%s5817_s18 + $0x304] ss:$16 sps:$4 sm:$0xff]   ;;  %v4992_v7 = vld [vmem:[%s5817_s18 + $0x300] ss:$16 sps:$4 sm:$0xff]  }
  0xd4   : > { %2403 = vmatprep.subr.bf16.mxu1 %v4947_v35  ;;  %v546_v8 = vld [vmem:[%s5810_s19] sm:$0xff]  ;;  %v548_v10 = vld [vmem:[%s5810_s19 + $0x10] sm:$0xff] }
  0xd5   : > { %v554_v9 = vld [vmem:[%s5810_s19 + $0x40] sm:$0xff]  ;;  %v556_v11 = vld [vmem:[%s5810_s19 + $0x50] sm:$0xff] }
  0xd6   : > { %2291 = vmatpush2.bf16.msra.mxu0 %v4949_v36  ;;  %v4995_v12 = vld [vmem:[%s5817_s18 + $0x4e4] ss:$16 sps:$4 sm:$0xff]   ;;  %v4993_v14 = vld [vmem:[%s5817_s18 + $0x4e0] ss:$16 sps:$4 sm:$0xff]   ;;  %v5984_v18 = vpack.c.bf16 %v554_v9, %v546_v8  ;;  %v5986_v19 = vpack.c.bf16 %v556_v11, %v548_v10  ;;  %v579_v36 = vld [vmem:[%s5810_s19 + $0x108] sm:$0xff] }
  0xd7   : > { %2404 = vmatpush2.bf16.msra.mxu1 %v4950_v37  ;;  %2292 = vmatprep.subr.bf16.mxu0 %v4951_v38  ;;  %v4998_v13 = vld [vmem:[%s5817_s18 + $0x6e4] ss:$16 sps:$4 sm:$0xff]   ;;  %v4996_v15 = vld [vmem:[%s5817_s18 + $0x6e0] ss:$16 sps:$4 sm:$0xff]   ;;  %v587_v37 = vld [vmem:[%s5810_s19 + $0x148] sm:$0xff] }
  0xd8   : > { %2405 = vmatprep.subr.bf16.mxu1 %v4953_v39  ;;  %v5001_v22 = vld [vmem:[%s5817_s18 + $0x4c4] ss:$16 sps:$4 sm:$0xff]   ;;  %v4999_v24 = vld [vmem:[%s5817_s18 + $0x4c0] ss:$16 sps:$4 sm:$0xff]  }
  0xd9   : > { %v5004_v23 = vld [vmem:[%s5817_s18 + $0x6c4] ss:$16 sps:$4 sm:$0xff]   ;;  %v5002_v27 = vld [vmem:[%s5817_s18 + $0x6c0] ss:$16 sps:$4 sm:$0xff]  }
  0xda   : > { %2293 = vmatpush2.bf16.msra.mxu0 %v4955_v40  ;;  %v562_v28 = vld [vmem:[%s5810_s19 + $0x80] sm:$0xff]  ;;  %v564_v30 = vld [vmem:[%s5810_s19 + $0x90] sm:$0xff]  ;;  %v581_v40 = vld [vmem:[%s5810_s19 + $0x118] sm:$0xff] }
  0xdb   : > { %2406 = vmatpush2.bf16.msra.mxu1 %v4956_v41  ;;  %2294 = vmatprep.subr.bf16.mxu0 %v4957_v42  ;;  %v570_v29 = vld [vmem:[%s5810_s19 + $0xc0] sm:$0xff]  ;;  %v572_v31 = vld [vmem:[%s5810_s19 + $0xd0] sm:$0xff]  ;;  %v589_v41 = vld [vmem:[%s5810_s19 + $0x158] sm:$0xff] }
  0xdc   : > { %2407 = vmatprep.subr.bf16.mxu1 %v4959_v43  ;;  %v5007_v32 = vld [vmem:[%s5817_s18 + $0x4a4] ss:$16 sps:$4 sm:$0xff]   ;;  %v5005_v34 = vld [vmem:[%s5817_s18 + $0x4a0] ss:$16 sps:$4 sm:$0xff]   ;;  %v6012_v38 = vpack.c.bf16 %v570_v29, %v562_v28  ;;  %v6014_v39 = vpack.c.bf16 %v572_v31, %v564_v30  ;;  %v6079_v28 = vpack.c.bf16 %v621_v21, %v613_v20 }
  0xdd   : > { %v5010_v33 = vld [vmem:[%s5817_s18 + $0x6a4] ss:$16 sps:$4 sm:$0xff]   ;;  %v5008_v35 = vld [vmem:[%s5817_s18 + $0x6a0] ss:$16 sps:$4 sm:$0xff]  }
  0xde   : > { %2295 = vmatpush2.bf16.msra.mxu0 %v4961_v44  ;;  %v5013_v42 = vld [vmem:[%s5817_s18 + $0x484] ss:$16 sps:$4 sm:$0xff]   ;;  %v5011_v44 = vld [vmem:[%s5817_s18 + $0x480] ss:$16 sps:$4 sm:$0xff]  }
  0xdf   : > { %2408 = vmatpush2.bf16.msra.mxu1 %v4962_v45  ;;  %2296 = vmatprep.subr.bf16.mxu0 %v4963_v46  ;;  %v5016_v43 = vld [vmem:[%s5817_s18 + $0x684] ss:$16 sps:$4 sm:$0xff]   ;;  %v6021_v45 = vpack.c.bf16 %v587_v37, %v579_v36  ;;  %v6023_v46 = vpack.c.bf16 %v589_v41, %v581_v40  ;;  %v5038_v29 = vld [vmem:[%s5817_s18 + $0x600] ss:$16 sps:$4 sm:$0xff]   ;;  %v627_v40 = vld [vmem:[%s5810_s19 + $0x288] sm:$0xff] }
  0xe0   : > { %2409 = vmatprep.subr.bf16.mxu1 %v4965_v47  ;;  %v5014_v47 = vld [vmem:[%s5817_s18 + $0x680] ss:$16 sps:$4 sm:$0xff]   ;;  %v5031_v10 = vld [vmem:[%s5817_s18 + $0x424] ss:$16 sps:$4 sm:$0xff]   ;;  %v635_v41 = vld [vmem:[%s5810_s19 + $0x2c8] sm:$0xff] }
  0xe1   : > { %v578_v48 = vld [vmem:[%s5810_s19 + $0x100] sm:$0xff]  ;;  %v580_v50 = vld [vmem:[%s5810_s19 + $0x110] sm:$0xff] }
  0xe2   : > { %2297 = vmatpush2.bf16.msra.mxu0 %v4967_v52  ;;  %v586_v49 = vld [vmem:[%s5810_s19 + $0x140] sm:$0xff]  ;;  %v588_v51 = vld [vmem:[%s5810_s19 + $0x150] sm:$0xff] }
  0xe3   : > { %2410 = vmatpush2.bf16.msra.mxu1 %v4968_v53  ;;  %2298 = vmatprep.subr.bf16.mxu0 %v4969_v54  ;;  %v5019_v52 = vld [vmem:[%s5817_s18 + $0x464] ss:$16 sps:$4 sm:$0xff]   ;;  %v5017_v54 = vld [vmem:[%s5817_s18 + $0x460] ss:$16 sps:$4 sm:$0xff]  }
  0xe4   : > { %2411 = vmatprep.subr.bf16.mxu1 %v4971_v57  ;;  %v5022_v53 = vld [vmem:[%s5817_s18 + $0x664] ss:$16 sps:$4 sm:$0xff]   ;;  %v5020_v57 = vld [vmem:[%s5817_s18 + $0x660] ss:$16 sps:$4 sm:$0xff]  }
  0xe5   : > { %v596_v8 = vld [vmem:[%s5810_s19 + $0x190] sm:$0xff]  ;;  %v610_v30 = vld [vmem:[%s5810_s19 + $0x200] sm:$0xff] }
  0xe6   : > { %2299 = vmatpush2.bf16.msra.mxu0 %v4973_v58  ;;  %v595_v58 = vld [vmem:[%s5810_s19 + $0x188] sm:$0xff]  ;;  %v604_v9 = vld [vmem:[%s5810_s19 + $0x1d0] sm:$0xff]  ;;  %v618_v31 = vld [vmem:[%s5810_s19 + $0x240] sm:$0xff] }
  0xe7   : > { %2412 = vmatpush2.bf16.msra.mxu1 %v4974_v59  ;;  %2300 = vmatprep.subr.bf16.mxu0 %v4975_v60  ;;  %v603_v59 = vld [vmem:[%s5810_s19 + $0x1c8] sm:$0xff]  ;;  %v6040_v60 = vpack.c.bf16 %v586_v49, %v578_v48  ;;  %v5034_v11 = vld [vmem:[%s5817_s18 + $0x624] ss:$16 sps:$4 sm:$0xff]   ;;  %v6070_v17 = vpack.c.bf16 %v604_v9, %v596_v8  ;;  %v5041_v36 = vld [vmem:[%s5817_s18 + $0x5e0] ss:$16 sps:$4 sm:$0xff]  }
  0xe8   : > { %2413 = vmatprep.subr.bf16.mxu1 %v4977_v61  ;;  %v6042_v61 = vpack.c.bf16 %v588_v51, %v580_v50  ;;  %v5044_v37 = vld [vmem:[%s5817_s18 + $0x7e0] ss:$16 sps:$4 sm:$0xff]   ;;  %v5049_v48 = vld [vmem:[%s5817_s18 + $0x5c4] ss:$16 sps:$4 sm:$0xff]   ;;  %v6105_v51 = vpack.c.bf16 %v635_v41, %v627_v40  ;;  %v645_v8 = vld [vmem:[%s5810_s19 + $0x318] sm:$0xff] }
  0xe9   : > { %v5052_v49 = vld [vmem:[%s5817_s18 + $0x7c4] ss:$16 sps:$4 sm:$0xff]   ;;  %v5047_v50 = vld [vmem:[%s5817_s18 + $0x5c0] ss:$16 sps:$4 sm:$0xff]   ;;  %v653_v9 = vld [vmem:[%s5810_s19 + $0x358] sm:$0xff] }
  0xea   : > { %2301 = vmatpush2.bf16.msra.mxu0 %v4979_v62  ;;  %v597_v62 = vld [vmem:[%s5810_s19 + $0x198] sm:$0xff]  ;;  %v642_v20 = vld [vmem:[%s5810_s19 + $0x300] sm:$0xff] }
  0xeb   : > { %2414 = vmatpush2.bf16.msra.mxu1 %v4980_v63  ;;  %2302 = vmatprep.subr.bf16.mxu0 %v4981_v0  ;;  %v605_v63 = vld [vmem:[%s5810_s19 + $0x1d8] sm:$0xff]  ;;  %v5025_v0 = vld [vmem:[%s5817_s18 + $0x444] ss:$16 sps:$4 sm:$0xff]  }
  0xec   : > { %2415 = vmatprep.subr.bf16.mxu1 %v4983_v1  ;;  %v5028_v1 = vld [vmem:[%s5817_s18 + $0x644] ss:$16 sps:$4 sm:$0xff]  }
  0xed   : > { %v650_v21 = vld [vmem:[%s5810_s19 + $0x340] sm:$0xff] }
  0xee   : > { %2303 = vmatpush2.bf16.msra.mxu0 %v4985_v2  ;;  %v5023_v2 = vld [vmem:[%s5817_s18 + $0x440] ss:$16 sps:$4 sm:$0xff]   ;;  %v5073_v40 = vld [vmem:[%s5817_s18 + $0x544] ss:$16 sps:$4 sm:$0xff]  }
  0xef   : > { %2416 = vmatpush2.bf16.msra.mxu1 %v4986_v3  ;;  %2304 = vmatprep.subr.bf16.mxu0 %v4987_v4  ;;  %v6049_v3 = vpack.c.bf16 %v603_v59, %v595_v58  ;;  %v6051_v4 = vpack.c.bf16 %v605_v63, %v597_v62  ;;  %v628_v58 = vld [vmem:[%s5810_s19 + $0x290] sm:$0xff] }
  0xf0   : > { %2417 = vmatprep.subr.bf16.mxu1 %v4989_v5  ;;  %v5026_v5 = vld [vmem:[%s5817_s18 + $0x640] ss:$16 sps:$4 sm:$0xff]   ;;  %v5055_v62 = vld [vmem:[%s5817_s18 + $0x5a4] ss:$16 sps:$4 sm:$0xff]  }
  0xf1   : > { %v636_v59 = vld [vmem:[%s5810_s19 + $0x2d0] sm:$0xff] }
  0xf2   : > { %2305 = vmatpush2.bf16.msra.mxu0 %v4991_v6  ;;  %v594_v6 = vld [vmem:[%s5810_s19 + $0x180] sm:$0xff] }
  0xf3   : > { %2418 = vmatpush2.bf16.msra.mxu1 %v4992_v7  ;;  %2500 = vmatprep.subr.bf16.mxu0 %v4995_v12  ;;  %v602_v7 = vld [vmem:[%s5810_s19 + $0x1c0] sm:$0xff] }
  0xf4   : > { %2613 = vmatprep.subr.bf16.mxu1 %v4998_v13  ;;  %v5029_v12 = vld [vmem:[%s5817_s18 + $0x420] ss:$16 sps:$4 sm:$0xff]   ;;  %v6068_v16 = vpack.c.bf16 %v602_v7, %v594_v6  ;;  %v5058_v63 = vld [vmem:[%s5817_s18 + $0x7a4] ss:$16 sps:$4 sm:$0xff]   ;;  %v6126_v7 = vpack.c.bf16 %v636_v59, %v628_v58 }
  0xf5   : > { %2307 = vmatmul.mubr.bf16.vlgmr.msra.gmra.mxu0 %v5984_v18  ;;  %v5032_v13 = vld [vmem:[%s5817_s18 + $0x620] ss:$16 sps:$4 sm:$0xff]   ;;  %v5076_v41 = vld [vmem:[%s5817_s18 + $0x744] ss:$16 sps:$4 sm:$0xff]  }
  0xf6   : > { %2420 = vmatmul.mubr.bf16.vlgmr.msra.gmra.mxu1 %v5986_v19  ;;  %2501 = vmatpush1.bf16.msra.mxu0 %v4993_v14  ;;  %v611_v14 = vld [vmem:[%s5810_s19 + $0x208] sm:$0xff]  ;;  %v5079_v58 = vld [vmem:[%s5817_s18 + $0x524] ss:$16 sps:$4 sm:$0xff]  }
  0xf7   : > { %2614 = vmatpush1.bf16.msra.mxu1 %v4996_v15  ;;  %2502 = vmatprep.subr.bf16.mxu0 %v5001_v22  ;;  %v619_v15 = vld [vmem:[%s5810_s19 + $0x248] sm:$0xff]  ;;  %v5037_v22 = vld [vmem:[%s5817_s18 + $0x404] ss:$16 sps:$4 sm:$0xff]  }
  0xf8   : > { %2615 = vmatprep.subr.bf16.mxu1 %v5004_v23  ;;  %2316 = vmatprep.mubr.bf16.mxu0 %v5993_v25  ;;  %v5040_v23 = vld [vmem:[%s5817_s18 + $0x604] ss:$16 sps:$4 sm:$0xff]  }
  0xf9   : > { %2429 = vmatprep.mubr.bf16.mxu1 %v5995_v26  ;;  %v5082_v59 = vld [vmem:[%s5817_s18 + $0x724] ss:$16 sps:$4 sm:$0xff]  }
  0xfa   : > { %2503 = vmatpush1.bf16.msra.mxu0 %v4999_v24  ;;  %v5035_v24 = vld [vmem:[%s5817_s18 + $0x400] ss:$16 sps:$4 sm:$0xff]  }
  0xfb   : > { %2616 = vmatpush1.bf16.msra.mxu1 %v5002_v27  ;;  %2504 = vmatprep.subr.bf16.mxu0 %v5007_v32  ;;  %v6077_v27 = vpack.c.bf16 %v619_v15, %v611_v14  ;;  %v612_v32 = vld [vmem:[%s5810_s19 + $0x210] sm:$0xff]  ;;  %v6135_v14 = vpack.c.bf16 %v653_v9, %v645_v8  ;;  %v553_v8 = vld [vmem:[%s5810_s19 + $0x38] sm:$0xff] }
  0xfc   : > { %2617 = vmatprep.subr.bf16.mxu1 %v5010_v33  ;;  %v620_v33 = vld [vmem:[%s5810_s19 + $0x250] sm:$0xff]  ;;  %v561_v9 = vld [vmem:[%s5810_s19 + $0x78] sm:$0xff] }
  0xfd   : > { %2317 = vmatmul.mubr.bf16.gmra.mxu0 %v6012_v38  ;;  %v5062_v15 = vld [vmem:[%s5817_s18 + $0x780] ss:$16 sps:$4 sm:$0xff]  }
  0xfe   : > { %2430 = vmatmul.mubr.bf16.gmra.mxu1 %v6014_v39  ;;  %2505 = vmatpush1.bf16.msra.mxu0 %v5005_v34  ;;  %v5043_v34 = vld [vmem:[%s5817_s18 + $0x5e4] ss:$16 sps:$4 sm:$0xff]  }
  0xff   : > { %2618 = vmatpush1.bf16.msra.mxu1 %v5008_v35  ;;  %2506 = vmatprep.subr.bf16.mxu0 %v5013_v42  ;;  %v5046_v35 = vld [vmem:[%s5817_s18 + $0x7e4] ss:$16 sps:$4 sm:$0xff]   ;;  %v6096_v42 = vpack.c.bf16 %v618_v31, %v610_v30  ;;  %v5065_v30 = vld [vmem:[%s5817_s18 + $0x560] ss:$16 sps:$4 sm:$0xff]  }
 0x100   : > { %2619 = vmatprep.subr.bf16.mxu1 %v5016_v43  ;;  %2326 = vmatprep.mubr.bf16.mxu0 %v6021_v45  ;;  %v6098_v43 = vpack.c.bf16 %v620_v33, %v612_v32  ;;  %v5068_v31 = vld [vmem:[%s5817_s18 + $0x760] ss:$16 sps:$4 sm:$0xff]   ;;  %v659_v32 = vld [vmem:[%s5810_s19 + $0x388] sm:$0xff] }
 0x101   : > { %2439 = vmatprep.mubr.bf16.mxu1 %v6023_v46  ;;  %v667_v33 = vld [vmem:[%s5810_s19 + $0x3c8] sm:$0xff] }
 0x102   : > { %2507 = vmatpush1.bf16.msra.mxu0 %v5011_v44  ;;  %v629_v44 = vld [vmem:[%s5810_s19 + $0x298] sm:$0xff] }
 0x103   : > { %2620 = vmatpush1.bf16.msra.mxu1 %v5014_v47  ;;  %2508 = vmatprep.subr.bf16.mxu0 %v5019_v52  ;;  %v637_v47 = vld [vmem:[%s5810_s19 + $0x2d8] sm:$0xff] }
 0x104   : > { %2621 = vmatprep.subr.bf16.mxu1 %v5022_v53  ;;  %v6107_v52 = vpack.c.bf16 %v637_v47, %v629_v44  ;;  %v5050_v53 = vld [vmem:[%s5817_s18 + $0x7c0] ss:$16 sps:$4 sm:$0xff]   ;;  %v6161_v47 = vpack.c.bf16 %v667_v33, %v659_v32  ;;  %v5089_v32 = vld [vmem:[%s5817_s18 + $0xe8] ss:$16 sps:$4 sm:$0xff]  }
 0x105   : > { %2327 = vmatmul.mubr.bf16.gmra.mxu0 %v6040_v60  ;;  %v5071_v44 = vld [vmem:[%s5817_s18 + $0x540] ss:$16 sps:$4 sm:$0xff]   ;;  %v5092_v33 = vld [vmem:[%s5817_s18 + $0x2e8] ss:$16 sps:$4 sm:$0xff]  }
 0x106   : > { %2440 = vmatmul.mubr.bf16.gmra.mxu1 %v6042_v61  ;;  %2509 = vmatpush1.bf16.msra.mxu0 %v5017_v54  ;;  %v626_v54 = vld [vmem:[%s5810_s19 + $0x280] sm:$0xff] }
 0x107   : > { %2622 = vmatpush1.bf16.msra.mxu1 %v5020_v57  ;;  %2510 = vmatprep.subr.bf16.mxu0 %v5025_v0  ;;  %v634_v57 = vld [vmem:[%s5810_s19 + $0x2c0] sm:$0xff] }
 0x108   : > { %2623 = vmatprep.subr.bf16.mxu1 %v5028_v1  ;;  %2336 = vmatprep.mubr.bf16.mxu0 %v6049_v3  ;;  %v5053_v0 = vld [vmem:[%s5817_s18 + $0x5a0] ss:$16 sps:$4 sm:$0xff]   ;;  %v6124_v6 = vpack.c.bf16 %v634_v57, %v626_v54 }
 0x109   : > { %2449 = vmatprep.mubr.bf16.mxu1 %v6051_v4  ;;  %v5056_v1 = vld [vmem:[%s5817_s18 + $0x7a0] ss:$16 sps:$4 sm:$0xff]  }
 0x10a   : > { %2511 = vmatpush1.bf16.msra.mxu0 %v5023_v2  ;;  %v643_v2 = vld [vmem:[%s5810_s19 + $0x308] sm:$0xff]  ;;  %v660_v54 = vld [vmem:[%s5810_s19 + $0x390] sm:$0xff] }
 0x10b   : > { %2624 = vmatpush1.bf16.msra.mxu1 %v5026_v5  ;;  %2512 = vmatprep.subr.bf16.mxu0 %v5031_v10  ;;  %v651_v5 = vld [vmem:[%s5810_s19 + $0x348] sm:$0xff]  ;;  %v5061_v10 = vld [vmem:[%s5817_s18 + $0x584] ss:$16 sps:$4 sm:$0xff]  }
 0x10c   : > { %2625 = vmatprep.subr.bf16.mxu1 %v5034_v11  ;;  %v5064_v11 = vld [vmem:[%s5817_s18 + $0x784] ss:$16 sps:$4 sm:$0xff]  }
 0x10d   : > { %2337 = vmatmul.mubr.bf16.gmra.mxu0 %v6068_v16  ;;  %v668_v57 = vld [vmem:[%s5810_s19 + $0x3d0] sm:$0xff] }
 0x10e   : > { %2450 = vmatmul.mubr.bf16.gmra.mxu1 %v6070_v17  ;;  %2513 = vmatpush1.bf16.msra.mxu0 %v5029_v12  ;;  %v5059_v12 = vld [vmem:[%s5817_s18 + $0x580] ss:$16 sps:$4 sm:$0xff]  }
 0x10f   : > { %2626 = vmatpush1.bf16.msra.mxu1 %v5032_v13  ;;  %2514 = vmatprep.subr.bf16.mxu0 %v5037_v22  ;;  %v6133_v13 = vpack.c.bf16 %v651_v5, %v643_v2  ;;  %v644_v22 = vld [vmem:[%s5810_s19 + $0x310] sm:$0xff]  ;;  %v6182_v5 = vpack.c.bf16 %v668_v57, %v660_v54  ;;  %v5095_v54 = vld [vmem:[%s5817_s18 + $0xc8] ss:$16 sps:$4 sm:$0xff]  }
 0x110   : > { %2627 = vmatprep.subr.bf16.mxu1 %v5040_v23  ;;  %2346 = vmatprep.mubr.bf16.mxu0 %v6077_v27  ;;  %v652_v23 = vld [vmem:[%s5810_s19 + $0x350] sm:$0xff] }
 0x111   : > { %2459 = vmatprep.mubr.bf16.mxu1 %v6079_v28 }
 0x112   : > { %2515 = vmatpush1.bf16.msra.mxu0 %v5035_v24  ;;  %v5067_v24 = vld [vmem:[%s5817_s18 + $0x564] ss:$16 sps:$4 sm:$0xff]  }
 0x113   : > { %2628 = vmatpush1.bf16.msra.mxu1 %v5038_v29  ;;  %2516 = vmatprep.subr.bf16.mxu0 %v5043_v34  ;;  %v5070_v29 = vld [vmem:[%s5817_s18 + $0x764] ss:$16 sps:$4 sm:$0xff]   ;;  %v6152_v34 = vpack.c.bf16 %v650_v21, %v642_v20  ;;  %v6191_v20 = vpack.c.bf16 %v561_v9, %v553_v8  ;;  %v5086_v21 = vld [vmem:[%s5817_s18 + $0x700] ss:$16 sps:$4 sm:$0xff]   ;;  %v5103_v8 = vld [vmem:[%s5817_s18 + $0xac] ss:$16 sps:$4 sm:$0xff]  }
 0x114   : > { %2629 = vmatprep.subr.bf16.mxu1 %v5046_v35  ;;  %v6154_v35 = vpack.c.bf16 %v652_v23, %v644_v22  ;;  %v550_v22 = vld [vmem:[%s5810_s19 + $0x20] sm:$0xff]  ;;  %v5106_v9 = vld [vmem:[%s5817_s18 + $0x2ac] ss:$16 sps:$4 sm:$0xff]  }
 0x115   : > { %2347 = vmatmul.mubr.bf16.gmra.mxu0 %v6096_v42  ;;  %v558_v23 = vld [vmem:[%s5810_s19 + $0x60] sm:$0xff] }
 0x116   : > { %2460 = vmatmul.mubr.bf16.gmra.mxu1 %v6098_v43  ;;  %2517 = vmatpush2.bf16.msra.mxu0 %v5041_v36  ;;  %v661_v36 = vld [vmem:[%s5810_s19 + $0x398] sm:$0xff] }
 0x117   : > { %2630 = vmatpush2.bf16.msra.mxu1 %v5044_v37  ;;  %2518 = vmatprep.subr.bf16.mxu0 %v5049_v48  ;;  %v669_v37 = vld [vmem:[%s5810_s19 + $0x3d8] sm:$0xff] }
 0x118   : > { %2631 = vmatprep.subr.bf16.mxu1 %v5052_v49  ;;  %2356 = vmatprep.mubr.bf16.mxu0 %v6105_v51  ;;  %v6163_v48 = vpack.c.bf16 %v669_v37, %v661_v36  ;;  %v5074_v49 = vld [vmem:[%s5817_s18 + $0x740] ss:$16 sps:$4 sm:$0xff]   ;;  %v567_v36 = vld [vmem:[%s5810_s19 + $0xa8] sm:$0xff] }
 0x119   : > { %2469 = vmatprep.mubr.bf16.mxu1 %v6107_v52  ;;  %v575_v37 = vld [vmem:[%s5810_s19 + $0xe8] sm:$0xff] }
 0x11a   : > { %2519 = vmatpush2.bf16.msra.mxu0 %v5047_v50  ;;  %v658_v50 = vld [vmem:[%s5810_s19 + $0x380] sm:$0xff]  ;;  %v6217_v57 = vpack.c.bf16 %v575_v37, %v567_v36  ;;  %v5110_v37 = vld [vmem:[%s5817_s18 + $0x288] ss:$16 sps:$4 sm:$0xff]  }
 0x11b   : > { %2632 = vmatpush2.bf16.msra.mxu1 %v5050_v53  ;;  %2520 = vmatprep.subr.bf16.mxu0 %v5055_v62  ;;  %v666_v53 = vld [vmem:[%s5810_s19 + $0x3c0] sm:$0xff] }
 0x11c   : > { %2633 = vmatprep.subr.bf16.mxu1 %v5058_v63  ;;  %v5077_v62 = vld [vmem:[%s5817_s18 + $0x520] ss:$16 sps:$4 sm:$0xff]   ;;  %v6180_v2 = vpack.c.bf16 %v666_v53, %v658_v50  ;;  %v5097_v50 = vld [vmem:[%s5817_s18 + $0xcc] ss:$16 sps:$4 sm:$0xff]  }
 0x11d   : > { %2357 = vmatmul.mubr.bf16.gmra.mxu0 %v6124_v6  ;;  %v5080_v63 = vld [vmem:[%s5817_s18 + $0x720] ss:$16 sps:$4 sm:$0xff]   ;;  %v5100_v53 = vld [vmem:[%s5817_s18 + $0x2cc] ss:$16 sps:$4 sm:$0xff]  }
 0x11e   : > { %2470 = vmatmul.mubr.bf16.gmra.mxu1 %v6126_v7  ;;  %2521 = vmatpush2.bf16.msra.mxu0 %v5053_v0  ;;  %v551_v0 = vld [vmem:[%s5810_s19 + $0x28] sm:$0xff] }
 0x11f   : > { %2634 = vmatpush2.bf16.msra.mxu1 %v5056_v1  ;;  %2522 = vmatprep.subr.bf16.mxu0 %v5061_v10  ;;  %v559_v1 = vld [vmem:[%s5810_s19 + $0x68] sm:$0xff]  ;;  %v5085_v10 = vld [vmem:[%s5817_s18 + $0x504] ss:$16 sps:$4 sm:$0xff]  }
 0x120   : > { %2635 = vmatprep.subr.bf16.mxu1 %v5064_v11  ;;  %2366 = vmatprep.mubr.bf16.mxu0 %v6133_v13  ;;  %v5088_v11 = vld [vmem:[%s5817_s18 + $0x704] ss:$16 sps:$4 sm:$0xff]  }
 0x121   : > { %2479 = vmatprep.mubr.bf16.mxu1 %v6135_v14 }
 0x122   : > { %2523 = vmatpush2.bf16.msra.mxu0 %v5059_v12  ;;  %v5083_v12 = vld [vmem:[%s5817_s18 + $0x500] ss:$16 sps:$4 sm:$0xff]  }
 0x123   : > { %2636 = vmatpush2.bf16.msra.mxu1 %v5062_v15  ;;  %2524 = vmatprep.subr.bf16.mxu0 %v5067_v24  ;;  %v6189_v15 = vpack.c.bf16 %v559_v1, %v551_v0  ;;  %v552_v24 = vld [vmem:[%s5810_s19 + $0x30] sm:$0xff] }
 0x124   : > { %2637 = vmatprep.subr.bf16.mxu1 %v5070_v29  ;;  %v560_v29 = vld [vmem:[%s5810_s19 + $0x70] sm:$0xff] }
 0x125   : > { %2367 = vmatmul.mubr.bf16.gmra.mxu0 %v6152_v34  ;;  %v568_v0 = vld [vmem:[%s5810_s19 + $0xb0] sm:$0xff] }
 0x126   : > { %2480 = vmatmul.mubr.bf16.gmra.mxu1 %v6154_v35  ;;  %2525 = vmatpush2.bf16.msra.mxu0 %v5065_v30  ;;  %v5091_v30 = vld [vmem:[%s5817_s18 + $0xec] ss:$16 sps:$4 sm:$0xff]   ;;  %v576_v1 = vld [vmem:[%s5810_s19 + $0xf0] sm:$0xff] }
 0x127   : > { %2638 = vmatpush2.bf16.msra.mxu1 %v5068_v31  ;;  %2526 = vmatprep.subr.bf16.mxu0 %v5073_v40  ;;  %v5094_v31 = vld [vmem:[%s5817_s18 + $0x2ec] ss:$16 sps:$4 sm:$0xff]   ;;  %v6208_v40 = vpack.c.bf16 %v558_v23, %v550_v22  ;;  %v6238_v23 = vpack.c.bf16 %v576_v1, %v568_v0 }
 0x128   : > { %2639 = vmatprep.subr.bf16.mxu1 %v5076_v41  ;;  %2376 = vmatprep.mubr.bf16.mxu0 %v6161_v47  ;;  %v6210_v41 = vpack.c.bf16 %v560_v29, %v552_v24  ;;  %v585_v24 = vld [vmem:[%s5810_s19 + $0x138] sm:$0xff]  ;;  %v599_v0 = vld [vmem:[%s5810_s19 + $0x1a8] sm:$0xff] }
 0x129   : > { %2489 = vmatprep.mubr.bf16.mxu1 %v6163_v48  ;;  %v593_v29 = vld [vmem:[%s5810_s19 + $0x178] sm:$0xff]  ;;  %v607_v1 = vld [vmem:[%s5810_s19 + $0x1e8] sm:$0xff] }
 0x12a   : > { %2527 = vmatpush2.bf16.msra.mxu0 %v5071_v44  ;;  %v569_v44 = vld [vmem:[%s5810_s19 + $0xb8] sm:$0xff]  ;;  %v6247_v36 = vpack.c.bf16 %v593_v29, %v585_v24  ;;  %v6273_v29 = vpack.c.bf16 %v607_v1, %v599_v0  ;;  %v615_v0 = vld [vmem:[%s5810_s19 + $0x228] sm:$0xff] }
 0x12b   : > { %2640 = vmatpush2.bf16.msra.mxu1 %v5074_v49  ;;  %2528 = vmatprep.subr.bf16.mxu0 %v5079_v58  ;;  %v577_v49 = vld [vmem:[%s5810_s19 + $0xf8] sm:$0xff] }
 0x12c   : > { %2641 = vmatprep.subr.bf16.mxu1 %v5082_v59  ;;  %v6219_v58 = vpack.c.bf16 %v577_v49, %v569_v44  ;;  %v5098_v59 = vld [vmem:[%s5817_s18 + $0x2c8] ss:$16 sps:$4 sm:$0xff]   ;;  %v582_v44 = vld [vmem:[%s5810_s19 + $0x120] sm:$0xff]  ;;  %7195 = vst [vmem:[#allocation23_spill] sm:$0xff] %v6273_v29 }
 0x12d   : > { %2377 = vmatmul.mubr.bf16.gmra.mxu0 %v6180_v2  ;;  %v590_v49 = vld [vmem:[%s5810_s19 + $0x160] sm:$0xff]  ;;  %v5119_v24 = vld [vmem:[%s5817_s18 + $0x48] ss:$16 sps:$4 sm:$0xff]  }
 0x12e   : > { %2490 = vmatmul.mubr.bf16.gmra.mxu1 %v6182_v5  ;;  %2529 = vmatpush2.bf16.msra.mxu0 %v5077_v62  ;;  %v566_v62 = vld [vmem:[%s5810_s19 + $0xa0] sm:$0xff] }
 0x12f   : > { %2642 = vmatpush2.bf16.msra.mxu1 %v5080_v63  ;;  %2530 = vmatprep.subr.bf16.mxu0 %v5085_v10  ;;  %v574_v63 = vld [vmem:[%s5810_s19 + $0xe0] sm:$0xff]  ;;  %v5101_v10 = vld [vmem:[%s5817_s18 + $0xa8] ss:$16 sps:$4 sm:$0xff]  }
 0x130   : > { %2643 = vmatprep.subr.bf16.mxu1 %v5088_v11  ;;  %2532 = vmatprep.mubr.bf16.mxu0 %v6189_v15  ;;  %v5104_v11 = vld [vmem:[%s5817_s18 + $0x2a8] ss:$16 sps:$4 sm:$0xff]   ;;  %v6236_v22 = vpack.c.bf16 %v574_v63, %v566_v62 }
 0x131   : > { %2645 = vmatprep.mubr.bf16.mxu1 %v6191_v20  ;;  %v5113_v62 = vld [vmem:[%s5817_s18 + $0x68] ss:$16 sps:$4 sm:$0xff]  }
 0x132   : > { %2531 = vmatpush2.bf16.msra.mxu0 %v5083_v12  ;;  %v583_v12 = vld [vmem:[%s5810_s19 + $0x128] sm:$0xff] }
 0x133   : > { %2644 = vmatpush2.bf16.msra.mxu1 %v5086_v21  ;;  %2726 = vmatprep.subr.bf16.mxu0 %v5091_v30  ;;  %v591_v21 = vld [vmem:[%s5810_s19 + $0x168] sm:$0xff] }
 0x134   : > { %2839 = vmatprep.subr.bf16.mxu1 %v5094_v31  ;;  %v5109_v30 = vld [vmem:[%s5817_s18 + $0x8c] ss:$16 sps:$4 sm:$0xff]   ;;  %v5116_v63 = vld [vmem:[%s5817_s18 + $0x268] ss:$16 sps:$4 sm:$0xff]  }
 0x135   : > { %2533 = vmatmul.mubr.bf16.vlgmr.msra.gmra.mxu0 %v6208_v40  ;;  %v5112_v31 = vld [vmem:[%s5817_s18 + $0x28c] ss:$16 sps:$4 sm:$0xff]  }
 0x136   : > { %2646 = vmatmul.mubr.bf16.vlgmr.msra.gmra.mxu1 %v6210_v41  ;;  %2727 = vmatpush1.bf16.msra.mxu0 %v5089_v32  ;;  %v5107_v32 = vld [vmem:[%s5817_s18 + $0x88] ss:$16 sps:$4 sm:$0xff]  }
 0x137   : > { %2840 = vmatpush1.bf16.msra.mxu1 %v5092_v33  ;;  %2728 = vmatprep.subr.bf16.mxu0 %v5097_v50  ;;  %v6245_v33 = vpack.c.bf16 %v591_v21, %v583_v12  ;;  %v584_v50 = vld [vmem:[%s5810_s19 + $0x130] sm:$0xff]  ;;  %v5121_v12 = vld [vmem:[%s5817_s18 + $0x4c] ss:$16 sps:$4 sm:$0xff]  }
 0x138   : > { %2841 = vmatprep.subr.bf16.mxu1 %v5100_v53  ;;  %2542 = vmatprep.mubr.bf16.mxu0 %v6217_v57  ;;  %v592_v53 = vld [vmem:[%s5810_s19 + $0x170] sm:$0xff]  ;;  %v5124_v21 = vld [vmem:[%s5817_s18 + $0x24c] ss:$16 sps:$4 sm:$0xff]  }
 0x139   : > { %2655 = vmatprep.mubr.bf16.mxu1 %v6219_v58 }
 0x13a   : > { %2729 = vmatpush1.bf16.msra.mxu0 %v5095_v54  ;;  %v5115_v54 = vld [vmem:[%s5817_s18 + $0x6c] ss:$16 sps:$4 sm:$0xff]  }
 0x13b   : > { %2842 = vmatpush1.bf16.msra.mxu1 %v5098_v59  ;;  %2730 = vmatprep.subr.bf16.mxu0 %v5103_v8  ;;  %v5118_v59 = vld [vmem:[%s5817_s18 + $0x26c] ss:$16 sps:$4 sm:$0xff]   ;;  %v6264_v8 = vpack.c.bf16 %v590_v49, %v582_v44  ;;  %v600_v44 = vld [vmem:[%s5810_s19 + $0x1b0] sm:$0xff] }
 0x13c   : > { %2843 = vmatprep.subr.bf16.mxu1 %v5106_v9  ;;  %v6266_v9 = vpack.c.bf16 %v592_v53, %v584_v50  ;;  %v608_v49 = vld [vmem:[%s5810_s19 + $0x1f0] sm:$0xff]  ;;  %v5127_v50 = vld [vmem:[%s5817_s18 + $0x2c] ss:$16 sps:$4 sm:$0xff]  }
 0x13d   : > { %2543 = vmatmul.mubr.bf16.gmra.mxu0 %v6236_v22  ;;  %v5130_v53 = vld [vmem:[%s5817_s18 + $0x22c] ss:$16 sps:$4 sm:$0xff]   ;;  %v6294_v1 = vpack.c.bf16 %v608_v49, %v600_v44  ;;  %v616_v44 = vld [vmem:[%s5810_s19 + $0x230] sm:$0xff] }
 0x13e   : > { %2656 = vmatmul.mubr.bf16.gmra.mxu1 %v6238_v23  ;;  %2731 = vmatpush1.bf16.msra.mxu0 %v5101_v10  ;;  %7194 = vst [vmem:[#allocation22_spill] sm:$0xff] %v6266_v9  ;;  %v601_v10 = vld [vmem:[%s5810_s19 + $0x1b8] sm:$0xff]  ;;  %v624_v49 = vld [vmem:[%s5810_s19 + $0x270] sm:$0xff] }
 0x13f   : > { %2844 = vmatpush1.bf16.msra.mxu1 %v5104_v11  ;;  %2732 = vmatprep.subr.bf16.mxu0 %v5109_v30  ;;  %v609_v11 = vld [vmem:[%s5810_s19 + $0x1f8] sm:$0xff]  ;;  %7198 = vst [vmem:[#allocation26_spill] sm:$0xff] %v6294_v1 }
 0x140   : > { %2845 = vmatprep.subr.bf16.mxu1 %v5112_v31  ;;  %2552 = vmatprep.mubr.bf16.mxu0 %v6245_v33  ;;  %v6275_v30 = vpack.c.bf16 %v609_v11, %v601_v10  ;;  %v5122_v31 = vld [vmem:[%s5817_s18 + $0x248] ss:$16 sps:$4 sm:$0xff]  }
 0x141   : > { %2665 = vmatprep.mubr.bf16.mxu1 %v6247_v36  ;;  %v617_v10 = vld [vmem:[%s5810_s19 + $0x238] sm:$0xff] }
 0x142   : > { %2733 = vmatpush1.bf16.msra.mxu0 %v5107_v32  ;;  %7196 = vst [vmem:[#allocation24_spill] sm:$0xff] %v6275_v30  ;;  %v598_v32 = vld [vmem:[%s5810_s19 + $0x1a0] sm:$0xff]  ;;  %v625_v11 = vld [vmem:[%s5810_s19 + $0x278] sm:$0xff] }
 0x143   : > { %2846 = vmatpush1.bf16.msra.mxu1 %v5110_v37  ;;  %2734 = vmatprep.subr.bf16.mxu0 %v5115_v54  ;;  %v606_v37 = vld [vmem:[%s5810_s19 + $0x1e0] sm:$0xff]  ;;  %v5125_v54 = vld [vmem:[%s5817_s18 + $0x28] ss:$16 sps:$4 sm:$0xff]  }
 0x144   : > { %2847 = vmatprep.subr.bf16.mxu1 %v5118_v59  ;;  %v5128_v59 = vld [vmem:[%s5817_s18 + $0x228] ss:$16 sps:$4 sm:$0xff]  }
 0x145   : > { %2553 = vmatmul.mubr.bf16.gmra.mxu0 %v6264_v8 }
 0x146   : > { %2666 = vmatmul.mubr.bf16.gmra.mxu1 %v6266_v9  ;;  %2735 = vmatpush1.bf16.msra.mxu0 %v5113_v62  ;;  %v623_v62 = vld [vmem:[%s5810_s19 + $0x268] sm:$0xff] }
 0x147   : > { %2848 = vmatpush1.bf16.msra.mxu1 %v5116_v63  ;;  %2736 = vmatprep.subr.bf16.mxu0 %v5121_v12  ;;  %v6292_v63 = vpack.c.bf16 %v606_v37, %v598_v32  ;;  %v5133_v12 = vld [vmem:[%s5817_s18 + $0xc] ss:$16 sps:$4 sm:$0xff]   ;;  %v6303_v32 = vpack.c.bf16 %v625_v11, %v617_v10  ;;  %v622_v37 = vld [vmem:[%s5810_s19 + $0x260] sm:$0xff]  ;;  %v6322_v11 = vpack.c.bf16 %v624_v49, %v616_v44  ;;  %v632_v44 = vld [vmem:[%s5810_s19 + $0x2b0] sm:$0xff] }
 0x148   : > { %2849 = vmatprep.subr.bf16.mxu1 %v5124_v21  ;;  %2562 = vmatprep.mubr.bf16.mxu0 %v6273_v29  ;;  %v5136_v21 = vld [vmem:[%s5817_s18 + $0x20c] ss:$16 sps:$4 sm:$0xff]   ;;  %v6301_v29 = vpack.c.bf16 %v623_v62, %v615_v0  ;;  %v5137_v0 = vld [vmem:[%s5817_s18 + $0x1e8] ss:$16 sps:$4 sm:$0xff]   ;;  %v640_v49 = vld [vmem:[%s5810_s19 + $0x2f0] sm:$0xff] }
 0x149   : > { %2675 = vmatprep.mubr.bf16.mxu1 %v6275_v30  ;;  %7197 = vst [vmem:[#allocation25_spill] sm:$0xff] %v6292_v63  ;;  %v5131_v30 = vld [vmem:[%s5817_s18 + $0x8] ss:$16 sps:$4 sm:$0xff]   ;;  %7200 = vst [vmem:[#allocation28_spill] sm:$0xff] %v6303_v32 }
 0x14a   : > { %2737 = vmatpush1.bf16.msra.mxu0 %v5119_v24  ;;  %7199 = vst [vmem:[#allocation27_spill] sm:$0xff] %v6301_v29  ;;  %v5134_v24 = vld [vmem:[%s5817_s18 + $0x208] ss:$16 sps:$4 sm:$0xff]   ;;  %7202 = vst [vmem:[#allocation30_spill] sm:$0xff] %v6322_v11 }
 0x14b   : > { %2850 = vmatpush1.bf16.msra.mxu1 %v5122_v31  ;;  %2738 = vmatprep.subr.bf16.mxu0 %v5127_v50  ;;  %v614_v31 = vld [vmem:[%s5810_s19 + $0x220] sm:$0xff]  ;;  %v5139_v50 = vld [vmem:[%s5817_s18 + $0x1ec] ss:$16 sps:$4 sm:$0xff]   ;;  %v5140_v62 = vld [vmem:[%s5817_s18 + $0x3e8] ss:$16 sps:$4 sm:$0xff]  }
 0x14c   : > { %2851 = vmatprep.subr.bf16.mxu1 %v5130_v53  ;;  %v5142_v53 = vld [vmem:[%s5817_s18 + $0x3ec] ss:$16 sps:$4 sm:$0xff]  }
 0x14d   : > { %2563 = vmatmul.mubr.bf16.gmra.mxu0 %v6292_v63  ;;  %v631_v10 = vld [vmem:[%s5810_s19 + $0x2a8] sm:$0xff] }
 0x14e   : > { %2676 = vmatmul.mubr.bf16.gmra.mxu1 %v6294_v1  ;;  %2739 = vmatpush1.bf16.msra.mxu0 %v5125_v54  ;;  %v639_v54 = vld [vmem:[%s5810_s19 + $0x2e8] sm:$0xff] }
 0x14f   : > { %2852 = vmatpush1.bf16.msra.mxu1 %v5128_v59  ;;  %2740 = vmatprep.subr.bf16.mxu0 %v5133_v12  ;;  %v6320_v59 = vpack.c.bf16 %v622_v37, %v614_v31  ;;  %v633_v12 = vld [vmem:[%s5810_s19 + $0x2b8] sm:$0xff]  ;;  %v6329_v63 = vpack.c.bf16 %v639_v54, %v631_v10  ;;  %v638_v37 = vld [vmem:[%s5810_s19 + $0x2e0] sm:$0xff] }
 0x150   : > { %2853 = vmatprep.subr.bf16.mxu1 %v5136_v21  ;;  %2572 = vmatprep.mubr.bf16.mxu0 %v6301_v29  ;;  %v641_v21 = vld [vmem:[%s5810_s19 + $0x2f8] sm:$0xff] }
 0x151   : > { %2685 = vmatprep.mubr.bf16.mxu1 %v6303_v32  ;;  %7201 = vst [vmem:[#allocation29_spill] sm:$0xff] %v6320_v59  ;;  %v5145_v29 = vld [vmem:[%s5817_s18 + $0x1cc] ss:$16 sps:$4 sm:$0xff]   ;;  %v5143_v1 = vld [vmem:[%s5817_s18 + $0x1c8] ss:$16 sps:$4 sm:$0xff]   ;;  %7203 = vst [vmem:[#allocation31_spill] sm:$0xff] %v6329_v63  ;;  %v6331_v31 = vpack.c.bf16 %v641_v21, %v633_v12  ;;  %v6350_v21 = vpack.c.bf16 %v640_v49, %v632_v44 }
 0x152   : > { %2741 = vmatpush1.bf16.msra.mxu0 %v5131_v30  ;;  %v5148_v32 = vld [vmem:[%s5817_s18 + $0x3cc] ss:$16 sps:$4 sm:$0xff]   ;;  %v5146_v30 = vld [vmem:[%s5817_s18 + $0x3c8] ss:$16 sps:$4 sm:$0xff]   ;;  %v654_v44 = vld [vmem:[%s5810_s19 + $0x360] sm:$0xff] }
 0x153   : > { %2854 = vmatpush1.bf16.msra.mxu1 %v5134_v24  ;;  %2742 = vmatprep.subr.bf16.mxu0 %v5139_v50  ;;  %7204 = vst [vmem:[#allocation32_spill] sm:$0xff] %v6331_v31  ;;  %v630_v24 = vld [vmem:[%s5810_s19 + $0x2a0] sm:$0xff]  ;;  %v5151_v50 = vld [vmem:[%s5817_s18 + $0x1ac] ss:$16 sps:$4 sm:$0xff]   ;;  %v5149_v10 = vld [vmem:[%s5817_s18 + $0x1a8] ss:$16 sps:$4 sm:$0xff]  }
 0x154   : > { %2855 = vmatprep.subr.bf16.mxu1 %v5142_v53  ;;  %v5154_v53 = vld [vmem:[%s5817_s18 + $0x3ac] ss:$16 sps:$4 sm:$0xff]   ;;  %v5152_v54 = vld [vmem:[%s5817_s18 + $0x3a8] ss:$16 sps:$4 sm:$0xff]   ;;  %v6348_v12 = vpack.c.bf16 %v638_v37, %v630_v24  ;;  %7206 = vst [vmem:[#allocation34_spill] sm:$0xff] %v6350_v21  ;;  %v646_v37 = vld [vmem:[%s5810_s19 + $0x320] sm:$0xff] }
 0x155   : > { %2573 = vmatmul.mubr.bf16.gmra.mxu0 %v6320_v59  ;;  %v5158_v59 = vld [vmem:[%s5817_s18 + $0x388] ss:$16 sps:$4 sm:$0xff]   ;;  %v5163_v49 = vld [vmem:[%s5817_s18 + $0x16c] ss:$16 sps:$4 sm:$0xff]  }
 0x156   : > { %2686 = vmatmul.mubr.bf16.gmra.mxu1 %v6322_v11  ;;  %2743 = vmatpush2.bf16.msra.mxu0 %v5137_v0  ;;  %v647_v0 = vld [vmem:[%s5810_s19 + $0x328] sm:$0xff]  ;;  %7205 = vst [vmem:[#allocation33_spill] sm:$0xff] %v6348_v12 }
 0x157   : > { %2856 = vmatpush2.bf16.msra.mxu1 %v5140_v62  ;;  %2744 = vmatprep.subr.bf16.mxu0 %v5145_v29  ;;  %v655_v62 = vld [vmem:[%s5810_s19 + $0x368] sm:$0xff]  ;;  %v649_v29 = vld [vmem:[%s5810_s19 + $0x338] sm:$0xff] }
 0x158   : > { %2857 = vmatprep.subr.bf16.mxu1 %v5148_v32  ;;  %2582 = vmatprep.mubr.bf16.mxu0 %v6329_v63  ;;  %v657_v32 = vld [vmem:[%s5810_s19 + $0x378] sm:$0xff]  ;;  %v6358_v9 = vpack.c.bf16 %v655_v62, %v647_v0  ;;  %v663_v62 = vld [vmem:[%s5810_s19 + $0x3a8] sm:$0xff] }
 0x159   : > { %2695 = vmatprep.mubr.bf16.mxu1 %v6331_v31  ;;  %v5157_v63 = vld [vmem:[%s5817_s18 + $0x18c] ss:$16 sps:$4 sm:$0xff]   ;;  %v5155_v11 = vld [vmem:[%s5817_s18 + $0x188] ss:$16 sps:$4 sm:$0xff]   ;;  %v6360_v24 = vpack.c.bf16 %v657_v32, %v649_v29 }
 0x15a   : > { %2745 = vmatpush2.bf16.msra.mxu0 %v5143_v1  ;;  %v5160_v31 = vld [vmem:[%s5817_s18 + $0x38c] ss:$16 sps:$4 sm:$0xff]   ;;  %7207 = vst [vmem:[#allocation35_spill] sm:$0xff] %v6358_v9  ;;  %v648_v1 = vld [vmem:[%s5810_s19 + $0x330] sm:$0xff]  ;;  %v5164_v0 = vld [vmem:[%s5817_s18 + $0x368] ss:$16 sps:$4 sm:$0xff]  }
 0x15b   : > { %2858 = vmatpush2.bf16.msra.mxu1 %v5146_v30  ;;  %2746 = vmatprep.subr.bf16.mxu0 %v5151_v50  ;;  %7208 = vst [vmem:[#allocation36_spill] sm:$0xff] %v6360_v24  ;;  %v656_v30 = vld [vmem:[%s5810_s19 + $0x370] sm:$0xff]  ;;  %v5166_v50 = vld [vmem:[%s5817_s18 + $0x36c] ss:$16 sps:$4 sm:$0xff]  }
 0x15c   : > { %2859 = vmatprep.subr.bf16.mxu1 %v5154_v53  ;;  %v5161_v53 = vld [vmem:[%s5817_s18 + $0x168] ss:$16 sps:$4 sm:$0xff]   ;;  %v5169_v32 = vld [vmem:[%s5817_s18 + $0x14c] ss:$16 sps:$4 sm:$0xff]  }
 0x15d   : > { %2583 = vmatmul.mubr.bf16.gmra.mxu0 %v6348_v12  ;;  %v671_v29 = vld [vmem:[%s5810_s19 + $0x3e8] sm:$0xff] }
 0x15e   : > { %2696 = vmatmul.mubr.bf16.gmra.mxu1 %v6350_v21  ;;  %2747 = vmatpush2.bf16.msra.mxu0 %v5149_v10  ;;  %v6376_v10 = vpack.c.bf16 %v654_v44, %v646_v37  ;;  %v5170_v21 = vld [vmem:[%s5817_s18 + $0x348] ss:$16 sps:$4 sm:$0xff]   ;;  %v6386_v12 = vpack.c.bf16 %v671_v29, %v663_v62  ;;  %v662_v44 = vld [vmem:[%s5810_s19 + $0x3a0] sm:$0xff] }
 0x15f   : > { %2860 = vmatpush2.bf16.msra.mxu1 %v5152_v54  ;;  %2748 = vmatprep.subr.bf16.mxu0 %v5157_v63  ;;  %v6378_v54 = vpack.c.bf16 %v656_v30, %v648_v1  ;;  %v665_v63 = vld [vmem:[%s5810_s19 + $0x3b8] sm:$0xff]  ;;  %v670_v1 = vld [vmem:[%s5810_s19 + $0x3e0] sm:$0xff] }
 0x160   : > { %2861 = vmatprep.subr.bf16.mxu1 %v5160_v31  ;;  %2592 = vmatprep.mubr.bf16.mxu0 %v6358_v9  ;;  %v673_v31 = vld [vmem:[%s5810_s19 + $0x3f8] sm:$0xff] }
 0x161   : > { %2705 = vmatprep.mubr.bf16.mxu1 %v6360_v24  ;;  %v5172_v24 = vld [vmem:[%s5817_s18 + $0x34c] ss:$16 sps:$4 sm:$0xff]   ;;  %v5167_v9 = vld [vmem:[%s5817_s18 + $0x148] ss:$16 sps:$4 sm:$0xff]   ;;  %v6388_v37 = vpack.c.bf16 %v673_v31, %v665_v63 }
 0x162   : > { %2749 = vmatpush2.bf16.msra.mxu0 %v5155_v11  ;;  %v672_v11 = vld [vmem:[%s5810_s19 + $0x3f0] sm:$0xff]  ;;  %v5175_v30 = vld [vmem:[%s5817_s18 + $0x12c] ss:$16 sps:$4 sm:$0xff]   ;;  %v5173_v29 = vld [vmem:[%s5817_s18 + $0x128] ss:$16 sps:$4 sm:$0xff]  }
 0x163   : > { %2862 = vmatpush2.bf16.msra.mxu1 %v5158_v59  ;;  %2750 = vmatprep.subr.bf16.mxu0 %v5163_v49  ;;  %v664_v59 = vld [vmem:[%s5810_s19 + $0x3b0] sm:$0xff]  ;;  %v5178_v49 = vld [vmem:[%s5817_s18 + $0x32c] ss:$16 sps:$4 sm:$0xff]   ;;  %v5176_v63 = vld [vmem:[%s5817_s18 + $0x328] ss:$16 sps:$4 sm:$0xff]  }
 0x164   : > { %2863 = vmatprep.subr.bf16.mxu1 %v5166_v50  ;;  %v6400_v50 = vpack.c.bf16 %v670_v1, %v662_v44  ;;  %v6402_v62 = vpack.c.bf16 %v672_v11, %v664_v59  ;;  %v5182_v31 = vld [vmem:[%s5817_s18 + $0x308] ss:$16 sps:$4 sm:$0xff]   ;;  %v5193_v1 = vld [vmem:[%s5817_s18 + $0x4cc] ss:$16 sps:$4 sm:$0xff]  }
 0x165   : > { %2593 = vmatmul.mubr.bf16.gmra.mxu0 %v6376_v10  ;;  %v5188_v44 = vld [vmem:[%s5817_s18 + $0x6e8] ss:$16 sps:$4 sm:$0xff]   ;;  %v5196_v59 = vld [vmem:[%s5817_s18 + $0x6cc] ss:$16 sps:$4 sm:$0xff]  }
 0x166   : > { %2706 = vmatmul.mubr.bf16.gmra.mxu1 %v6378_v54  ;;  %2751 = vmatpush2.bf16.msra.mxu0 %v5161_v53  ;;  %v5181_v53 = vld [vmem:[%s5817_s18 + $0x10c] ss:$16 sps:$4 sm:$0xff]   ;;  %v5194_v11 = vld [vmem:[%s5817_s18 + $0x6c8] ss:$16 sps:$4 sm:$0xff]  }
 0x167   : > { %2864 = vmatpush2.bf16.msra.mxu1 %v5164_v0  ;;  %2752 = vmatprep.subr.bf16.mxu0 %v5169_v32  ;;  %v5179_v0 = vld [vmem:[%s5817_s18 + $0x108] ss:$16 sps:$4 sm:$0xff]   ;;  %v5187_v32 = vld [vmem:[%s5817_s18 + $0x4ec] ss:$16 sps:$4 sm:$0xff]  }
 0x168   : > { %2865 = vmatprep.subr.bf16.mxu1 %v5172_v24  ;;  %2602 = vmatprep.mubr.bf16.mxu0 %v6386_v12  ;;  %v5184_v24 = vld [vmem:[%s5817_s18 + $0x30c] ss:$16 sps:$4 sm:$0xff]  }
 0x169   : > { %2715 = vmatprep.mubr.bf16.mxu1 %v6388_v37 }
 0x16a   : > { %2753 = vmatpush2.bf16.msra.mxu0 %v5167_v9  ;;  %v5190_v9 = vld [vmem:[%s5817_s18 + $0x6ec] ss:$16 sps:$4 sm:$0xff]  }
 0x16b   : > { %2866 = vmatpush2.bf16.msra.mxu1 %v5170_v21  ;;  %2754 = vmatprep.subr.bf16.mxu0 %v5175_v30  ;;  %v5185_v21 = vld [vmem:[%s5817_s18 + $0x4e8] ss:$16 sps:$4 sm:$0xff]   ;;  %v5202_v30 = vld [vmem:[%s5817_s18 + $0x6ac] ss:$16 sps:$4 sm:$0xff]  }
 0x16c   : > { %2867 = vmatprep.subr.bf16.mxu1 %v5178_v49  ;;  %v5200_v49 = vld [vmem:[%s5817_s18 + $0x6a8] ss:$16 sps:$4 sm:$0xff]  }
 0x16d   : > { %2603 = vmatmul.mubr.bf16.gmra.mxu0 %v6400_v50 }
 0x16e   : > { %2716 = vmatmul.mubr.bf16.gmra.mxu1 %v6402_v62  ;;  %2755 = vmatpush2.bf16.msra.mxu0 %v5173_v29  ;;  %v5208_v29 = vld [vmem:[%s5817_s18 + $0x68c] ss:$16 sps:$4 sm:$0xff]  }
 0x16f   : > { %2868 = vmatpush2.bf16.msra.mxu1 %v5176_v63  ;;  %2756 = vmatprep.subr.bf16.mxu0 %v5181_v53  ;;  %v5206_v63 = vld [vmem:[%s5817_s18 + $0x688] ss:$16 sps:$4 sm:$0xff]   ;;  %v5214_v53 = vld [vmem:[%s5817_s18 + $0x66c] ss:$16 sps:$4 sm:$0xff]  }
 0x170   : > { %2869 = vmatprep.subr.bf16.mxu1 %v5184_v24  ;;  %2758 = vmatprep.mubr.bf16.mxu0 %v5953_v55  ;;  %v5191_v55 = vld [vmem:[%s5817_s18 + $0x4c8] ss:$16 sps:$4 sm:$0xff]  }
 0x171   : > { %2871 = vmatprep.mubr.bf16.mxu1 %v5955_v56  ;;  %v5199_v56 = vld [vmem:[%s5817_s18 + $0x4ac] ss:$16 sps:$4 sm:$0xff]   ;;  %v5209_v24 = vld [vmem:[%s5817_s18 + $0x468] ss:$16 sps:$4 sm:$0xff]  }
 0x172   : > { %2757 = vmatpush2.bf16.msra.mxu0 %v5179_v0  ;;  %v5220_v0 = vld [vmem:[%s5817_s18 + $0x64c] ss:$16 sps:$4 sm:$0xff]  }
 0x173   : > { %2870 = vmatpush2.bf16.msra.mxu1 %v5182_v31  ;;  %2952 = vmatprep.subr.bf16.mxu0 %v5187_v32  ;;  %v5215_v31 = vld [vmem:[%s5817_s18 + $0x448] ss:$16 sps:$4 sm:$0xff]   ;;  %v5226_v32 = vld [vmem:[%s5817_s18 + $0x62c] ss:$16 sps:$4 sm:$0xff]  }
 0x174   : > { %3065 = vmatprep.subr.bf16.mxu1 %v5190_v9  ;;  %v5229_v9 = vld [vmem:[%s5817_s18 + $0x40c] ss:$16 sps:$4 sm:$0xff]  }
 0x175   : > { %2759 = vmatmul.mubr.bf16.vlgmr.msra.gmra.mxu0 %v5984_v18  ;;  %v5197_v18 = vld [vmem:[%s5817_s18 + $0x4a8] ss:$16 sps:$4 sm:$0xff]  }
 0x176   : > { %2872 = vmatmul.mubr.bf16.vlgmr.msra.gmra.mxu1 %v5986_v19  ;;  %2953 = vmatpush1.bf16.msra.mxu0 %v5185_v21  ;;  %v5205_v19 = vld [vmem:[%s5817_s18 + $0x48c] ss:$16 sps:$4 sm:$0xff]  }
 0x177   : > { %3066 = vmatpush1.bf16.msra.mxu1 %v5188_v44  ;;  %2954 = vmatprep.subr.bf16.mxu0 %v5193_v1  ;;  %v5232_v21 = vld [vmem:[%s5817_s18 + $0x60c] ss:$16 sps:$4 sm:$0xff]  }
 0x178   : > { %3067 = vmatprep.subr.bf16.mxu1 %v5196_v59  ;;  %2768 = vmatprep.mubr.bf16.mxu0 %v5993_v25  ;;  %v5203_v25 = vld [vmem:[%s5817_s18 + $0x488] ss:$16 sps:$4 sm:$0xff]   ;;  %v5235_v44 = vld [vmem:[%s5817_s18 + $0x5ec] ss:$16 sps:$4 sm:$0xff]  }
 0x179   : > { %2881 = vmatprep.mubr.bf16.mxu1 %v5995_v26  ;;  %v5211_v26 = vld [vmem:[%s5817_s18 + $0x46c] ss:$16 sps:$4 sm:$0xff]  }
 0x17a   : > { %2955 = vmatpush1.bf16.msra.mxu0 %v5191_v55  ;;  %v5238_v1 = vld [vmem:[%s5817_s18 + $0x7ec] ss:$16 sps:$4 sm:$0xff]  }
 0x17b   : > { %3068 = vmatpush1.bf16.msra.mxu1 %v5194_v11  ;;  %2956 = vmatprep.subr.bf16.mxu0 %v5199_v56  ;;  %v5241_v59 = vld [vmem:[%s5817_s18 + $0x5cc] ss:$16 sps:$4 sm:$0xff]  }
 0x17c   : > { %3069 = vmatprep.subr.bf16.mxu1 %v5202_v30  ;;  %v5244_v55 = vld [vmem:[%s5817_s18 + $0x7cc] ss:$16 sps:$4 sm:$0xff]  }
 0x17d   : > { %2769 = vmatmul.mubr.bf16.gmra.mxu0 %v6012_v38  ;;  %v5212_v38 = vld [vmem:[%s5817_s18 + $0x668] ss:$16 sps:$4 sm:$0xff]   ;;  %v5247_v11 = vld [vmem:[%s5817_s18 + $0x5ac] ss:$16 sps:$4 sm:$0xff]  }
 0x17e   : > { %2882 = vmatmul.mubr.bf16.gmra.mxu1 %v6014_v39  ;;  %2957 = vmatpush1.bf16.msra.mxu0 %v5197_v18  ;;  %v5217_v39 = vld [vmem:[%s5817_s18 + $0x44c] ss:$16 sps:$4 sm:$0xff]  }
 0x17f   : > { %3070 = vmatpush1.bf16.msra.mxu1 %v5200_v49  ;;  %2958 = vmatprep.subr.bf16.mxu0 %v5205_v19  ;;  %v5250_v56 = vld [vmem:[%s5817_s18 + $0x7ac] ss:$16 sps:$4 sm:$0xff]  }
 0x180   : > { %3071 = vmatprep.subr.bf16.mxu1 %v5208_v29  ;;  %2778 = vmatprep.mubr.bf16.mxu0 %v6021_v45  ;;  %v5218_v45 = vld [vmem:[%s5817_s18 + $0x648] ss:$16 sps:$4 sm:$0xff]   ;;  %v5253_v30 = vld [vmem:[%s5817_s18 + $0x58c] ss:$16 sps:$4 sm:$0xff]  }
 0x181   : > { %2891 = vmatprep.mubr.bf16.mxu1 %v6023_v46  ;;  %v5223_v46 = vld [vmem:[%s5817_s18 + $0x42c] ss:$16 sps:$4 sm:$0xff]  }
 0x182   : > { %2959 = vmatpush1.bf16.msra.mxu0 %v5203_v25  ;;  %v5256_v18 = vld [vmem:[%s5817_s18 + $0x78c] ss:$16 sps:$4 sm:$0xff]  }
 0x183   : > { %3072 = vmatpush1.bf16.msra.mxu1 %v5206_v63  ;;  %2960 = vmatprep.subr.bf16.mxu0 %v5211_v26  ;;  %v5259_v49 = vld [vmem:[%s5817_s18 + $0x56c] ss:$16 sps:$4 sm:$0xff]  }
 0x184   : > { %3073 = vmatprep.subr.bf16.mxu1 %v5214_v53  ;;  %v5262_v19 = vld [vmem:[%s5817_s18 + $0x76c] ss:$16 sps:$4 sm:$0xff]  }
 0x185   : > { %2779 = vmatmul.mubr.bf16.gmra.mxu0 %v6040_v60  ;;  %v5221_v60 = vld [vmem:[%s5817_s18 + $0x428] ss:$16 sps:$4 sm:$0xff]   ;;  %v5265_v29 = vld [vmem:[%s5817_s18 + $0x54c] ss:$16 sps:$4 sm:$0xff]  }
 0x186   : > { %2892 = vmatmul.mubr.bf16.gmra.mxu1 %v6042_v61  ;;  %2961 = vmatpush1.bf16.msra.mxu0 %v5209_v24  ;;  %v5224_v61 = vld [vmem:[%s5817_s18 + $0x628] ss:$16 sps:$4 sm:$0xff]   ;;  %v5268_v25 = vld [vmem:[%s5817_s18 + $0x74c] ss:$16 sps:$4 sm:$0xff]  }
 0x187   : > { %3074 = vmatpush1.bf16.msra.mxu1 %v5212_v38  ;;  %2962 = vmatprep.subr.bf16.mxu0 %v5217_v39  ;;  %v5271_v63 = vld [vmem:[%s5817_s18 + $0x52c] ss:$16 sps:$4 sm:$0xff]   ;;  %v5275_v38 = vld [vmem:[%s5817_s18 + $0x508] ss:$16 sps:$4 sm:$0xff]  }
 0x188   : > { %3075 = vmatprep.subr.bf16.mxu1 %v5220_v0  ;;  %2788 = vmatprep.mubr.bf16.mxu0 %v6049_v3  ;;  %v5227_v3 = vld [vmem:[%s5817_s18 + $0x408] ss:$16 sps:$4 sm:$0xff]   ;;  %v5274_v26 = vld [vmem:[%s5817_s18 + $0x72c] ss:$16 sps:$4 sm:$0xff]  }
 0x189   : > { %2901 = vmatprep.mubr.bf16.mxu1 %v6051_v4  ;;  %v5230_v4 = vld [vmem:[%s5817_s18 + $0x608] ss:$16 sps:$4 sm:$0xff]   ;;  %v5277_v53 = vld [vmem:[%s5817_s18 + $0x50c] ss:$16 sps:$4 sm:$0xff]  }
 0x18a   : > { %2963 = vmatpush1.bf16.msra.mxu0 %v5215_v31  ;;  %v5280_v24 = vld [vmem:[%s5817_s18 + $0x70c] ss:$16 sps:$4 sm:$0xff]   ;;  %v5278_v39 = vld [vmem:[%s5817_s18 + $0x708] ss:$16 sps:$4 sm:$0xff]  }
 0x18b   : > { %3076 = vmatpush1.bf16.msra.mxu1 %v5218_v45  ;;  %2964 = vmatprep.subr.bf16.mxu0 %v5223_v46 }
 0x18c   : > { %3077 = vmatprep.subr.bf16.mxu1 %v5226_v32 }
 0x18d   : > { %2789 = vmatmul.mubr.bf16.gmra.mxu0 %v6068_v16  ;;  %v5233_v16 = vld [vmem:[%s5817_s18 + $0x5e8] ss:$16 sps:$4 sm:$0xff]  }
 0x18e   : > { %2902 = vmatmul.mubr.bf16.gmra.mxu1 %v6070_v17  ;;  %2965 = vmatpush1.bf16.msra.mxu0 %v5221_v60  ;;  %v5236_v17 = vld [vmem:[%s5817_s18 + $0x7e8] ss:$16 sps:$4 sm:$0xff]  }
 0x18f   : > { %3078 = vmatpush1.bf16.msra.mxu1 %v5224_v61  ;;  %2966 = vmatprep.subr.bf16.mxu0 %v5229_v9 }
 0x190   : > { %3079 = vmatprep.subr.bf16.mxu1 %v5232_v21  ;;  %2798 = vmatprep.mubr.bf16.mxu0 %v6077_v27  ;;  %v5239_v27 = vld [vmem:[%s5817_s18 + $0x5c8] ss:$16 sps:$4 sm:$0xff]  }
 0x191   : > { %2911 = vmatprep.mubr.bf16.mxu1 %v6079_v28  ;;  %v5242_v28 = vld [vmem:[%s5817_s18 + $0x7c8] ss:$16 sps:$4 sm:$0xff]  }
 0x192   : > { %2967 = vmatpush1.bf16.msra.mxu0 %v5227_v3 }
 0x193   : > { %3080 = vmatpush1.bf16.msra.mxu1 %v5230_v4  ;;  %2968 = vmatprep.subr.bf16.mxu0 %v5235_v44 }
 0x194   : > { %3081 = vmatprep.subr.bf16.mxu1 %v5238_v1 }
 0x195   : > { %2799 = vmatmul.mubr.bf16.gmra.mxu0 %v6096_v42  ;;  %v5245_v42 = vld [vmem:[%s5817_s18 + $0x5a8] ss:$16 sps:$4 sm:$0xff]  }
 0x196   : > { %2912 = vmatmul.mubr.bf16.gmra.mxu1 %v6098_v43  ;;  %2969 = vmatpush2.bf16.msra.mxu0 %v5233_v16  ;;  %v5248_v43 = vld [vmem:[%s5817_s18 + $0x7a8] ss:$16 sps:$4 sm:$0xff]  }
 0x197   : > { %3082 = vmatpush2.bf16.msra.mxu1 %v5236_v17  ;;  %2970 = vmatprep.subr.bf16.mxu0 %v5241_v59  ;;  %v7212_v17 = vld [vmem:[#allocation25_spill] sm:$0xff]  ;;  %v7213_v59 = vld [vmem:[#allocation26_spill] sm:$0xff] }
 0x198   : > { %3083 = vmatprep.subr.bf16.mxu1 %v5244_v55  ;;  %2808 = vmatprep.mubr.bf16.mxu0 %v6105_v51  ;;  %v5251_v51 = vld [vmem:[%s5817_s18 + $0x588] ss:$16 sps:$4 sm:$0xff]  }
 0x199   : > { %2921 = vmatprep.mubr.bf16.mxu1 %v6107_v52  ;;  %v5254_v52 = vld [vmem:[%s5817_s18 + $0x788] ss:$16 sps:$4 sm:$0xff]  }
 0x19a   : > { %2971 = vmatpush2.bf16.msra.mxu0 %v5239_v27  ;;  %v7214_v55 = vld [vmem:[#allocation27_spill] sm:$0xff]  ;;  %v7215_v27 = vld [vmem:[#allocation28_spill] sm:$0xff] }
 0x19b   : > { %3084 = vmatpush2.bf16.msra.mxu1 %v5242_v28  ;;  %2972 = vmatprep.subr.bf16.mxu0 %v5247_v11 }
 0x19c   : > { %3085 = vmatprep.subr.bf16.mxu1 %v5250_v56 }
 0x19d   : > { %2809 = vmatmul.mubr.bf16.gmra.mxu0 %v6124_v6  ;;  %v5257_v6 = vld [vmem:[%s5817_s18 + $0x568] ss:$16 sps:$4 sm:$0xff]  }
 0x19e   : > { %2922 = vmatmul.mubr.bf16.gmra.mxu1 %v6126_v7  ;;  %2973 = vmatpush2.bf16.msra.mxu0 %v5245_v42  ;;  %v5260_v7 = vld [vmem:[%s5817_s18 + $0x768] ss:$16 sps:$4 sm:$0xff]  }
 0x19f   : > { %3086 = vmatpush2.bf16.msra.mxu1 %v5248_v43  ;;  %2974 = vmatprep.subr.bf16.mxu0 %v5253_v30 }
 0x1a0   : > { %3087 = vmatprep.subr.bf16.mxu1 %v5256_v18  ;;  %2818 = vmatprep.mubr.bf16.mxu0 %v6133_v13  ;;  %v5263_v13 = vld [vmem:[%s5817_s18 + $0x548] ss:$16 sps:$4 sm:$0xff]  }
 0x1a1   : > { %2931 = vmatprep.mubr.bf16.mxu1 %v6135_v14  ;;  %v5266_v14 = vld [vmem:[%s5817_s18 + $0x748] ss:$16 sps:$4 sm:$0xff]  }
 0x1a2   : > { %2975 = vmatpush2.bf16.msra.mxu0 %v5251_v51 }
 0x1a3   : > { %3088 = vmatpush2.bf16.msra.mxu1 %v5254_v52  ;;  %2976 = vmatprep.subr.bf16.mxu0 %v5259_v49  ;;  %v7216_v52 = vld [vmem:[#allocation29_spill] sm:$0xff]  ;;  %v7217_v49 = vld [vmem:[#allocation30_spill] sm:$0xff] }
 0x1a4   : > { %3089 = vmatprep.subr.bf16.mxu1 %v5262_v19  ;;  %v7218_v19 = vld [vmem:[#allocation31_spill] sm:$0xff] }
 0x1a5   : > { %2819 = vmatmul.mubr.bf16.gmra.mxu0 %v6152_v34  ;;  %v5269_v34 = vld [vmem:[%s5817_s18 + $0x528] ss:$16 sps:$4 sm:$0xff]  }
 0x1a6   : > { %2932 = vmatmul.mubr.bf16.gmra.mxu1 %v6154_v35  ;;  %2977 = vmatpush2.bf16.msra.mxu0 %v5257_v6  ;;  %v5272_v35 = vld [vmem:[%s5817_s18 + $0x728] ss:$16 sps:$4 sm:$0xff]  }
 0x1a7   : > { %3090 = vmatpush2.bf16.msra.mxu1 %v5260_v7  ;;  %2978 = vmatprep.subr.bf16.mxu0 %v5265_v29  ;;  %v7219_v6 = vld [vmem:[#allocation32_spill] sm:$0xff] }
 0x1a8   : > { %3091 = vmatprep.subr.bf16.mxu1 %v5268_v25  ;;  %2828 = vmatprep.mubr.bf16.mxu0 %v6161_v47 }
 0x1a9   : > { %2941 = vmatprep.mubr.bf16.mxu1 %v6163_v48 }
 0x1aa   : > { %2979 = vmatpush2.bf16.msra.mxu0 %v5263_v13 }
 0x1ab   : > { %3092 = vmatpush2.bf16.msra.mxu1 %v5266_v14  ;;  %2980 = vmatprep.subr.bf16.mxu0 %v5271_v63 }
 0x1ac   : > { %3093 = vmatprep.subr.bf16.mxu1 %v5274_v26 }
 0x1ad   : > { %2829 = vmatmul.mubr.bf16.gmra.mxu0 %v6180_v2 }
 0x1ae   : > { %2942 = vmatmul.mubr.bf16.gmra.mxu1 %v6182_v5  ;;  %2981 = vmatpush2.bf16.msra.mxu0 %v5269_v34 }
 0x1af   : > { %3094 = vmatpush2.bf16.msra.mxu1 %v5272_v35  ;;  %2982 = vmatprep.subr.bf16.mxu0 %v5277_v53  ;;  %v7220_v35 = vld [vmem:[#allocation33_spill] sm:$0xff]  ;;  %v7221_v53 = vld [vmem:[#allocation34_spill] sm:$0xff] }
 0x1b0   : > { %3095 = vmatprep.subr.bf16.mxu1 %v5280_v24  ;;  %2984 = vmatprep.mubr.bf16.mxu0 %v6189_v15  ;;  %v7222_v24 = vld [vmem:[#allocation35_spill] sm:$0xff] }
 0x1b1   : > { %3097 = vmatprep.mubr.bf16.mxu1 %v6191_v20 }
 0x1b2   : > { %2983 = vmatpush2.bf16.msra.mxu0 %v5275_v38  ;;  %v7223_v38 = vld [vmem:[#allocation36_spill] sm:$0xff] }
 0x1b3   : > { %3096 = vmatpush2.bf16.msra.mxu1 %v5278_v39 }
 0x1b5   : > { %v6510_v47 = vpop.f32.mrf.mxu0  ;;  %2985 = vmatmul.mubr.bf16.vlgmr.msra.gmra.mxu0 %v6208_v40 }
 0x1b6   : > { %v6512_v48 = vpop.f32.mrf.mxu1  ;;  %3098 = vmatmul.mubr.bf16.vlgmr.msra.gmra.mxu1 %v6210_v41  ;;  %2994 = vmatprep.mubr.bf16.mxu0 %v6217_v57 }
 0x1b7   : > { %3107 = vmatprep.mubr.bf16.mxu1 %v6219_v58  ;;  %v6518_v2 = vpop.f32.mrf.mxu0 }
 0x1b8   : > { %v6520_v5 = vpop.f32.mrf.mxu1 }
 0x1b9   : > { %v6522_v15 = vpop.f32.mrf.mxu0 }
 0x1ba   : > { %v6524_v20 = vpop.f32.mrf.mxu1 }
 0x1bb   : > { %v6526_v0 = vpop.f32.mrf.mxu0 }
 0x1bc   : > { %v6528_v31 = vpop.f32.mrf.mxu1 }
 0x1bd   : > { %v6530_v45 = vpop.f32.mrf.mxu0  ;;  %2995 = vmatmul.mubr.bf16.gmra.mxu0 %v6236_v22 }
 0x1be   : > { %v6532_v40 = vpop.f32.mrf.mxu1  ;;  %3108 = vmatmul.mubr.bf16.gmra.mxu1 %v6238_v23  ;;  %3004 = vmatprep.mubr.bf16.mxu0 %v6245_v33  ;;  %v7209_v23 = vld [vmem:[#allocation22_spill] sm:$0xff]  ;;  %v7210_v33 = vld [vmem:[#allocation23_spill] sm:$0xff] }
 0x1bf   : > { %3117 = vmatprep.mubr.bf16.mxu1 %v6247_v36  ;;  %v6538_v41 = vpop.f32.mrf.mxu0  ;;  %v7211_v36 = vld [vmem:[#allocation24_spill] sm:$0xff] }
 0x1c0   : > { %v6540_v57 = vpop.f32.mrf.mxu1 }
 0x1c1   : > { %v6542_v58 = vpop.f32.mrf.mxu0 }
 0x1c2   : > { %v6544_v46 = vpop.f32.mrf.mxu1 }
 0x1c3   : > { %v6546_v32 = vpop.f32.mrf.mxu0 }
 0x1c4   : > { %v6548_v60 = vpop.f32.mrf.mxu1 }
 0x1c5   : > { %v6550_v61 = vpop.f32.mrf.mxu0  ;;  %3005 = vmatmul.mubr.bf16.gmra.mxu0 %v6264_v8 }
 0x1c6   : > { %v6552_v22 = vpop.f32.mrf.mxu1  ;;  %3118 = vmatmul.mubr.bf16.gmra.mxu1 %v7209_v23  ;;  %3014 = vmatprep.mubr.bf16.mxu0 %v7210_v33 }
 0x1c7   : > { %3127 = vmatprep.mubr.bf16.mxu1 %v7211_v36  ;;  %v6558_v9 = vpop.f32.mrf.mxu0 }
 0x1c8   : > { %v6560_v21 = vpop.f32.mrf.mxu1 }
 0x1c9   : > { %v6562_v3 = vpop.f32.mrf.mxu0 }
 0x1ca   : > { %v6564_v4 = vpop.f32.mrf.mxu1 }
 0x1cb   : > { %v6566_v44 = vpop.f32.mrf.mxu0 }
 0x1cc   : > { %v6568_v1 = vpop.f32.mrf.mxu1 }
 0x1cd   : > { %v6570_v16 = vpop.f32.mrf.mxu0  ;;  %3015 = vmatmul.mubr.bf16.gmra.mxu0 %v7212_v17 }
 0x1ce   : > { %v6572_v8 = vpop.f32.mrf.mxu1  ;;  %3128 = vmatmul.mubr.bf16.gmra.mxu1 %v7213_v59  ;;  %3024 = vmatprep.mubr.bf16.mxu0 %v7214_v55 }
 0x1cf   : > { %3137 = vmatprep.mubr.bf16.mxu1 %v7215_v27  ;;  %v6578_v28 = vpop.f32.mrf.mxu0 }
 0x1d0   : > { %v6580_v11 = vpop.f32.mrf.mxu1 }
 0x1d1   : > { %v6582_v56 = vpop.f32.mrf.mxu0 }
 0x1d2   : > { %v6584_v42 = vpop.f32.mrf.mxu1 }
 0x1d3   : > { %v6586_v43 = vpop.f32.mrf.mxu0 }
 0x1d4   : > { %v6588_v30 = vpop.f32.mrf.mxu1 }
 0x1d5   : > { %v6590_v18 = vpop.f32.mrf.mxu0  ;;  %3025 = vmatmul.mubr.bf16.gmra.mxu0 %v7216_v52 }
 0x1d6   : > { %v6592_v51 = vpop.f32.mrf.mxu1  ;;  %3138 = vmatmul.mubr.bf16.gmra.mxu1 %v7217_v49  ;;  %3034 = vmatprep.mubr.bf16.mxu0 %v7218_v19 }
 0x1d7   : > { %3147 = vmatprep.mubr.bf16.mxu1 %v7219_v6  ;;  %v6598_v7 = vpop.f32.mrf.mxu0 }
 0x1d8   : > { %v6600_v29 = vpop.f32.mrf.mxu1 }
 0x1d9   : > { %v6602_v25 = vpop.f32.mrf.mxu0 }
 0x1da   : > { %v6604_v13 = vpop.f32.mrf.mxu1 }
 0x1db   : > { %v6606_v14 = vpop.f32.mrf.mxu0 }
 0x1dc   : > { %v6608_v63 = vpop.f32.mrf.mxu1 }
 0x1dd   : > { %v6610_v26 = vpop.f32.mrf.mxu0  ;;  %3035 = vmatmul.mubr.bf16.gmra.mxu0 %v7220_v35 }
 0x1de   : > { %v6612_v34 = vpop.f32.mrf.mxu1  ;;  %3148 = vmatmul.mubr.bf16.gmra.mxu1 %v7221_v53  ;;  %3044 = vmatprep.mubr.bf16.mxu0 %v7222_v24 }
 0x1df   : > { %3157 = vmatprep.mubr.bf16.mxu1 %v7223_v38  ;;  %v6618_v39 = vpop.f32.mrf.mxu0 }
 0x1e0   : > { %v6620_v23 = vpop.f32.mrf.mxu1 }
 0x1e1   : > { %v6622_v33 = vpop.f32.mrf.mxu0 }
 0x1e2   : > { %v6624_v36 = vpop.f32.mrf.mxu1 }
 0x1e3   : > { %v6626_v17 = vpop.f32.mrf.mxu0 }
 0x1e4   : > { %v6628_v59 = vpop.f32.mrf.mxu1 }
 0x1e5   : > { %7224 = vst [vmem:[#allocation22_spill] sm:$0xff] %v6628_v59  ;;  %v6630_v55 = vpop.f32.mrf.mxu0  ;;  %3045 = vmatmul.mubr.bf16.gmra.mxu0 %v6376_v10  ;;  %v486_v59 = vld [vmem:[#allocation2 + $0x50] sm:$0xff] }
 0x1e6   : > { %7225 = vst [vmem:[#allocation23_spill] sm:$0xff] %v6630_v55  ;;  %v6632_v27 = vpop.f32.mrf.mxu1  ;;  %3158 = vmatmul.mubr.bf16.gmra.mxu1 %v6378_v54  ;;  %3054 = vmatprep.mubr.bf16.mxu0 %v6386_v12 }
 0x1e7   : > { %7226 = vst [vmem:[#allocation24_spill] sm:$0xff] %v6632_v27  ;;  %3167 = vmatprep.mubr.bf16.mxu1 %v6388_v37  ;;  %v6638_v52 = vpop.f32.mrf.mxu0 }
 0x1e8   : > { %7227 = vst [vmem:[#allocation25_spill] sm:$0xff] %v6638_v52  ;;  %v6640_v49 = vpop.f32.mrf.mxu1 }
 0x1e9   : > { %7228 = vst [vmem:[#allocation26_spill] sm:$0xff] %v6640_v49  ;;  %v6642_v19 = vpop.f32.mrf.mxu0 }
 0x1ea   : > { %7229 = vst [vmem:[#allocation27_spill] sm:$0xff] %v6642_v19  ;;  %v6644_v6 = vpop.f32.mrf.mxu1 }
 0x1eb   : > { %7230 = vst [vmem:[#allocation28_spill] sm:$0xff] %v6644_v6  ;;  %v6646_v35 = vpop.f32.mrf.mxu0 }
 0x1ec   : > { %7231 = vst [vmem:[#allocation29_spill] sm:$0xff] %v6646_v35  ;;  %v6648_v53 = vpop.f32.mrf.mxu1 }
 0x1ed   : > { %7232 = vst [vmem:[#allocation30_spill] sm:$0xff] %v6648_v53  ;;  %v6650_v24 = vpop.f32.mrf.mxu0  ;;  %3055 = vmatmul.mubr.bf16.gmra.mxu0 %v6400_v50  ;;  %v2424_v50 = vadd.f32 %v6520_v5, %v6518_v2 }
 0x1ee   : > { %7233 = vst [vmem:[#allocation31_spill] sm:$0xff] %v6650_v24  ;;  %v6652_v10 = vpop.f32.mrf.mxu1  ;;  %3168 = vmatmul.mubr.bf16.gmra.mxu1 %v6402_v62  ;;  %v2422_v24 = vadd.f32 %v6512_v48, %v6510_v47  ;;  %v2428_v47 = vadd.f32 %v6528_v31, %v6526_v0 }
 0x1ef   : > { %7234 = vst [vmem:[#allocation32_spill] sm:$0xff] %v6652_v10  ;;  %v6656_v12 = vpop.f32.mrf.mxu0 }
 0x1f0   : > { %7235 = vst [vmem:[#allocation33_spill] sm:$0xff] %v6656_v12  ;;  %v6658_v54 = vpop.f32.mrf.mxu1  ;;  %v482_v12 = vld [vmem:[#allocation2 + $0xb0] sm:$0xff] }
 0x1f1   : > { %7236 = vst [vmem:[#allocation34_spill] sm:$0xff] %v6658_v54  ;;  %v6660_v37 = vpop.f32.mrf.mxu0 }
 0x1f2   : > { %7237 = vst [vmem:[#allocation35_spill] sm:$0xff] %v6660_v37  ;;  %v6662_v38 = vpop.f32.mrf.mxu1  ;;  %v2426_v37 = vadd.f32 %v6524_v20, %v6522_v15 }
 0x1f3   : > { %7238 = vst [vmem:[#allocation36_spill] sm:$0xff] %v6662_v38  ;;  %v6664_v6 = vpop.f32.mrf.mxu0 }
 0x1f4   : > { %7239 = vst [vmem:[#allocation37_spill] sm:$0xff] %v6664_v6  ;;  %v6666_v35 = vpop.f32.mrf.mxu1  ;;  %v483_v6 = vld [vmem:[#allocation2 + $0x1b0] sm:$0xff] }
 0x1f5   : > { %7240 = vst [vmem:[#allocation38_spill] sm:$0xff] %v6666_v35  ;;  %v2534_v10 = vpop.f32.mrf.mxu0 }
 0x1f6   : > { %v2647_v53 = vpop.f32.mrf.mxu1  ;;  %v2535_v62 = vadd.f32 %v2534_v10, %v2422_v24  ;;  %v2432_v24 = vadd.f32 %v6532_v40, %v6530_v45  ;;  %v2436_v45 = vadd.f32 %v6544_v46, %v6542_v58  ;;  %v2442_v58 = vadd.f32 %v6552_v22, %v6550_v61 }
 0x1f7   : > { %v2536_v19 = vpop.f32.mrf.mxu0  ;;  %v2446_v61 = vadd.f32 %v6564_v4, %v6562_v3  ;;  %v2452_v3 = vadd.f32 %v6572_v8, %v6570_v16  ;;  %v2456_v16 = vadd.f32 %v6584_v42, %v6582_v56  ;;  %v2462_v56 = vadd.f32 %v6592_v51, %v6590_v18 }
 0x1f8   : > { %v2649_v54 = vpop.f32.mrf.mxu1  ;;  %v2648_v38 = vadd.f32 %v2647_v53, %v2535_v62  ;;  %v2537_v49 = vadd.f32 %v2536_v19, %v2424_v50  ;;  %v487_v19 = vld [vmem:[#allocation2 + $0x168] sm:$0xff]  ;;  %v2434_v62 = vadd.f32 %v6540_v57, %v6538_v41  ;;  %v2438_v41 = vadd.f32 %v6548_v60, %v6546_v32 }
 0x1f9   : > { %v2538_v52 = vpop.f32.mrf.mxu0  ;;  %v2444_v32 = vadd.f32 %v6560_v21, %v6558_v9  ;;  %v2448_v9 = vadd.f32 %v6568_v1, %v6566_v44  ;;  %v2454_v44 = vadd.f32 %v6580_v11, %v6578_v28  ;;  %v2458_v28 = vadd.f32 %v6588_v30, %v6586_v43 }
 0x1fa   : > { %v2651_v35 = vpop.f32.mrf.mxu1  ;;  %v3178_v48 = vadd.f32 %v2648_v38, %v482_v12  ;;  %v2650_v27 = vadd.f32 %v2649_v54, %v2537_v49  ;;  %v2539_v55 = vadd.f32 %v2538_v52, %v2426_v37  ;;  %v490_v49 = vld [vmem:[#allocation2 + $0x180] sm:$0xff]  ;;  %v2464_v43 = vadd.f32 %v6600_v29, %v6598_v7 }
 0x1fb   : > { %v2540_v2 = vpop.f32.mrf.mxu0  ;;  %v2466_v18 = vadd.f32 %v6604_v13, %v6602_v25  ;;  %v2468_v7 = vadd.f32 %v6608_v63, %v6606_v14  ;;  %v2472_v25 = vadd.f32 %v6612_v34, %v6610_v26  ;;  %v2474_v14 = vadd.f32 %v6620_v23, %v6618_v39 }
 0x1fc   : > { %v2653_v5 = vpop.f32.mrf.mxu1  ;;  %3242 = vst [vmem:[#allocation2 + $0xb0] sm:$0xff] %v3178_v48  ;;  %v3179_v10 = vadd.f32 %v2650_v27, %v483_v6  ;;  %v2652_v15 = vadd.f32 %v2651_v35, %v2539_v55  ;;  %v2541_v20 = vadd.f32 %v2540_v2, %v2428_v47  ;;  %v491_v6 = vld [vmem:[#allocation2 + $0x110] sm:$0xff]  ;;  %v494_v47 = vld [vmem:[#allocation2 + $0x120] sm:$0xff]  ;;  %v2476_v26 = vadd.f32 %v6624_v36, %v6622_v33 }
 0x1fd   : > { %v2544_v53 = vpop.f32.mrf.mxu0 }
 0x1fe   : > { %v2657_v50 = vpop.f32.mrf.mxu1  ;;  %3243 = vst [vmem:[#allocation2 + $0x1b0] sm:$0xff] %v3179_v10  ;;  %v3182_v0 = vadd.f32 %v2652_v15, %v486_v59  ;;  %v2654_v31 = vadd.f32 %v2653_v5, %v2541_v20  ;;  %v2545_v52 = vadd.f32 %v2544_v53, %v2432_v24  ;;  %v495_v10 = vld [vmem:[#allocation2 + $0x150] sm:$0xff] }
 0x1ff   : > { %v2546_v12 = vpop.f32.mrf.mxu0 }
 0x200   : > { %v2659_v54 = vpop.f32.mrf.mxu1  ;;  %3246 = vst [vmem:[#allocation2 + $0x50] sm:$0xff] %v3182_v0  ;;  %v3183_v40 = vadd.f32 %v2654_v31, %v487_v19  ;;  %v2658_v55 = vadd.f32 %v2657_v50, %v2545_v52  ;;  %v2547_v27 = vadd.f32 %v2546_v12, %v2434_v62  ;;  %v498_v50 = vld [vmem:[#allocation2 + $0xe0] sm:$0xff] }
 0x201   : > { %v2548_v35 = vpop.f32.mrf.mxu0 }
 0x202   : > { %v2661_v37 = vpop.f32.mrf.mxu1  ;;  %3247 = vst [vmem:[#allocation2 + $0x168] sm:$0xff] %v3183_v40  ;;  %v3186_v57 = vadd.f32 %v2658_v55, %v490_v49  ;;  %v2660_v59 = vadd.f32 %v2659_v54, %v2547_v27  ;;  %v2549_v38 = vadd.f32 %v2548_v35, %v2436_v45  ;;  %v499_v49 = vld [vmem:[#allocation2 + $0x188] sm:$0xff]  ;;  %v502_v55 = vld [vmem:[#allocation2 + $0x80] sm:$0xff] }
 0x203   : > { %v2550_v48 = vpop.f32.mrf.mxu0 }
 0x204   : > { %v2663_v2 = vpop.f32.mrf.mxu1  ;;  %3250 = vst [vmem:[#allocation2 + $0x180] sm:$0xff] %v3186_v57  ;;  %v3187_v46 = vadd.f32 %v2660_v59, %v491_v6  ;;  %v2662_v5 = vadd.f32 %v2661_v37, %v2549_v38  ;;  %v2551_v24 = vadd.f32 %v2550_v48, %v2438_v41  ;;  %v503_v41 = vld [vmem:[#allocation2 + $0x1a8] sm:$0xff] }
 0x205   : > { %v2554_v15 = vpop.f32.mrf.mxu0  ;;  %v506_v48 = vld [vmem:[#allocation2 + $0x1e8] sm:$0xff] }
 0x206   : > { %v2667_v20 = vpop.f32.mrf.mxu1  ;;  %3251 = vst [vmem:[#allocation2 + $0x110] sm:$0xff] %v3187_v46  ;;  %v3190_v60 = vadd.f32 %v2662_v5, %v494_v47  ;;  %v2664_v19 = vadd.f32 %v2663_v2, %v2551_v24  ;;  %v2555_v53 = vadd.f32 %v2554_v15, %v2442_v58  ;;  %v507_v24 = vld [vmem:[#allocation2 + $0xf8] sm:$0xff] }
 0x207   : > { %v2556_v62 = vpop.f32.mrf.mxu0 }
 0x208   : > { %v2669_v0 = vpop.f32.mrf.mxu1  ;;  %3254 = vst [vmem:[#allocation2 + $0x120] sm:$0xff] %v3190_v60  ;;  %v3191_v22 = vadd.f32 %v2664_v19, %v495_v10  ;;  %v2668_v31 = vadd.f32 %v2667_v20, %v2555_v53  ;;  %v2557_v52 = vadd.f32 %v2556_v62, %v2444_v32  ;;  %v510_v60 = vld [vmem:[#allocation2 + $0x1e0] sm:$0xff] }
 0x209   : > { %v2558_v12 = vpop.f32.mrf.mxu0 }
 0x20a   : > { %v2671_v54 = vpop.f32.mrf.mxu1  ;;  %3255 = vst [vmem:[#allocation2 + $0x150] sm:$0xff] %v3191_v22  ;;  %v3194_v21 = vadd.f32 %v2668_v31, %v498_v50  ;;  %v2670_v45 = vadd.f32 %v2669_v0, %v2557_v52  ;;  %v2559_v40 = vadd.f32 %v2558_v12, %v2446_v61  ;;  %v511_v0 = vld [vmem:[#allocation2] sm:$0xff] }
 0x20b   : > { %v2560_v27 = vpop.f32.mrf.mxu0 }
 0x20c   : > { %v2673_v6 = vpop.f32.mrf.mxu1  ;;  %3258 = vst [vmem:[#allocation2 + $0xe0] sm:$0xff] %v3194_v21  ;;  %v3195_v4 = vadd.f32 %v2670_v45, %v499_v49  ;;  %v2672_v35 = vadd.f32 %v2671_v54, %v2559_v40  ;;  %v2561_v37 = vadd.f32 %v2560_v27, %v2448_v9  ;;  %v514_v49 = vld [vmem:[#allocation2 + $0x148] sm:$0xff]  ;;  %v515_v45 = vld [vmem:[#allocation2 + $0x1d0] sm:$0xff] }
 0x20d   : > { %v2564_v57 = vpop.f32.mrf.mxu0 }
 0x20e   : > { %v2677_v59 = vpop.f32.mrf.mxu1  ;;  %3259 = vst [vmem:[#allocation2 + $0x188] sm:$0xff] %v3195_v4  ;;  %v3198_v1 = vadd.f32 %v2672_v35, %v502_v55  ;;  %v2674_v38 = vadd.f32 %v2673_v6, %v2561_v37  ;;  %v2565_v47 = vadd.f32 %v2564_v57, %v2452_v3  ;;  %v518_v3 = vld [vmem:[#allocation2 + $0x40] sm:$0xff]  ;;  %v519_v57 = vld [vmem:[#allocation2 + $0x1f8] sm:$0xff] }
 0x20f   : > { %v2566_v2 = vpop.f32.mrf.mxu0 }
 0x210   : > { %v2679_v58 = vpop.f32.mrf.mxu1  ;;  %3262 = vst [vmem:[#allocation2 + $0x80] sm:$0xff] %v3198_v1  ;;  %v3199_v8 = vadd.f32 %v2674_v38, %v503_v41  ;;  %v2678_v46 = vadd.f32 %v2677_v59, %v2565_v47  ;;  %v2567_v5 = vadd.f32 %v2566_v2, %v2454_v44  ;;  %v522_v47 = vld [vmem:[#allocation2 + $0x1a0] sm:$0xff] }
 0x211   : > { %v2568_v10 = vpop.f32.mrf.mxu0 }
 0x212   : > { %v2681_v15 = vpop.f32.mrf.mxu1  ;;  %3263 = vst [vmem:[#allocation2 + $0x1a8] sm:$0xff] %v3199_v8  ;;  %v3202_v11 = vadd.f32 %v2678_v46, %v506_v48  ;;  %v2680_v20 = vadd.f32 %v2679_v58, %v2567_v5  ;;  %v2569_v32 = vadd.f32 %v2568_v10, %v2456_v16  ;;  %v523_v8 = vld [vmem:[#allocation2 + $0x1f0] sm:$0xff] }
 0x213   : > { %v2570_v19 = vpop.f32.mrf.mxu0 }
 0x214   : > { %v2683_v53 = vpop.f32.mrf.mxu1  ;;  %3266 = vst [vmem:[#allocation2 + $0x1e8] sm:$0xff] %v3202_v11  ;;  %v3203_v42 = vadd.f32 %v2680_v20, %v507_v24  ;;  %v2682_v50 = vadd.f32 %v2681_v15, %v2569_v32  ;;  %v2571_v62 = vadd.f32 %v2570_v19, %v2458_v28  ;;  %v7241_v24 = vld [vmem:[#allocation22_spill] sm:$0xff]  ;;  %v7242_v32 = vld [vmem:[#allocation23_spill] sm:$0xff] }
 0x215   : > { %v2574_v61 = vpop.f32.mrf.mxu0  ;;  %v2478_v39 = vadd.f32 %v7241_v24, %v6626_v17  ;;  %v526_v28 = vld [vmem:[#allocation2 + $0x70] sm:$0xff] }
 0x216   : > { %v2687_v22 = vpop.f32.mrf.mxu1  ;;  %3267 = vst [vmem:[#allocation2 + $0xf8] sm:$0xff] %v3203_v42  ;;  %v3206_v30 = vadd.f32 %v2682_v50, %v510_v60  ;;  %v2684_v31 = vadd.f32 %v2683_v53, %v2571_v62  ;;  %v2575_v52 = vadd.f32 %v2574_v61, %v2462_v56  ;;  %v7243_v60 = vld [vmem:[#allocation24_spill] sm:$0xff]  ;;  %v527_v56 = vld [vmem:[#allocation2 + $0x90] sm:$0xff]  ;;  %v7244_v62 = vld [vmem:[#allocation25_spill] sm:$0xff] }
 0x217   : > { %v2576_v12 = vpop.f32.mrf.mxu0  ;;  %v2482_v33 = vadd.f32 %v7243_v60, %v7242_v32  ;;  %v7257_v32 = vld [vmem:[#allocation38_spill] sm:$0xff] }
 0x218   : > { %v2689_v54 = vpop.f32.mrf.mxu1  ;;  %3270 = vst [vmem:[#allocation2 + $0x1e0] sm:$0xff] %v3206_v30  ;;  %v3207_v51 = vadd.f32 %v2684_v31, %v511_v0  ;;  %v2688_v9 = vadd.f32 %v2687_v22, %v2575_v52  ;;  %v2577_v21 = vadd.f32 %v2576_v12, %v2464_v43  ;;  %v7245_v0 = vld [vmem:[#allocation26_spill] sm:$0xff]  ;;  %v530_v30 = vld [vmem:[#allocation2 + $0xb8] sm:$0xff] }
 0x219   : > { %v2578_v40 = vpop.f32.mrf.mxu0  ;;  %v2484_v17 = vadd.f32 %v7245_v0, %v7244_v62  ;;  %v7247_v12 = vld [vmem:[#allocation28_spill] sm:$0xff] }
 0x21a   : > { %v2691_v55 = vpop.f32.mrf.mxu1  ;;  %3271 = vst [vmem:[#allocation2] sm:$0xff] %v3207_v51  ;;  %v3210_v29 = vadd.f32 %v2688_v9, %v514_v49  ;;  %v2690_v27 = vadd.f32 %v2689_v54, %v2577_v21  ;;  %v2579_v6 = vadd.f32 %v2578_v40, %v2466_v18  ;;  %v7246_v49 = vld [vmem:[#allocation27_spill] sm:$0xff]  ;;  %v531_v21 = vld [vmem:[#allocation2 + $0x88] sm:$0xff] }
 0x21b   : > { %v2580_v4 = vpop.f32.mrf.mxu0  ;;  %v2486_v54 = vadd.f32 %v7247_v12, %v7246_v49 }
 0x21c   : > { %v2693_v35 = vpop.f32.mrf.mxu1  ;;  %3274 = vst [vmem:[#allocation2 + $0x148] sm:$0xff] %v3210_v29  ;;  %v3211_v13 = vadd.f32 %v2690_v27, %v515_v45  ;;  %v2692_v37 = vadd.f32 %v2691_v55, %v2579_v6  ;;  %v2581_v41 = vadd.f32 %v2580_v4, %v2468_v7  ;;  %v7248_v55 = vld [vmem:[#allocation29_spill] sm:$0xff]  ;;  %v7249_v7 = vld [vmem:[#allocation30_spill] sm:$0xff] }
 0x21d   : > { %v2584_v59 = vpop.f32.mrf.mxu0  ;;  %v2488_v29 = vadd.f32 %v7249_v7, %v7248_v55  ;;  %v534_v4 = vld [vmem:[#allocation2 + $0x170] sm:$0xff] }
 0x21e   : > { %v2697_v44 = vpop.f32.mrf.mxu1  ;;  %3275 = vst [vmem:[#allocation2 + $0x1d0] sm:$0xff] %v3211_v13  ;;  %v3214_v63 = vadd.f32 %v2692_v37, %v518_v3  ;;  %v2694_v1 = vadd.f32 %v2693_v35, %v2581_v41  ;;  %v2585_v38 = vadd.f32 %v2584_v59, %v2472_v25  ;;  %v7250_v13 = vld [vmem:[#allocation31_spill] sm:$0xff]  ;;  %v7251_v37 = vld [vmem:[#allocation32_spill] sm:$0xff] }
 0x21f   : > { %v2586_v48 = vpop.f32.mrf.mxu0  ;;  %v2492_v41 = vadd.f32 %v7251_v37, %v7250_v13 }
 0x220   : > { %v2699_v2 = vpop.f32.mrf.mxu1  ;;  %3278 = vst [vmem:[#allocation2 + $0x40] sm:$0xff] %v3214_v63  ;;  %v3215_v34 = vadd.f32 %v2694_v1, %v519_v57  ;;  %v2698_v58 = vadd.f32 %v2697_v44, %v2585_v38  ;;  %v2587_v16 = vadd.f32 %v2586_v48, %v2474_v14  ;;  %v535_v14 = vld [vmem:[#allocation2 + $0x178] sm:$0xff]  ;;  %v7252_v38 = vld [vmem:[#allocation33_spill] sm:$0xff] }
 0x221   : > { %v2588_v46 = vpop.f32.mrf.mxu0 }
 0x222   : > { %v2701_v5 = vpop.f32.mrf.mxu1  ;;  %3279 = vst [vmem:[#allocation2 + $0x1f8] sm:$0xff] %v3215_v34  ;;  %v3218_v23 = vadd.f32 %v2698_v58, %v522_v47  ;;  %v2700_v10 = vadd.f32 %v2699_v2, %v2587_v16  ;;  %v2589_v15 = vadd.f32 %v2588_v46, %v2476_v26  ;;  %v7253_v47 = vld [vmem:[#allocation34_spill] sm:$0xff]  ;;  %v538_v58 = vld [vmem:[#allocation2 + $0x198] sm:$0xff] }
 0x223   : > { %v2590_v11 = vpop.f32.mrf.mxu0  ;;  %v2494_v48 = vadd.f32 %v7253_v47, %v7252_v38  ;;  %v7254_v46 = vld [vmem:[#allocation35_spill] sm:$0xff] }
 0x224   : > { %v2703_v20 = vpop.f32.mrf.mxu1  ;;  %3282 = vst [vmem:[#allocation2 + $0x1a0] sm:$0xff] %v3218_v23  ;;  %v3219_v36 = vadd.f32 %v2700_v10, %v523_v8  ;;  %v2702_v19 = vadd.f32 %v2701_v5, %v2589_v15  ;;  %v2591_v53 = vadd.f32 %v2590_v11, %v2478_v39  ;;  %v7255_v5 = vld [vmem:[#allocation36_spill] sm:$0xff] }
 0x225   : > { %v2594_v42 = vpop.f32.mrf.mxu0  ;;  %v2496_v24 = vadd.f32 %v7255_v5, %v7254_v46  ;;  %v539_v15 = vld [vmem:[#allocation2 + $0x38] sm:$0xff] }
 0x226   : > { %v2707_v50 = vpop.f32.mrf.mxu1  ;;  %3283 = vst [vmem:[#allocation2 + $0x1f0] sm:$0xff] %v3219_v36  ;;  %v3222_v61 = vadd.f32 %v2702_v19, %v526_v28  ;;  %v2704_v22 = vadd.f32 %v2703_v20, %v2591_v53  ;;  %v2595_v43 = vadd.f32 %v2594_v42, %v2482_v33  ;;  %v7256_v20 = vld [vmem:[#allocation37_spill] sm:$0xff]  ;;  %v542_v53 = vld [vmem:[#allocation2 + $0x158] sm:$0xff] }
 0x227   : > { %v2596_v31 = vpop.f32.mrf.mxu0  ;;  %v2498_v60 = vadd.f32 %v7257_v32, %v7256_v20 }
 0x228   : > { %v2709_v52 = vpop.f32.mrf.mxu1  ;;  %3286 = vst [vmem:[#allocation2 + $0x70] sm:$0xff] %v3222_v61  ;;  %v3223_v18 = vadd.f32 %v2704_v22, %v527_v56  ;;  %v2708_v51 = vadd.f32 %v2707_v50, %v2595_v43  ;;  %v2597_v9 = vadd.f32 %v2596_v31, %v2484_v17  ;;  %v543_v17 = vld [vmem:[#allocation2 + $0x10] sm:$0xff] }
 0x229   : > { %v2598_v45 = vpop.f32.mrf.mxu0 }
 0x22a   : > { %v2711_v40 = vpop.f32.mrf.mxu1  ;;  %3287 = vst [vmem:[#allocation2 + $0x90] sm:$0xff] %v3223_v18  ;;  %v3226_v27 = vadd.f32 %v2708_v51, %v530_v30  ;;  %v2710_v6 = vadd.f32 %v2709_v52, %v2597_v9  ;;  %v2599_v3 = vadd.f32 %v2598_v45, %v2486_v54 }
 0x22b   : > { %v2600_v35 = vpop.f32.mrf.mxu0 }
 0x22c   : > { %v2713_v25 = vpop.f32.mrf.mxu1  ;;  %3290 = vst [vmem:[#allocation2 + $0xb8] sm:$0xff] %v3226_v27  ;;  %v3227_v57 = vadd.f32 %v2710_v6, %v531_v21  ;;  %v2712_v59 = vadd.f32 %v2711_v40, %v2599_v3  ;;  %v2601_v44 = vadd.f32 %v2600_v35, %v2488_v29 }
 0x22d   : > { %v2604_v63 = vpop.f32.mrf.mxu0 }
 0x22e   : > { %v2717_v1 = vpop.f32.mrf.mxu1  ;;  %3291 = vst [vmem:[#allocation2 + $0x88] sm:$0xff] %v3227_v57  ;;  %v3230_v2 = vadd.f32 %v2712_v59, %v534_v4  ;;  %v2714_v26 = vadd.f32 %v2713_v25, %v2601_v44  ;;  %v2605_v34 = vadd.f32 %v2604_v63, %v2492_v41 }
 0x22f   : > { %v2606_v16 = vpop.f32.mrf.mxu0 }
 0x230   : > { %v2719_v8 = vpop.f32.mrf.mxu1  ;;  %3294 = vst [vmem:[#allocation2 + $0x170] sm:$0xff] %v3230_v2  ;;  %v3231_v39 = vadd.f32 %v2714_v26, %v535_v14  ;;  %v2718_v23 = vadd.f32 %v2717_v1, %v2605_v34  ;;  %v2607_v10 = vadd.f32 %v2606_v16, %v2494_v48 }
 0x231   : > { %v2608_v28 = vpop.f32.mrf.mxu0 }
 0x232   : > { %v2721_v11 = vpop.f32.mrf.mxu1  ;;  %3295 = vst [vmem:[#allocation2 + $0x178] sm:$0xff] %v3231_v39  ;;  %v3234_v33 = vadd.f32 %v2718_v23, %v538_v58  ;;  %v2720_v36 = vadd.f32 %v2719_v8, %v2607_v10  ;;  %v2609_v19 = vadd.f32 %v2608_v28, %v2496_v24 }
 0x233   : > { %v2610_v56 = vpop.f32.mrf.mxu0 }
 0x234   : > { %v2723_v42 = vpop.f32.mrf.mxu1  ;;  %3298 = vst [vmem:[#allocation2 + $0x198] sm:$0xff] %v3234_v33  ;;  %v3235_v50 = vadd.f32 %v2720_v36, %v539_v15  ;;  %v2722_v62 = vadd.f32 %v2721_v11, %v2609_v19  ;;  %v2611_v0 = vadd.f32 %v2610_v56, %v2498_v60 }
 0x235   : > { %v6732_v61 = vpop.f32.mrf.mxu0 }
 0x236   : > { %v6734_v22 = vpop.f32.mrf.mxu1  ;;  %3299 = vst [vmem:[#allocation2 + $0x38] sm:$0xff] %v3235_v50  ;;  %v3238_v43 = vadd.f32 %v2722_v62, %v542_v53  ;;  %v2724_v30 = vadd.f32 %v2723_v42, %v2611_v0 }
 0x237   : > { %v6736_v31 = vpop.f32.mrf.mxu0 }
 0x238   : > { %v6738_v52 = vpop.f32.mrf.mxu1  ;;  %3302 = vst [vmem:[#allocation2 + $0x158] sm:$0xff] %v3238_v43  ;;  %v3239_v49 = vadd.f32 %v2724_v30, %v543_v17 }
 0x239   : > { %v6740_v12 = vpop.f32.mrf.mxu0 }
 0x23a   : > { %v6742_v54 = vpop.f32.mrf.mxu1  ;;  %3303 = vst [vmem:[#allocation2 + $0x10] sm:$0xff] %v3239_v49 }
 0x23b   : > { %v6744_v18 = vpop.f32.mrf.mxu0 }
 0x23c   : > { %v6746_v51 = vpop.f32.mrf.mxu1 }
 0x23d   : > { %v6748_v9 = vpop.f32.mrf.mxu0 }
 0x23e   : > { %v6750_v21 = vpop.f32.mrf.mxu1 }
 0x23f   : > { %v6752_v45 = vpop.f32.mrf.mxu0 }
 0x240   : > { %v6754_v40 = vpop.f32.mrf.mxu1 }
 0x241   : > { %v6756_v55 = vpop.f32.mrf.mxu0 }
 0x242   : > { %v6758_v7 = vpop.f32.mrf.mxu1 }
 0x243   : > { %v6760_v29 = vpop.f32.mrf.mxu0 }
 0x244   : > { %v6762_v27 = vpop.f32.mrf.mxu1 }
 0x245   : > { %v6764_v6 = vpop.f32.mrf.mxu0 }
 0x246   : > { %v6766_v3 = vpop.f32.mrf.mxu1 }
 0x247   : > { %v6768_v4 = vpop.f32.mrf.mxu0 }
 0x248   : > { %v6770_v35 = vpop.f32.mrf.mxu1 }
 0x249   : > { %v6772_v25 = vpop.f32.mrf.mxu0 }
 0x24a   : > { %v6774_v13 = vpop.f32.mrf.mxu1 }
 0x24b   : > { %v6776_v37 = vpop.f32.mrf.mxu0 }
 0x24c   : > { %v6778_v41 = vpop.f32.mrf.mxu1 }
 0x24d   : > { %v6780_v57 = vpop.f32.mrf.mxu0 }
 0x24e   : > { %v6782_v59 = vpop.f32.mrf.mxu1 }
 0x24f   : > { %v6784_v44 = vpop.f32.mrf.mxu0 }
 0x250   : > { %v6786_v14 = vpop.f32.mrf.mxu1 }
 0x251   : > { %v6788_v63 = vpop.f32.mrf.mxu0 }
 0x252   : > { %v6790_v1 = vpop.f32.mrf.mxu1 }
 0x253   : > { %v6792_v38 = vpop.f32.mrf.mxu0 }
 0x254   : > { %v6794_v47 = vpop.f32.mrf.mxu1 }
 0x255   : > { %v6796_v48 = vpop.f32.mrf.mxu0 }
 0x256   : > { %v6798_v2 = vpop.f32.mrf.mxu1 }
 0x257   : > { %v6800_v26 = vpop.f32.mrf.mxu0 }
 0x258   : > { %v6802_v34 = vpop.f32.mrf.mxu1 }
 0x259   : > { %v6804_v58 = vpop.f32.mrf.mxu0 }
 0x25a   : > { %v6806_v16 = vpop.f32.mrf.mxu1 }
 0x25b   : > { %v6808_v8 = vpop.f32.mrf.mxu0 }
 0x25c   : > { %v6810_v46 = vpop.f32.mrf.mxu1 }
 0x25d   : > { %v6812_v5 = vpop.f32.mrf.mxu0 }
 0x25e   : > { %v6814_v24 = vpop.f32.mrf.mxu1 }
 0x25f   : > { %v6816_v39 = vpop.f32.mrf.mxu0 }
 0x260   : > { %v6818_v23 = vpop.f32.mrf.mxu1 }
 0x261   : > { %v6820_v10 = vpop.f32.mrf.mxu0 }
 0x262   : > { %v6822_v15 = vpop.f32.mrf.mxu1 }
 0x263   : > { %v6824_v28 = vpop.f32.mrf.mxu0 }
 0x264   : > { %v6826_v11 = vpop.f32.mrf.mxu1 }
 0x265   : > { %7258 = vst [vmem:[#allocation22_spill] sm:$0xff] %v6826_v11  ;;  %v6828_v20 = vpop.f32.mrf.mxu0  ;;  %v488_v11 = vld [vmem:[#allocation2 + $0x130] sm:$0xff] }
 0x266   : > { %7259 = vst [vmem:[#allocation23_spill] sm:$0xff] %v6828_v20  ;;  %v6830_v32 = vpop.f32.mrf.mxu1 }
 0x267   : > { %7260 = vst [vmem:[#allocation24_spill] sm:$0xff] %v6830_v32  ;;  %v6832_v60 = vpop.f32.mrf.mxu0 }
 0x268   : > { %7261 = vst [vmem:[#allocation25_spill] sm:$0xff] %v6832_v60  ;;  %v6834_v33 = vpop.f32.mrf.mxu1 }
 0x269   : > { %7262 = vst [vmem:[#allocation26_spill] sm:$0xff] %v6834_v33  ;;  %v6836_v36 = vpop.f32.mrf.mxu0 }
 0x26a   : > { %7263 = vst [vmem:[#allocation27_spill] sm:$0xff] %v6836_v36  ;;  %v6838_v19 = vpop.f32.mrf.mxu1 }
 0x26b   : > { %7264 = vst [vmem:[#allocation28_spill] sm:$0xff] %v6838_v19  ;;  %v6840_v53 = vpop.f32.mrf.mxu0 }
 0x26c   : > { %7265 = vst [vmem:[#allocation29_spill] sm:$0xff] %v6840_v53  ;;  %v6842_v56 = vpop.f32.mrf.mxu1  ;;  %v2874_v53 = vadd.f32 %v6734_v22, %v6732_v61  ;;  %v2880_v61 = vadd.f32 %v6746_v51, %v6744_v18 }
 0x26d   : > { %7266 = vst [vmem:[#allocation30_spill] sm:$0xff] %v6842_v56  ;;  %v6844_v42 = vpop.f32.mrf.mxu0 }
 0x26e   : > { %7267 = vst [vmem:[#allocation31_spill] sm:$0xff] %v6844_v42  ;;  %v6846_v50 = vpop.f32.mrf.mxu1 }
 0x26f   : > { %7268 = vst [vmem:[#allocation32_spill] sm:$0xff] %v6846_v50  ;;  %v6848_v62 = vpop.f32.mrf.mxu0  ;;  %v2876_v50 = vadd.f32 %v6738_v52, %v6736_v31 }
 0x270   : > { %7269 = vst [vmem:[#allocation33_spill] sm:$0xff] %v6848_v62  ;;  %v6850_v0 = vpop.f32.mrf.mxu1  ;;  %v484_v62 = vld [vmem:[#allocation2 + $0xd8] sm:$0xff] }
 0x271   : > { %7270 = vst [vmem:[#allocation34_spill] sm:$0xff] %v6850_v0  ;;  %v6852_v17 = vpop.f32.mrf.mxu0 }
 0x272   : > { %7271 = vst [vmem:[#allocation35_spill] sm:$0xff] %v6852_v17  ;;  %v6854_v43 = vpop.f32.mrf.mxu1  ;;  %v2878_v17 = vadd.f32 %v6742_v54, %v6740_v12 }
 0x273   : > { %7272 = vst [vmem:[#allocation36_spill] sm:$0xff] %v6854_v43  ;;  %v6856_v30 = vpop.f32.mrf.mxu0 }
 0x274   : > { %7273 = vst [vmem:[#allocation37_spill] sm:$0xff] %v6856_v30  ;;  %v6858_v49 = vpop.f32.mrf.mxu1  ;;  %v485_v30 = vld [vmem:[#allocation2 + $0x18] sm:$0xff] }
 0x275   : > { %7274 = vst [vmem:[#allocation38_spill] sm:$0xff] %v6858_v49  ;;  %v2986_v56 = vpop.f32.mrf.mxu0 }
 0x276   : > { %v3099_v19 = vpop.f32.mrf.mxu1  ;;  %v2987_v42 = vadd.f32 %v2986_v56, %v2874_v53  ;;  %v2884_v53 = vadd.f32 %v6750_v21, %v6748_v9  ;;  %v2888_v9 = vadd.f32 %v6758_v7, %v6756_v55  ;;  %v2894_v55 = vadd.f32 %v6766_v3, %v6764_v6 }
 0x277   : > { %v2988_v36 = vpop.f32.mrf.mxu0  ;;  %v2898_v6 = vadd.f32 %v6774_v13, %v6772_v25  ;;  %v2904_v25 = vadd.f32 %v6782_v59, %v6780_v57  ;;  %v2908_v57 = vadd.f32 %v6790_v1, %v6788_v63  ;;  %v2914_v63 = vadd.f32 %v6798_v2, %v6796_v48 }
 0x278   : > { %v3101_v0 = vpop.f32.mrf.mxu1  ;;  %v3100_v43 = vadd.f32 %v3099_v19, %v2987_v42  ;;  %v2989_v33 = vadd.f32 %v2988_v36, %v2876_v50  ;;  %v489_v36 = vld [vmem:[#allocation2 + $0x48] sm:$0xff]  ;;  %v2886_v50 = vadd.f32 %v6754_v40, %v6752_v45  ;;  %v2890_v45 = vadd.f32 %v6762_v27, %v6760_v29 }
 0x279   : > { %v2990_v60 = vpop.f32.mrf.mxu0  ;;  %v2896_v29 = vadd.f32 %v6770_v35, %v6768_v4  ;;  %v2900_v4 = vadd.f32 %v6778_v41, %v6776_v37  ;;  %v2906_v37 = vadd.f32 %v6786_v14, %v6784_v44  ;;  %v2910_v44 = vadd.f32 %v6794_v47, %v6792_v38 }
 0x27a   : > { %v3103_v49 = vpop.f32.mrf.mxu1  ;;  %v3180_v22 = vadd.f32 %v3100_v43, %v484_v62  ;;  %v3102_v32 = vadd.f32 %v3101_v0, %v2989_v33  ;;  %v2991_v20 = vadd.f32 %v2990_v60, %v2878_v17  ;;  %v492_v33 = vld [vmem:[#allocation2 + $0x118] sm:$0xff]  ;;  %v2916_v38 = vadd.f32 %v6802_v34, %v6800_v26 }
 0x27b   : > { %v2992_v31 = vpop.f32.mrf.mxu0  ;;  %v493_v17 = vld [vmem:[#allocation2 + $0x98] sm:$0xff]  ;;  %v2918_v48 = vadd.f32 %v6806_v16, %v6804_v58  ;;  %v2920_v26 = vadd.f32 %v6810_v46, %v6808_v8  ;;  %v2924_v58 = vadd.f32 %v6814_v24, %v6812_v5  ;;  %v2926_v8 = vadd.f32 %v6818_v23, %v6816_v39 }
 0x27c   : > { %v3105_v52 = vpop.f32.mrf.mxu1  ;;  %3244 = vst [vmem:[#allocation2 + $0xd8] sm:$0xff] %v3180_v22  ;;  %v3181_v56 = vadd.f32 %v3102_v32, %v485_v30  ;;  %v3104_v12 = vadd.f32 %v3103_v49, %v2991_v20  ;;  %v2993_v54 = vadd.f32 %v2992_v31, %v2880_v61  ;;  %v496_v61 = vld [vmem:[#allocation2 + $0x108] sm:$0xff]  ;;  %v2928_v5 = vadd.f32 %v6822_v15, %v6820_v10 }
 0x27d   : > { %v2996_v19 = vpop.f32.mrf.mxu0 }
 0x27e   : > { %v3109_v42 = vpop.f32.mrf.mxu1  ;;  %3245 = vst [vmem:[#allocation2 + $0x18] sm:$0xff] %v3181_v56  ;;  %v3184_v18 = vadd.f32 %v3104_v12, %v488_v11  ;;  %v3106_v51 = vadd.f32 %v3105_v52, %v2993_v54  ;;  %v2997_v60 = vadd.f32 %v2996_v19, %v2884_v53  ;;  %v497_v56 = vld [vmem:[#allocation2 + $0x60] sm:$0xff] }
 0x27f   : > { %v2998_v62 = vpop.f32.mrf.mxu0 }
 0x280   : > { %v3111_v0 = vpop.f32.mrf.mxu1  ;;  %3248 = vst [vmem:[#allocation2 + $0x130] sm:$0xff] %v3184_v18  ;;  %v3185_v21 = vadd.f32 %v3106_v51, %v489_v36  ;;  %v3110_v20 = vadd.f32 %v3109_v42, %v2997_v60  ;;  %v2999_v32 = vadd.f32 %v2998_v62, %v2886_v50  ;;  %v500_v42 = vld [vmem:[#allocation2 + $0x138] sm:$0xff] }
 0x281   : > { %v3000_v43 = vpop.f32.mrf.mxu0 }
 0x282   : > { %v3113_v30 = vpop.f32.mrf.mxu1  ;;  %3249 = vst [vmem:[#allocation2 + $0x48] sm:$0xff] %v3185_v21  ;;  %v3188_v40 = vadd.f32 %v3110_v20, %v492_v33  ;;  %v3112_v11 = vadd.f32 %v3111_v0, %v2999_v32  ;;  %v3001_v49 = vadd.f32 %v3000_v43, %v2888_v9  ;;  %v501_v33 = vld [vmem:[#allocation2 + $0x140] sm:$0xff]  ;;  %v504_v20 = vld [vmem:[#allocation2 + $0x1b8] sm:$0xff] }
 0x283   : > { %v3002_v22 = vpop.f32.mrf.mxu0 }
 0x284   : > { %v3115_v31 = vpop.f32.mrf.mxu1  ;;  %3252 = vst [vmem:[#allocation2 + $0x118] sm:$0xff] %v3188_v40  ;;  %v3189_v7 = vadd.f32 %v3112_v11, %v493_v17  ;;  %v3114_v52 = vadd.f32 %v3113_v30, %v3001_v49  ;;  %v3003_v53 = vadd.f32 %v3002_v22, %v2890_v45  ;;  %v505_v45 = vld [vmem:[#allocation2 + $0x28] sm:$0xff]  ;;  %v508_v22 = vld [vmem:[#allocation2 + $0x160] sm:$0xff] }
 0x285   : > { %v3006_v12 = vpop.f32.mrf.mxu0 }
 0x286   : > { %v3119_v54 = vpop.f32.mrf.mxu1  ;;  %3253 = vst [vmem:[#allocation2 + $0x98] sm:$0xff] %v3189_v7  ;;  %v3192_v27 = vadd.f32 %v3114_v52, %v496_v61  ;;  %v3116_v36 = vadd.f32 %v3115_v31, %v3003_v53  ;;  %v3007_v19 = vadd.f32 %v3006_v12, %v2894_v55  ;;  %v509_v53 = vld [vmem:[#allocation2 + $0x30] sm:$0xff] }
 0x287   : > { %v3008_v50 = vpop.f32.mrf.mxu0 }
 0x288   : > { %v3121_v18 = vpop.f32.mrf.mxu1  ;;  %3256 = vst [vmem:[#allocation2 + $0x108] sm:$0xff] %v3192_v27  ;;  %v3193_v3 = vadd.f32 %v3116_v36, %v497_v56  ;;  %v3120_v51 = vadd.f32 %v3119_v54, %v3007_v19  ;;  %v3009_v60 = vadd.f32 %v3008_v50, %v2896_v29  ;;  %v512_v27 = vld [vmem:[#allocation2 + $0xf0] sm:$0xff] }
 0x289   : > { %v3010_v62 = vpop.f32.mrf.mxu0 }
 0x28a   : > { %v3123_v0 = vpop.f32.mrf.mxu1  ;;  %3257 = vst [vmem:[#allocation2 + $0x60] sm:$0xff] %v3193_v3  ;;  %v3196_v35 = vadd.f32 %v3120_v51, %v500_v42  ;;  %v3122_v9 = vadd.f32 %v3121_v18, %v3009_v60  ;;  %v3011_v21 = vadd.f32 %v3010_v62, %v2898_v6  ;;  %v513_v18 = vld [vmem:[#allocation2 + $0x8] sm:$0xff] }
 0x28b   : > { %v3012_v32 = vpop.f32.mrf.mxu0 }
 0x28c   : > { %v3125_v17 = vpop.f32.mrf.mxu1  ;;  %3260 = vst [vmem:[#allocation2 + $0x138] sm:$0xff] %v3196_v35  ;;  %v3197_v13 = vadd.f32 %v3122_v9, %v501_v33  ;;  %v3124_v43 = vadd.f32 %v3123_v0, %v3011_v21  ;;  %v3013_v30 = vadd.f32 %v3012_v32, %v2900_v4  ;;  %v516_v33 = vld [vmem:[#allocation2 + $0x100] sm:$0xff]  ;;  %v517_v9 = vld [vmem:[#allocation2 + $0xc8] sm:$0xff] }
 0x28d   : > { %v3016_v40 = vpop.f32.mrf.mxu0 }
 0x28e   : > { %v3129_v11 = vpop.f32.mrf.mxu1  ;;  %3261 = vst [vmem:[#allocation2 + $0x140] sm:$0xff] %v3197_v13  ;;  %v3200_v41 = vadd.f32 %v3124_v43, %v504_v20  ;;  %v3126_v49 = vadd.f32 %v3125_v17, %v3013_v30  ;;  %v3017_v61 = vadd.f32 %v3016_v40, %v2904_v25  ;;  %v520_v25 = vld [vmem:[#allocation2 + $0x20] sm:$0xff]  ;;  %v521_v40 = vld [vmem:[#allocation2 + $0x128] sm:$0xff] }
 0x28f   : > { %v3018_v31 = vpop.f32.mrf.mxu0 }
 0x290   : > { %v3131_v55 = vpop.f32.mrf.mxu1  ;;  %3264 = vst [vmem:[#allocation2 + $0x1b8] sm:$0xff] %v3200_v41  ;;  %v3201_v59 = vadd.f32 %v3126_v49, %v505_v45  ;;  %v3130_v7 = vadd.f32 %v3129_v11, %v3017_v61  ;;  %v3019_v52 = vadd.f32 %v3018_v31, %v2906_v37  ;;  %v524_v61 = vld [vmem:[#allocation2 + $0xe8] sm:$0xff] }
 0x291   : > { %v3020_v56 = vpop.f32.mrf.mxu0 }
 0x292   : > { %v3133_v12 = vpop.f32.mrf.mxu1  ;;  %3265 = vst [vmem:[#allocation2 + $0x28] sm:$0xff] %v3201_v59  ;;  %v3204_v14 = vadd.f32 %v3130_v7, %v508_v22  ;;  %v3132_v54 = vadd.f32 %v3131_v55, %v3019_v52  ;;  %v3021_v29 = vadd.f32 %v3020_v56, %v2908_v57  ;;  %v525_v59 = vld [vmem:[#allocation2 + $0x78] sm:$0xff] }
 0x293   : > { %v3022_v36 = vpop.f32.mrf.mxu0 }
 0x294   : > { %v3135_v19 = vpop.f32.mrf.mxu1  ;;  %3268 = vst [vmem:[#allocation2 + $0x160] sm:$0xff] %v3204_v14  ;;  %v3205_v1 = vadd.f32 %v3132_v54, %v509_v53  ;;  %v3134_v42 = vadd.f32 %v3133_v12, %v3021_v29  ;;  %v3023_v50 = vadd.f32 %v3022_v36, %v2910_v44  ;;  %v7275_v53 = vld [vmem:[#allocation22_spill] sm:$0xff]  ;;  %v528_v44 = vld [vmem:[#allocation2 + $0x1d8] sm:$0xff] }
 0x295   : > { %v3026_v6 = vpop.f32.mrf.mxu0  ;;  %v2930_v39 = vadd.f32 %v7275_v53, %v6824_v28  ;;  %v7276_v29 = vld [vmem:[#allocation23_spill] sm:$0xff] }
 0x296   : > { %v3139_v3 = vpop.f32.mrf.mxu1  ;;  %3269 = vst [vmem:[#allocation2 + $0x30] sm:$0xff] %v3205_v1  ;;  %v3208_v47 = vadd.f32 %v3134_v42, %v512_v27  ;;  %v3136_v51 = vadd.f32 %v3135_v19, %v3023_v50  ;;  %v3027_v60 = vadd.f32 %v3026_v6, %v2914_v63  ;;  %v7277_v27 = vld [vmem:[#allocation24_spill] sm:$0xff]  ;;  %v529_v63 = vld [vmem:[#allocation2 + $0xd0] sm:$0xff]  ;;  %v7278_v50 = vld [vmem:[#allocation25_spill] sm:$0xff] }
 0x297   : > { %v3028_v62 = vpop.f32.mrf.mxu0  ;;  %v2934_v10 = vadd.f32 %v7277_v27, %v7276_v29  ;;  %v7291_v29 = vld [vmem:[#allocation38_spill] sm:$0xff] }
 0x298   : > { %v3141_v0 = vpop.f32.mrf.mxu1  ;;  %3272 = vst [vmem:[#allocation2 + $0xf0] sm:$0xff] %v3208_v47  ;;  %v3209_v2 = vadd.f32 %v3136_v51, %v513_v18  ;;  %v3140_v4 = vadd.f32 %v3139_v3, %v3027_v60  ;;  %v3029_v35 = vadd.f32 %v3028_v62, %v2916_v38  ;;  %v7279_v18 = vld [vmem:[#allocation26_spill] sm:$0xff]  ;;  %v7281_v62 = vld [vmem:[#allocation28_spill] sm:$0xff] }
 0x299   : > { %v3030_v21 = vpop.f32.mrf.mxu0  ;;  %v2936_v28 = vadd.f32 %v7279_v18, %v7278_v50  ;;  %v532_v47 = vld [vmem:[#allocation2 + $0xa8] sm:$0xff]  ;;  %v545_v18 = vld [vmem:[#allocation2 + $0xa0] sm:$0xff] }
 0x29a   : > { %v3143_v20 = vpop.f32.mrf.mxu1  ;;  %3273 = vst [vmem:[#allocation2 + $0x8] sm:$0xff] %v3209_v2  ;;  %v3212_v34 = vadd.f32 %v3140_v4, %v516_v33  ;;  %v3142_v32 = vadd.f32 %v3141_v0, %v3029_v35  ;;  %v3031_v17 = vadd.f32 %v3030_v21, %v2918_v48  ;;  %v7280_v33 = vld [vmem:[#allocation27_spill] sm:$0xff]  ;;  %v533_v35 = vld [vmem:[#allocation2 + $0x1c8] sm:$0xff] }
 0x29b   : > { %v3032_v13 = vpop.f32.mrf.mxu0  ;;  %v2938_v0 = vadd.f32 %v7281_v62, %v7280_v33 }
 0x29c   : > { %v3145_v43 = vpop.f32.mrf.mxu1  ;;  %3276 = vst [vmem:[#allocation2 + $0x100] sm:$0xff] %v3212_v34  ;;  %v3213_v16 = vadd.f32 %v3142_v32, %v517_v9  ;;  %v3144_v30 = vadd.f32 %v3143_v20, %v3031_v17  ;;  %v3033_v45 = vadd.f32 %v3032_v13, %v2920_v26  ;;  %v7282_v20 = vld [vmem:[#allocation29_spill] sm:$0xff]  ;;  %v7283_v26 = vld [vmem:[#allocation30_spill] sm:$0xff] }
 0x29d   : > { %v3036_v11 = vpop.f32.mrf.mxu0  ;;  %v2940_v34 = vadd.f32 %v7283_v26, %v7282_v20  ;;  %v536_v13 = vld [vmem:[#allocation2 + $0x68] sm:$0xff] }
 0x29e   : > { %v3149_v37 = vpop.f32.mrf.mxu1  ;;  %3277 = vst [vmem:[#allocation2 + $0xc8] sm:$0xff] %v3213_v16  ;;  %v3216_v46 = vadd.f32 %v3144_v30, %v520_v25  ;;  %v3146_v41 = vadd.f32 %v3145_v43, %v3033_v45  ;;  %v3037_v49 = vadd.f32 %v3036_v11, %v2924_v58  ;;  %v7284_v16 = vld [vmem:[#allocation31_spill] sm:$0xff]  ;;  %v7285_v30 = vld [vmem:[#allocation32_spill] sm:$0xff] }
 0x29f   : > { %v3038_v22 = vpop.f32.mrf.mxu0  ;;  %v2944_v45 = vadd.f32 %v7285_v30, %v7284_v16 }
 0x2a0   : > { %v3151_v31 = vpop.f32.mrf.mxu1  ;;  %3280 = vst [vmem:[#allocation2 + $0x20] sm:$0xff] %v3216_v46  ;;  %v3217_v24 = vadd.f32 %v3146_v41, %v521_v40  ;;  %v3150_v55 = vadd.f32 %v3149_v37, %v3037_v49  ;;  %v3039_v57 = vadd.f32 %v3038_v22, %v2926_v8  ;;  %v537_v8 = vld [vmem:[#allocation2 + $0x190] sm:$0xff]  ;;  %v7286_v49 = vld [vmem:[#allocation33_spill] sm:$0xff] }
 0x2a1   : > { %v3040_v7 = vpop.f32.mrf.mxu0 }
 0x2a2   : > { %v3153_v52 = vpop.f32.mrf.mxu1  ;;  %3281 = vst [vmem:[#allocation2 + $0x128] sm:$0xff] %v3217_v24  ;;  %v3220_v23 = vadd.f32 %v3150_v55, %v524_v61  ;;  %v3152_v56 = vadd.f32 %v3151_v31, %v3039_v57  ;;  %v3041_v12 = vadd.f32 %v3040_v7, %v2928_v5  ;;  %v7287_v61 = vld [vmem:[#allocation34_spill] sm:$0xff]  ;;  %v540_v55 = vld [vmem:[#allocation2 + $0xc0] sm:$0xff]  ;;  %v7288_v7 = vld [vmem:[#allocation35_spill] sm:$0xff] }
 0x2a3   : > { %v3042_v14 = vpop.f32.mrf.mxu0  ;;  %v2946_v22 = vadd.f32 %v7287_v61, %v7286_v49 }
 0x2a4   : > { %v3155_v54 = vpop.f32.mrf.mxu1  ;;  %3284 = vst [vmem:[#allocation2 + $0xe8] sm:$0xff] %v3220_v23  ;;  %v3221_v15 = vadd.f32 %v3152_v56, %v525_v59  ;;  %v3154_v36 = vadd.f32 %v3153_v52, %v3041_v12  ;;  %v3043_v19 = vadd.f32 %v3042_v14, %v2930_v39  ;;  %v7289_v52 = vld [vmem:[#allocation36_spill] sm:$0xff] }
 0x2a5   : > { %v3046_v1 = vpop.f32.mrf.mxu0  ;;  %v2948_v53 = vadd.f32 %v7289_v52, %v7288_v7  ;;  %v541_v12 = vld [vmem:[#allocation2 + $0x1c0] sm:$0xff] }
 0x2a6   : > { %v3159_v42 = vpop.f32.mrf.mxu1  ;;  %3285 = vst [vmem:[#allocation2 + $0x78] sm:$0xff] %v3221_v15  ;;  %v3224_v6 = vadd.f32 %v3154_v36, %v528_v44  ;;  %v3156_v3 = vadd.f32 %v3155_v54, %v3043_v19  ;;  %v3047_v38 = vadd.f32 %v3046_v1, %v2934_v10  ;;  %v7290_v54 = vld [vmem:[#allocation37_spill] sm:$0xff]  ;;  %v544_v19 = vld [vmem:[#allocation2 + $0x58] sm:$0xff] }
 0x2a7   : > { %v3048_v51 = vpop.f32.mrf.mxu0  ;;  %v2950_v27 = vadd.f32 %v7291_v29, %v7290_v54 }
 0x2a8   : > { %v3161_v60 = vpop.f32.mrf.mxu1  ;;  %3288 = vst [vmem:[#allocation2 + $0x1d8] sm:$0xff] %v3224_v6  ;;  %v3225_v48 = vadd.f32 %v3156_v3, %v529_v63  ;;  %v3160_v2 = vadd.f32 %v3159_v42, %v3047_v38  ;;  %v3049_v4 = vadd.f32 %v3048_v51, %v2936_v28 }
 0x2a9   : > { %v3050_v9 = vpop.f32.mrf.mxu0 }
 0x2aa   : > { %v3163_v21 = vpop.f32.mrf.mxu1  ;;  %3289 = vst [vmem:[#allocation2 + $0xd0] sm:$0xff] %v3225_v48  ;;  %v3228_v32 = vadd.f32 %v3160_v2, %v532_v47  ;;  %v3162_v17 = vadd.f32 %v3161_v60, %v3049_v4  ;;  %v3051_v25 = vadd.f32 %v3050_v9, %v2938_v0 }
 0x2ab   : > { %v3052_v43 = vpop.f32.mrf.mxu0 }
 0x2ac   : > { %v3165_v58 = vpop.f32.mrf.mxu1  ;;  %3292 = vst [vmem:[#allocation2 + $0xa8] sm:$0xff] %v3228_v32  ;;  %v3229_v40 = vadd.f32 %v3162_v17, %v533_v35  ;;  %v3164_v11 = vadd.f32 %v3163_v21, %v3051_v25  ;;  %v3053_v37 = vadd.f32 %v3052_v43, %v2940_v34 }
 0x2ad   : > { %v3056_v46 = vpop.f32.mrf.mxu0 }
 0x2ae   : > { %v3169_v41 = vpop.f32.mrf.mxu1  ;;  %3293 = vst [vmem:[#allocation2 + $0x1c8] sm:$0xff] %v3229_v40  ;;  %v3232_v31 = vadd.f32 %v3164_v11, %v536_v13  ;;  %v3166_v5 = vadd.f32 %v3165_v58, %v3053_v37  ;;  %v3057_v24 = vadd.f32 %v3056_v46, %v2944_v45 }
 0x2af   : > { %v3058_v57 = vpop.f32.mrf.mxu0 }
 0x2b0   : > { %v3171_v59 = vpop.f32.mrf.mxu1  ;;  %3296 = vst [vmem:[#allocation2 + $0x68] sm:$0xff] %v3232_v31  ;;  %v3233_v39 = vadd.f32 %v3166_v5, %v537_v8  ;;  %v3170_v23 = vadd.f32 %v3169_v41, %v3057_v24  ;;  %v3059_v56 = vadd.f32 %v3058_v57, %v2946_v22 }
 0x2b1   : > { %v3060_v44 = vpop.f32.mrf.mxu0 }
 0x2b2   : > { %v3173_v14 = vpop.f32.mrf.mxu1  ;;  %3297 = vst [vmem:[#allocation2 + $0x190] sm:$0xff] %v3233_v39  ;;  %v3236_v10 = vadd.f32 %v3170_v23, %v540_v55  ;;  %v3172_v15 = vadd.f32 %v3171_v59, %v3059_v56  ;;  %v3061_v36 = vadd.f32 %v3060_v44, %v2948_v53 }
 0x2b3   : > { %v3062_v63 = vpop.f32.mrf.mxu0 }
 0x2b4   : > { %3300 = vst [vmem:[#allocation2 + $0xc0] sm:$0xff] %v3236_v10  ;;  %v3237_v1 = vadd.f32 %v3172_v15, %v541_v12  ;;  %v3174_v42 = vadd.f32 %v3173_v14, %v3061_v36  ;;  %v3063_v50 = vadd.f32 %v3062_v63, %v2950_v27  ;;  %v3175_v28 = vpop.f32.mrf.mxu1 }
 0x2b6   : > { %3301 = vst [vmem:[#allocation2 + $0x1c0] sm:$0xff] %v3237_v1  ;;  %v3240_v6 = vadd.f32 %v3174_v42, %v544_v19  ;;  %v3176_v3 = vadd.f32 %v3175_v28, %v3063_v50  ;;  %3309 = sbr.rel (%p4715_p2) target bundleno = 1290 (0x50a), region = 80 }
 0x2b8   : > { %3304 = vst [vmem:[#allocation2 + $0x58] sm:$0xff] %v3240_v6  ;;  %v3241_v38 = vadd.f32 %v3176_v3, %v545_v18 }
 0x2ba   : > { %3305 = vst [vmem:[#allocation2 + $0xa0] sm:$0xff] %v3241_v38 }
 0x2bb   : > { %v5282_v47 = vld [vmem:[#allocation10 + $0x74] ss:$8 sps:$4 sm:$0xff]   ;;  %v5286_v60 = vld [vmem:[#allocation10 + $0x70] ss:$8 sps:$4 sm:$0xff]   ;;  %v5288_v62 = vld [vmem:[#allocation10 + $0x64] ss:$8 sps:$4 sm:$0xff]   ;;  %v3376_v57 = vlaneseq }
 0x2bc   : > { %v5284_v51 = vld [vmem:[#allocation10 + $0x174] ss:$8 sps:$4 sm:$0xff]   ;;  %3952 = vmatprep.subr.bf16.mxu0 %v5282_v47  ;;  %v5287_v33 = vld [vmem:[#allocation10 + $0x170] ss:$8 sps:$4 sm:$0xff]   ;;  %v5290_v0 = vld [vmem:[#allocation10 + $0x164] ss:$8 sps:$4 sm:$0xff]  }
 0x2bd   : > { %4065 = vmatprep.subr.bf16.mxu1 %v5284_v51  ;;  %3953 = vmatpush1.bf16.msra.mxu0 %v5286_v60  ;;  %v5292_v48 = vld [vmem:[#allocation10 + $0x60] ss:$8 sps:$4 sm:$0xff]   ;;  %v5294_v4 = vld [vmem:[#allocation10 + $0x54] ss:$8 sps:$4 sm:$0xff]   ;;  %v5298_v9 = vld [vmem:[#allocation10 + $0x50] ss:$8 sps:$4 sm:$0xff]  }
 0x2be   : > { %4066 = vmatpush1.bf16.msra.mxu1 %v5287_v33  ;;  %3954 = vmatprep.subr.bf16.mxu0 %v5288_v62  ;;  %v5293_v2 = vld [vmem:[#allocation10 + $0x160] ss:$8 sps:$4 sm:$0xff]   ;;  %v5296_v35 = vld [vmem:[#allocation10 + $0x154] ss:$8 sps:$4 sm:$0xff]   ;;  %v5299_v21 = vld [vmem:[#allocation10 + $0x150] ss:$8 sps:$4 sm:$0xff]  }
 0x2bf   : > { %4067 = vmatprep.subr.bf16.mxu1 %v5290_v0  ;;  %v5300_v20 = vld [vmem:[#allocation10 + $0x44] ss:$8 sps:$4 sm:$0xff]   ;;  %v5304_v34 = vld [vmem:[#allocation10 + $0x40] ss:$8 sps:$4 sm:$0xff]   ;;  %v5306_v17 = vld [vmem:[#allocation10 + $0x34] ss:$8 sps:$4 sm:$0xff]  }
 0x2c0   : > { %v5302_v26 = vld [vmem:[#allocation10 + $0x144] ss:$8 sps:$4 sm:$0xff]   ;;  %v5305_v32 = vld [vmem:[#allocation10 + $0x140] ss:$8 sps:$4 sm:$0xff]   ;;  %v5308_v25 = vld [vmem:[#allocation10 + $0x134] ss:$8 sps:$4 sm:$0xff]  }
 0x2c1   : > { %3955 = vmatpush1.bf16.msra.mxu0 %v5292_v48  ;;  %v5310_v13 = vld [vmem:[#allocation10 + $0x30] ss:$8 sps:$4 sm:$0xff]   ;;  %v5312_v58 = vld [vmem:[#allocation10 + $0x24] ss:$8 sps:$4 sm:$0xff]   ;;  %v5316_v30 = vld [vmem:[#allocation10 + $0x20] ss:$8 sps:$4 sm:$0xff]  }
 0x2c2   : > { %4068 = vmatpush1.bf16.msra.mxu1 %v5293_v2  ;;  %3956 = vmatprep.subr.bf16.mxu0 %v5294_v4  ;;  %v5311_v43 = vld [vmem:[#allocation10 + $0x130] ss:$8 sps:$4 sm:$0xff]   ;;  %v5314_v16 = vld [vmem:[#allocation10 + $0x124] ss:$8 sps:$4 sm:$0xff]   ;;  %v5317_v45 = vld [vmem:[#allocation10 + $0x120] ss:$8 sps:$4 sm:$0xff]  }
 0x2c3   : > { %4069 = vmatprep.subr.bf16.mxu1 %v5296_v35  ;;  %v5318_v40 = vld [vmem:[#allocation10 + $0x14] ss:$8 sps:$4 sm:$0xff]   ;;  %v5322_v37 = vld [vmem:[#allocation10 + $0x10] ss:$8 sps:$4 sm:$0xff]   ;;  %v5324_v46 = vld [vmem:[#allocation10 + $0x4] ss:$8 sps:$4 sm:$0xff]  }
 0x2c4   : > { %v5320_v11 = vld [vmem:[#allocation10 + $0x114] ss:$8 sps:$4 sm:$0xff]   ;;  %v5323_v8 = vld [vmem:[#allocation10 + $0x110] ss:$8 sps:$4 sm:$0xff]   ;;  %v5326_v41 = vld [vmem:[#allocation10 + $0x104] ss:$8 sps:$4 sm:$0xff]  }
 0x2c5   : > { %3957 = vmatpush1.bf16.msra.mxu0 %v5298_v9  ;;  %v5328_v49 = vld [vmem:[#allocation10] ss:$8 sps:$4 sm:$0xff]   ;;  %v5330_v22 = vld [vmem:[#allocation10 + $0xf4] ss:$8 sps:$4 sm:$0xff]   ;;  %v5334_v5 = vld [vmem:[#allocation10 + $0xf0] ss:$8 sps:$4 sm:$0xff]  }
 0x2c6   : > { %4070 = vmatpush1.bf16.msra.mxu1 %v5299_v21  ;;  %3958 = vmatprep.subr.bf16.mxu0 %v5300_v20  ;;  %v5329_v61 = vld [vmem:[#allocation10 + $0x100] ss:$8 sps:$4 sm:$0xff]   ;;  %v5332_v31 = vld [vmem:[#allocation10 + $0x1f4] ss:$8 sps:$4 sm:$0xff]   ;;  %v5335_v24 = vld [vmem:[#allocation10 + $0x1f0] ss:$8 sps:$4 sm:$0xff]  }
 0x2c7   : > { %4071 = vmatprep.subr.bf16.mxu1 %v5302_v26  ;;  %v5336_v55 = vld [vmem:[#allocation10 + $0xe4] ss:$8 sps:$4 sm:$0xff]   ;;  %v5340_v7 = vld [vmem:[#allocation10 + $0xe0] ss:$8 sps:$4 sm:$0xff]   ;;  %v5342_v53 = vld [vmem:[#allocation10 + $0xd4] ss:$8 sps:$4 sm:$0xff]  }
 0x2c8   : > { %v5338_v59 = vld [vmem:[#allocation10 + $0x1e4] ss:$8 sps:$4 sm:$0xff]   ;;  %v5341_v52 = vld [vmem:[#allocation10 + $0x1e0] ss:$8 sps:$4 sm:$0xff]   ;;  %v6925_v39 = vshrl.u32 %v3376_v57, 7  ;;  %v3313_v36 = vld [vmem:[#allocation2 + $0x18] sm:$0xff] }
 0x2c9   : > { %3959 = vmatpush1.bf16.msra.mxu0 %v5304_v34  ;;  %v5344_v23 = vld [vmem:[#allocation10 + $0x1d4] ss:$8 sps:$4 sm:$0xff]   ;;  %v5346_v56 = vld [vmem:[#allocation10 + $0xd0] ss:$8 sps:$4 sm:$0xff]   ;;  %v5348_v44 = vld [vmem:[#allocation10 + $0xc4] ss:$8 sps:$4 sm:$0xff]  }
 0x2ca   : > { %4072 = vmatpush1.bf16.msra.mxu1 %v5305_v32  ;;  %3960 = vmatprep.subr.bf16.mxu0 %v5306_v17  ;;  %v5347_v12 = vld [vmem:[#allocation10 + $0x1d0] ss:$8 sps:$4 sm:$0xff]   ;;  %v3382_v14 = vsub.s32 1, %v6925_v39  ;;  %v3390_v54 = vsub.s32 3, %v6925_v39  ;;  %v5350_v29 = vld [vmem:[#allocation10 + $0x1c4] ss:$8 sps:$4 sm:$0xff]  }
 0x2cb   : > { %4073 = vmatprep.subr.bf16.mxu1 %v5308_v25  ;;  %v3311_v27 = vld [vmem:[#allocation2 + $0x1b0] sm:$0xff]  ;;  %v3315_v10 = vld [vmem:[#allocation2 + $0x168] sm:$0xff]  ;;  %v3374_v15 = vld [vmem:[#allocation9] sm:$0xf]  ;;  %v6936_v6 = vsub.s32 0, %v6925_v39  ;;  %v3386_v3 = vsub.s32 2, %v6925_v39 }
 0x2cc   : > { %v5352_v19 = vld [vmem:[#allocation10 + $0xc0] ss:$8 sps:$4 sm:$0xff]   ;;  %v6931_v1 = vrot.slane %v3374_v15, %v3382_v14  ;;  %v6933_v50 = vrot.slane %v3374_v15, %v3390_v54  ;;  %v5354_v18 = vld [vmem:[#allocation10 + $0xb4] ss:$8 sps:$4 sm:$0xff]   ;;  %v5358_v33 = vld [vmem:[#allocation10 + $0xb0] ss:$8 sps:$4 sm:$0xff]  }
 0x2cd   : > { %3961 = vmatpush1.bf16.msra.mxu0 %v5310_v13  ;;  %v5353_v63 = vld [vmem:[#allocation10 + $0x1c0] ss:$8 sps:$4 sm:$0xff]   ;;  %v5356_v28 = vld [vmem:[#allocation10 + $0x1b4] ss:$8 sps:$4 sm:$0xff]   ;;  %v5359_v62 = vld [vmem:[#allocation10 + $0x1b0] ss:$8 sps:$4 sm:$0xff]   ;;  %v6944_v21 = vrot.slane %v3374_v15, %v6936_v6  ;;  %v6946_v25 = vrot.slane %v3374_v15, %v3386_v3 }
 0x2ce   : > { %4074 = vmatpush1.bf16.msra.mxu1 %v5311_v43  ;;  %3962 = vmatprep.subr.bf16.mxu0 %v5312_v58  ;;  %v3317_v42 = vld [vmem:[#allocation2 + $0x48] sm:$0xff]  ;;  %v3397_v38 = vadd.f32 %v6931_v1, %v3311_v27  ;;  %v3401_v47 = vadd.f32 %v6931_v1, %v3315_v10  ;;  %v3399_v51 = vadd.f32 %v6933_v50, %v3313_v36  ;;  %v3310_v32 = vld [vmem:[#allocation2 + $0xb0] sm:$0xff]  ;;  %v3312_v43 = vld [vmem:[#allocation2 + $0xd8] sm:$0xff] }
 0x2cf   : > { %4075 = vmatprep.subr.bf16.mxu1 %v5314_v16  ;;  %v3403_v60 = vadd.f32 %v6933_v50, %v3317_v42  ;;  %v5360_v35 = vld [vmem:[#allocation10 + $0xa4] ss:$8 sps:$4 sm:$0xff]   ;;  %v5364_v20 = vld [vmem:[#allocation10 + $0xa0] ss:$8 sps:$4 sm:$0xff]   ;;  %v5366_v16 = vld [vmem:[#allocation10 + $0x94] ss:$8 sps:$4 sm:$0xff]  }
 0x2d0   : > { %v3461_v0 = vmax.f32 %v3397_v38, 0.0  ;;  %v3465_v48 = vmax.f32 %v3401_v47, 0.0  ;;  %v3463_v2 = vmax.f32 %v3399_v51, 0.0  ;;  %v5362_v9 = vld [vmem:[#allocation10 + $0x1a4] ss:$8 sps:$4 sm:$0xff]   ;;  %v3322_v27 = vld [vmem:[#allocation2 + $0x120] sm:$0xff] }
 0x2d1   : > { %3963 = vmatpush1.bf16.msra.mxu0 %v5316_v30  ;;  %v3467_v4 = vmax.f32 %v3403_v60, 0.0  ;;  %v3314_v17 = vld [vmem:[#allocation2 + $0x50] sm:$0xff]  ;;  %v3320_v10 = vld [vmem:[#allocation2 + $0x118] sm:$0xff]  ;;  %v3331_v42 = vld [vmem:[#allocation2 + $0x1a8] sm:$0xff]  ;;  %v3408_v51 = vadd.f32 %v6944_v21, %v3322_v27 }
 0x2d2   : > { %4076 = vmatpush1.bf16.msra.mxu1 %v5317_v45  ;;  %3964 = vmatprep.subr.bf16.mxu0 %v5318_v40  ;;  %v3525_v26 = vpack.c.bf16 %v3465_v48, %v3461_v0  ;;  %v5365_v13 = vld [vmem:[#allocation10 + $0x1a0] ss:$8 sps:$4 sm:$0xff]   ;;  %v5368_v40 = vld [vmem:[#allocation10 + $0x194] ss:$8 sps:$4 sm:$0xff]   ;;  %v5372_v57 = vld [vmem:[#allocation10 + $0x84] ss:$8 sps:$4 sm:$0xff]   ;;  %v3406_v60 = vadd.f32 %v6946_v25, %v3320_v10  ;;  %v3417_v48 = vadd.f32 %v6931_v1, %v3331_v42 }
 0x2d3   : > { %4077 = vmatprep.subr.bf16.mxu1 %v5320_v11  ;;  %v3527_v34 = vpack.c.bf16 %v3467_v4, %v3463_v2  ;;  %v3316_v58 = vld [vmem:[#allocation2 + $0x130] sm:$0xff]  ;;  %v3396_v11 = vadd.f32 %v6944_v21, %v3310_v32  ;;  %v3333_v3 = vld [vmem:[#allocation2 + $0x28] sm:$0xff] }
 0x2d4   : > { %v3319_v30 = vld [vmem:[#allocation2 + $0x110] sm:$0xff]  ;;  %3984 = vmatprep.mubr.bf16.mxu0 %v3525_v26  ;;  %v3326_v26 = vld [vmem:[#allocation2 + $0xe0] sm:$0xff]  ;;  %v3470_v32 = vmax.f32 %v3406_v60, 0.0  ;;  %v3345_v42 = vld [vmem:[#allocation2 + $0xc8] sm:$0xff] }
 0x2d5   : > { %3965 = vmatpush1.bf16.msra.mxu0 %v5322_v37  ;;  %v3323_v45 = vld [vmem:[#allocation2 + $0x150] sm:$0xff]  ;;  %v3400_v37 = vadd.f32 %v6944_v21, %v3314_v17  ;;  %4097 = vmatprep.mubr.bf16.mxu1 %v3527_v34  ;;  %v3330_v34 = vld [vmem:[#allocation2 + $0x80] sm:$0xff] }
 0x2d6   : > { %4078 = vmatpush1.bf16.msra.mxu1 %v5323_v8  ;;  %3966 = vmatprep.subr.bf16.mxu0 %v5324_v46  ;;  %v3321_v8 = vld [vmem:[#allocation2 + $0x98] sm:$0xff]  ;;  %v3325_v46 = vld [vmem:[#allocation2 + $0x60] sm:$0xff] }
 0x2d7   : > { %4079 = vmatprep.subr.bf16.mxu1 %v5326_v41  ;;  %v3398_v41 = vadd.f32 %v6946_v25, %v3312_v43  ;;  %v3481_v43 = vmax.f32 %v3417_v48, 0.0 }
 0x2d9   : > { %3967 = vmatpush1.bf16.msra.mxu0 %v5328_v49  ;;  %v3402_v49 = vadd.f32 %v6946_v25, %v3316_v58  ;;  %v3328_v58 = vld [vmem:[#allocation2 + $0x138] sm:$0xff] }
 0x2da   : > { %4080 = vmatpush1.bf16.msra.mxu1 %v5329_v61  ;;  %3968 = vmatprep.subr.bf16.mxu0 %v5330_v22  ;;  %v3405_v61 = vadd.f32 %v6931_v1, %v3319_v30  ;;  %v3409_v22 = vadd.f32 %v6931_v1, %v3323_v45 }
 0x2db   : > { %4081 = vmatprep.subr.bf16.mxu1 %v5332_v31  ;;  %v5370_v31 = vld [vmem:[#allocation10 + $0x90] ss:$8 sps:$4 sm:$0xff]  }
 0x2dc   : > { %v3473_v54 = vmax.f32 %v3409_v22, 0.0 }
 0x2dd   : > { %3969 = vmatpush2.bf16.msra.mxu0 %v5334_v5  ;;  %v5371_v5 = vld [vmem:[#allocation10 + $0x190] ss:$8 sps:$4 sm:$0xff]  }
 0x2de   : > { %4082 = vmatpush2.bf16.msra.mxu1 %v5335_v24  ;;  %3970 = vmatprep.subr.bf16.mxu0 %v5336_v55  ;;  %v3407_v24 = vadd.f32 %v6933_v50, %v3321_v8  ;;  %v3411_v55 = vadd.f32 %v6933_v50, %v3325_v46  ;;  %v3341_v8 = vld [vmem:[#allocation2 + $0x8] sm:$0xff]  ;;  %v3412_v46 = vadd.f32 %v6944_v21, %v3326_v26  ;;  %v3346_v26 = vld [vmem:[#allocation2 + $0x40] sm:$0xff] }
 0x2df   : > { %4083 = vmatprep.subr.bf16.mxu1 %v5338_v59  ;;  %v5374_v59 = vld [vmem:[#allocation10 + $0x184] ss:$8 sps:$4 sm:$0xff]  }
 0x2e0   : > { %v3471_v15 = vmax.f32 %v3407_v24, 0.0  ;;  %v3475_v36 = vmax.f32 %v3411_v55, 0.0 }
 0x2e1   : > { %3971 = vmatpush2.bf16.msra.mxu0 %v5340_v7  ;;  %v3460_v7 = vmax.f32 %v3396_v11, 0.0  ;;  %v3339_v11 = vld [vmem:[#allocation2] sm:$0xff] }
 0x2e2   : > { %4084 = vmatpush2.bf16.msra.mxu1 %v5341_v52  ;;  %3972 = vmatprep.subr.bf16.mxu0 %v5342_v53  ;;  %v3464_v52 = vmax.f32 %v3400_v37, 0.0  ;;  %v5376_v53 = vld [vmem:[#allocation10 + $0x80] ss:$8 sps:$4 sm:$0xff]   ;;  %v3531_v2 = vpack.c.bf16 %v3475_v36, %v3471_v15 }
 0x2e3   : > { %4085 = vmatprep.subr.bf16.mxu1 %v5344_v23  ;;  %v5377_v23 = vld [vmem:[#allocation10 + $0x180] ss:$8 sps:$4 sm:$0xff]  }
 0x2e4   : > { %v3337_v37 = vld [vmem:[#allocation2 + $0x30] sm:$0xff] }
 0x2e5   : > { %3973 = vmatpush2.bf16.msra.mxu0 %v5346_v56  ;;  %v3462_v56 = vmax.f32 %v3398_v41, 0.0  ;;  %v3416_v41 = vadd.f32 %v6944_v21, %v3330_v34 }
 0x2e6   : > { %4086 = vmatpush2.bf16.msra.mxu1 %v5347_v12  ;;  %3974 = vmatprep.subr.bf16.mxu0 %v5348_v44  ;;  %v3466_v12 = vmax.f32 %v3402_v49, 0.0  ;;  %v3469_v44 = vmax.f32 %v3405_v61, 0.0  ;;  %v3414_v49 = vadd.f32 %v6946_v25, %v3328_v58  ;;  %v3348_v58 = vld [vmem:[#allocation2 + $0x20] sm:$0xff] }
 0x2e7   : > { %4087 = vmatprep.subr.bf16.mxu1 %v5350_v29  ;;  %v3318_v29 = vld [vmem:[#allocation2 + $0x180] sm:$0xff] }
 0x2e8   : > { %v3526_v38 = vpack.c.bf16 %v3466_v12, %v3462_v56  ;;  %v3404_v47 = vadd.f32 %v6944_v21, %v3318_v29  ;;  %v3334_v12 = vld [vmem:[#allocation2 + $0x1e8] sm:$0xff]  ;;  %v3340_v29 = vld [vmem:[#allocation2 + $0xf0] sm:$0xff] }
 0x2e9   : > { %3975 = vmatpush2.bf16.msra.mxu0 %v5352_v19  ;;  %v3324_v19 = vld [vmem:[#allocation2 + $0x108] sm:$0xff]  ;;  %v3426_v60 = vadd.f32 %v6946_v25, %v3340_v29 }
 0x2ea   : > { %4088 = vmatpush2.bf16.msra.mxu1 %v5353_v63  ;;  %3976 = vmatprep.subr.bf16.mxu0 %v5354_v18  ;;  %v3327_v63 = vld [vmem:[#allocation2 + $0x188] sm:$0xff]  ;;  %v3524_v18 = vpack.c.bf16 %v3464_v52, %v3460_v7  ;;  %v3427_v7 = vadd.f32 %v6933_v50, %v3341_v8  ;;  %v3476_v52 = vmax.f32 %v3412_v46, 0.0  ;;  %v3432_v46 = vadd.f32 %v6944_v21, %v3346_v26 }
 0x2eb   : > { %4089 = vmatprep.subr.bf16.mxu1 %v5356_v28  ;;  %v3329_v28 = vld [vmem:[#allocation2 + $0x140] sm:$0xff]  ;;  %v3413_v0 = vadd.f32 %v6931_v1, %v3327_v63  ;;  %v3347_v63 = vld [vmem:[#allocation2 + $0x1f8] sm:$0xff] }
 0x2ec   : > { %v3415_v4 = vadd.f32 %v6933_v50, %v3329_v28  ;;  %v3491_v36 = vmax.f32 %v3427_v7, 0.0 }
 0x2ed   : > { %3977 = vmatpush2.bf16.msra.mxu0 %v5358_v33  ;;  %v3529_v33 = vpack.c.bf16 %v3473_v54, %v3469_v44  ;;  %v3338_v44 = vld [vmem:[#allocation2 + $0x1e0] sm:$0xff] }
 0x2ee   : > { %4090 = vmatpush2.bf16.msra.mxu1 %v5359_v62  ;;  %3978 = vmatprep.subr.bf16.mxu0 %v5360_v35  ;;  %v3410_v62 = vadd.f32 %v6946_v25, %v3324_v19  ;;  %v3419_v35 = vadd.f32 %v6933_v50, %v3333_v3  ;;  %v3479_v30 = vmax.f32 %v3415_v4, 0.0  ;;  %v3336_v54 = vld [vmem:[#allocation2 + $0x160] sm:$0xff]  ;;  %v3343_v19 = vld [vmem:[#allocation2 + $0x1d0] sm:$0xff] }
 0x2ef   : > { %4091 = vmatprep.subr.bf16.mxu1 %v5362_v9  ;;  %v3468_v9 = vmax.f32 %v3404_v47, 0.0  ;;  %v3424_v47 = vadd.f32 %v6944_v21, %v3338_v44  ;;  %v3352_v44 = vld [vmem:[#allocation2 + $0xe8] sm:$0xff] }
 0x2f0   : > { %v3474_v17 = vmax.f32 %v3410_v62, 0.0  ;;  %v3483_v45 = vmax.f32 %v3419_v35, 0.0  ;;  %v3433_v62 = vadd.f32 %v6931_v1, %v3347_v63  ;;  %v3361_v63 = vld [vmem:[#allocation2 + $0x1c8] sm:$0xff] }
 0x2f1   : > { %3979 = vmatpush2.bf16.msra.mxu0 %v5364_v20  ;;  %v3472_v20 = vmax.f32 %v3408_v51, 0.0  ;;  %v3422_v51 = vadd.f32 %v6946_v25, %v3336_v54  ;;  %v3356_v54 = vld [vmem:[#allocation2 + $0x1d8] sm:$0xff] }
 0x2f2   : > { %4092 = vmatpush2.bf16.msra.mxu1 %v5365_v13  ;;  %3980 = vmatprep.subr.bf16.mxu0 %v5366_v16  ;;  %v3477_v13 = vmax.f32 %v3413_v0, 0.0  ;;  %v3332_v16 = vld [vmem:[#allocation2 + $0x1b8] sm:$0xff]  ;;  %v3535_v55 = vpack.c.bf16 %v3483_v45, %v3479_v30  ;;  %v3351_v45 = vld [vmem:[#allocation2 + $0x1f0] sm:$0xff] }
 0x2f3   : > { %4093 = vmatprep.subr.bf16.mxu1 %v5368_v40  ;;  %v3335_v40 = vld [vmem:[#allocation2 + $0xf8] sm:$0xff]  ;;  %v3418_v61 = vadd.f32 %v6946_v25, %v3332_v16  ;;  %v3528_v22 = vpack.c.bf16 %v3472_v20, %v3468_v9  ;;  %v3488_v9 = vmax.f32 %v3424_v47, 0.0  ;;  %v3342_v20 = vld [vmem:[#allocation2 + $0x148] sm:$0xff]  ;;  %v3486_v34 = vmax.f32 %v3422_v51, 0.0 }
 0x2f4   : > { %v3421_v24 = vadd.f32 %v6931_v1, %v3335_v40  ;;  %v3355_v40 = vld [vmem:[#allocation2 + $0x90] sm:$0xff]  ;;  %v3428_v8 = vadd.f32 %v6944_v21, %v3342_v20  ;;  %v3438_v47 = vadd.f32 %v6946_v25, %v3352_v44  ;;  %v3442_v51 = vadd.f32 %v6946_v25, %v3356_v54 }
 0x2f5   : > { %3981 = vmatpush2.bf16.msra.mxu0 %v5370_v31  ;;  %v3530_v31 = vpack.c.bf16 %v3474_v17, %v3470_v32  ;;  %v3482_v56 = vmax.f32 %v3418_v61, 0.0  ;;  %v3490_v32 = vmax.f32 %v3426_v60, 0.0  ;;  %v3362_v20 = vld [vmem:[#allocation2 + $0x170] sm:$0xff] }
 0x2f6   : > { %4094 = vmatpush2.bf16.msra.mxu1 %v5371_v5  ;;  %3982 = vmatprep.subr.bf16.mxu0 %v5372_v57  ;;  %v3533_v5 = vpack.c.bf16 %v3481_v43, %v3477_v13  ;;  %v3425_v57 = vadd.f32 %v6931_v1, %v3339_v11  ;;  %v3485_v27 = vmax.f32 %v3421_v24, 0.0  ;;  %v3497_v13 = vmax.f32 %v3433_v62, 0.0  ;;  %v3344_v43 = vld [vmem:[#allocation2 + $0x100] sm:$0xff]  ;;  %v3353_v11 = vld [vmem:[#allocation2 + $0x78] sm:$0xff] }
 0x2f7   : > { %4095 = vmatprep.subr.bf16.mxu1 %v5374_v59  ;;  %v3423_v59 = vadd.f32 %v6933_v50, %v3337_v37  ;;  %v3357_v37 = vld [vmem:[#allocation2 + $0xd0] sm:$0xff]  ;;  %v3492_v7 = vmax.f32 %v3428_v8, 0.0  ;;  %v3502_v26 = vmax.f32 %v3438_v47, 0.0  ;;  %v3448_v8 = vadd.f32 %v6944_v21, %v3362_v20 }
 0x2f8   : > { %v3489_v10 = vmax.f32 %v3425_v57, 0.0  ;;  %v3439_v57 = vadd.f32 %v6933_v50, %v3353_v11  ;;  %v3373_v11 = vld [vmem:[#allocation2 + $0xa0] sm:$0xff] }
 0x2f9   : > { %3983 = vmatpush2.bf16.msra.mxu0 %v5376_v53  ;;  %v3480_v53 = vmax.f32 %v3416_v41, 0.0  ;;  %v3487_v15 = vmax.f32 %v3423_v59, 0.0  ;;  %v3430_v41 = vadd.f32 %v6946_v25, %v3344_v43  ;;  %v3443_v59 = vadd.f32 %v6933_v50, %v3357_v37  ;;  %v3364_v43 = vld [vmem:[#allocation2 + $0x68] sm:$0xff] }
 0x2fa   : > { %4096 = vmatpush2.bf16.msra.mxu1 %v5377_v23  ;;  %v3478_v23 = vmax.f32 %v3414_v49, 0.0  ;;  %v3537_v0 = vpack.c.bf16 %v3489_v10, %v3485_v27  ;;  %v3434_v49 = vadd.f32 %v6946_v25, %v3348_v58  ;;  %v3503_v10 = vmax.f32 %v3439_v57, 0.0 }
 0x2fb   : > { %v3532_v28 = vpack.c.bf16 %v3480_v53, %v3476_v52  ;;  %v3539_v48 = vpack.c.bf16 %v3491_v36, %v3487_v15  ;;  %v3496_v52 = vmax.f32 %v3432_v46, 0.0  ;;  %v3494_v53 = vmax.f32 %v3430_v41, 0.0  ;;  %v3359_v36 = vld [vmem:[#allocation2 + $0x88] sm:$0xff] }
 0x2fc   : > { %3985 = vmatmul.mubr.bf16.vlgmr.msra.gmra.mxu0 %v3524_v18  ;;  %v3349_v18 = vld [vmem:[#allocation2 + $0x128] sm:$0xff]  ;;  %v3534_v3 = vpack.c.bf16 %v3482_v56, %v3478_v23  ;;  %v3498_v23 = vmax.f32 %v3434_v49, 0.0  ;;  %v3350_v56 = vld [vmem:[#allocation2 + $0x1a0] sm:$0xff]  ;;  %v3507_v15 = vmax.f32 %v3443_v59, 0.0  ;;  %v3445_v60 = vadd.f32 %v6931_v1, %v3359_v36 }
 0x2fd   : > { %4098 = vmatmul.mubr.bf16.vlgmr.msra.gmra.mxu1 %v3526_v38  ;;  %3994 = vmatprep.mubr.bf16.mxu0 %v3529_v33  ;;  %v3420_v38 = vadd.f32 %v6944_v21, %v3334_v12  ;;  %v3429_v33 = vadd.f32 %v6931_v1, %v3343_v19  ;;  %v3435_v4 = vadd.f32 %v6933_v50, %v3349_v18  ;;  %v3354_v12 = vld [vmem:[#allocation2 + $0x70] sm:$0xff]  ;;  %v3363_v19 = vld [vmem:[#allocation2 + $0x178] sm:$0xff] }
 0x2fe   : > { %4107 = vmatprep.mubr.bf16.mxu1 %v3531_v2  ;;  %v3431_v2 = vadd.f32 %v6933_v50, %v3345_v42  ;;  %v3365_v42 = vld [vmem:[#allocation2 + $0x190] sm:$0xff]  ;;  %v3540_v18 = vpack.c.bf16 %v3496_v52, %v3492_v7  ;;  %v3450_v41 = vadd.f32 %v6946_v25, %v3364_v43  ;;  %v3459_v57 = vadd.f32 %v6933_v50, %v3373_v11 }
 0x2ff   : > { %v3484_v35 = vmax.f32 %v3420_v38, 0.0  ;;  %v3493_v17 = vmax.f32 %v3429_v33, 0.0  ;;  %v3499_v30 = vmax.f32 %v3435_v4, 0.0  ;;  %v3440_v38 = vadd.f32 %v6944_v21, %v3354_v12 }
 0x300   : > { %v3495_v16 = vmax.f32 %v3431_v2, 0.0  ;;  %v3449_v33 = vadd.f32 %v6931_v1, %v3363_v19  ;;  %v3451_v2 = vadd.f32 %v6933_v50, %v3365_v42  ;;  %v3512_v7 = vmax.f32 %v3448_v8, 0.0  ;;  %v4227_v8 = vld [vmem:[#allocation3] sm:$0x1] }
 0x301   : > { %v3536_v61 = vpack.c.bf16 %v3488_v9, %v3484_v35  ;;  %v3504_v35 = vmax.f32 %v3440_v38, 0.0  ;;  %v3358_v9 = vld [vmem:[#allocation2 + $0xb8] sm:$0xff] }
 0x302   : > { %v3543_v24 = vpack.c.bf16 %v3499_v30, %v3495_v16  ;;  %v3515_v16 = vmax.f32 %v3451_v2, 0.0  ;;  %v3367_v30 = vld [vmem:[#allocation2 + $0x38] sm:$0xff]  ;;  %v3444_v37 = vadd.f32 %v6944_v21, %v3358_v9 }
 0x304   : > { %3995 = vmatmul.mubr.bf16.gmra.mxu0 %v3528_v22  ;;  %v3538_v22 = vpack.c.bf16 %v3490_v32, %v3486_v34  ;;  %v3506_v34 = vmax.f32 %v3442_v51, 0.0  ;;  %v3509_v32 = vmax.f32 %v3445_v60, 0.0  ;;  %v3508_v59 = vmax.f32 %v3444_v37, 0.0 }
 0x305   : > { %4108 = vmatmul.mubr.bf16.gmra.mxu1 %v3530_v31  ;;  %4004 = vmatprep.mubr.bf16.mxu0 %v3533_v5  ;;  %v3541_v31 = vpack.c.bf16 %v3497_v13, %v3493_v17  ;;  %v3437_v5 = vadd.f32 %v6931_v1, %v3351_v45  ;;  %v3513_v17 = vmax.f32 %v3449_v33, 0.0  ;;  %v3360_v13 = vld [vmem:[#allocation2 + $0xa8] sm:$0xff]  ;;  %v3371_v45 = vld [vmem:[#allocation2 + $0x10] sm:$0xff]  ;;  %v3620_v33 = vld [vmem:[#allocation12] sm:$0x3] }
 0x306   : > { %4117 = vmatprep.mubr.bf16.mxu1 %v3535_v55  ;;  %v3441_v55 = vadd.f32 %v6931_v1, %v3355_v40  ;;  %v3369_v40 = vld [vmem:[#allocation2 + $0x1c0] sm:$0xff]  ;;  %v3446_v46 = vadd.f32 %v6946_v25, %v3360_v13 }
 0x307   : > { %v3501_v29 = vmax.f32 %v3437_v5, 0.0 }
 0x308   : > { %v3505_v27 = vmax.f32 %v3441_v55, 0.0  ;;  %v3455_v55 = vadd.f32 %v6933_v50, %v3369_v40  ;;  %v3510_v52 = vmax.f32 %v3446_v46, 0.0 }
 0x30a   : > { %v3545_v62 = vpack.c.bf16 %v3505_v27, %v3501_v29  ;;  %v3519_v54 = vmax.f32 %v3455_v55, 0.0  ;;  %v3523_v29 = vmax.f32 %v3459_v57, 0.0  ;;  %v3368_v27 = vld [vmem:[#allocation2 + $0xc0] sm:$0xff] }
 0x30b   : > { %v3454_v19 = vadd.f32 %v6946_v25, %v3368_v27 }
 0x30c   : > { %4005 = vmatmul.mubr.bf16.gmra.mxu0 %v3532_v28  ;;  %v3542_v28 = vpack.c.bf16 %v3498_v23, %v3494_v53  ;;  %v3514_v53 = vmax.f32 %v3450_v41, 0.0  ;;  %v3366_v23 = vld [vmem:[#allocation2 + $0x198] sm:$0xff] }
 0x30d   : > { %4118 = vmatmul.mubr.bf16.gmra.mxu1 %v3534_v3  ;;  %4014 = vmatprep.mubr.bf16.mxu0 %v3537_v0  ;;  %v3436_v3 = vadd.f32 %v6944_v21, %v3350_v56  ;;  %v3547_v0 = vpack.c.bf16 %v3507_v15, %v3503_v10  ;;  %v3370_v56 = vld [vmem:[#allocation2 + $0x158] sm:$0xff]  ;;  %v3548_v10 = vpack.c.bf16 %v3512_v7, %v3508_v59  ;;  %v3518_v38 = vmax.f32 %v3454_v19, 0.0 }
 0x30e   : > { %4127 = vmatprep.mubr.bf16.mxu1 %v3539_v48  ;;  %v3447_v48 = vadd.f32 %v6933_v50, %v3361_v63  ;;  %v3550_v15 = vpack.c.bf16 %v3514_v53, %v3510_v52  ;;  %v3452_v50 = vadd.f32 %v6944_v21, %v3366_v23  ;;  %v3456_v36 = vadd.f32 %v6944_v21, %v3370_v56 }
 0x30f   : > { %v3500_v4 = vmax.f32 %v3436_v3, 0.0  ;;  %v7009_v21 = vrot.slane %v3620_v33, %v6936_v6 }
 0x310   : > { %v3511_v58 = vmax.f32 %v3447_v48, 0.0  ;;  %v3520_v3 = vmax.f32 %v3456_v36, 0.0 }
 0x311   : > { %v3544_v49 = vpack.c.bf16 %v3504_v35, %v3500_v4  ;;  %v7015_v4 = vld.sshfl [vmem:[#allocation13] sm:$0x11 pattern:$0x75316420] }
 0x312   : > { %v3551_v5 = vpack.c.bf16 %v3515_v16, %v3511_v58  ;;  %v4245_v20 = vcombine.high %v7015_v4, %v7015_v4 }
 0x314   : > { %4015 = vmatmul.mubr.bf16.gmra.mxu0 %v3536_v61  ;;  %v3546_v61 = vpack.c.bf16 %v3506_v34, %v3502_v26 }
 0x315   : > { %4128 = vmatmul.mubr.bf16.gmra.mxu1 %v3538_v22  ;;  %4024 = vmatprep.mubr.bf16.mxu0 %v3541_v31  ;;  %v3549_v22 = vpack.c.bf16 %v3513_v17, %v3509_v32  ;;  %v3453_v31 = vadd.f32 %v6931_v1, %v3367_v30 }
 0x316   : > { %4137 = vmatprep.mubr.bf16.mxu1 %v3543_v24  ;;  %v3457_v24 = vadd.f32 %v6931_v1, %v3371_v45  ;;  %v3372_v1 = vld [vmem:[#allocation2 + $0x58] sm:$0xff] }
 0x317   : > { %v3517_v12 = vmax.f32 %v3453_v31, 0.0  ;;  %v3458_v63 = vadd.f32 %v6946_v25, %v3372_v1 }
 0x318   : > { %v3521_v44 = vmax.f32 %v3457_v24, 0.0 }
 0x319   : > { %v3522_v47 = vmax.f32 %v3458_v63, 0.0 }
 0x31a   : > { %v3553_v42 = vpack.c.bf16 %v3521_v44, %v3517_v12 }
 0x31b   : > { %v3554_v60 = vpack.c.bf16 %v3522_v47, %v3518_v38 }
 0x31c   : > { %4025 = vmatmul.mubr.bf16.gmra.mxu0 %v3540_v18  ;;  %v3555_v18 = vpack.c.bf16 %v3523_v29, %v3519_v54 }
 0x31d   : > { %4138 = vmatmul.mubr.bf16.gmra.mxu1 %v3542_v28  ;;  %4034 = vmatprep.mubr.bf16.mxu0 %v3545_v62  ;;  %v3516_v28 = vmax.f32 %v3452_v50, 0.0  ;;  %v5640_v62 = vmov 1966171168  }
 0x31e   : > { %4147 = vmatprep.mubr.bf16.mxu1 %v3547_v0  ;;  %v4247_v25 = vunpack.c.l.s4 %v5640_v62  ;;  %v7013_v0 = vrot.slane %v3620_v33, %v3382_v14 }
 0x31f   : > { %v3552_v51 = vpack.c.bf16 %v3520_v3, %v3516_v28 }
 0x320   : > { %v4248_v35 = vunpack.c.0.s8 %v4247_v25 }
 0x322   : > { %v7021_v32 = vsub.s32 %v4248_v35, %v6925_v39 }
 0x324   : > { %4035 = vmatmul.mubr.bf16.gmra.mxu0 %v3544_v49  ;;  %v4252_v58 = vrot.slane %v7015_v4, %v7021_v32  ;;  %v4259_v16 = vrot.slane %v4245_v20, %v7021_v32  ;;  %v5641_v49 = vmov 0  }
 0x325   : > { %4148 = vmatmul.mubr.bf16.gmra.mxu1 %v3546_v61  ;;  %4044 = vmatprep.mubr.bf16.mxu0 %v3549_v22 }
 0x326   : > { %4157 = vmatprep.mubr.bf16.mxu1 %v3551_v5  ;;  %5281 = vset.pattern.permute.xlu0 %v5641_v49 }
 0x327   : > { %4230 = vperm.xlu0 %5281, %v4227_v8  }
 0x32c   : > { %4045 = vmatmul.mubr.bf16.gmra.mxu0 %v3548_v10 }
 0x32d   : > { %4158 = vmatmul.mubr.bf16.gmra.mxu1 %v3550_v15  ;;  %4054 = vmatprep.mubr.bf16.mxu0 %v3553_v42 }
 0x32e   : > { %4167 = vmatprep.mubr.bf16.mxu1 %v3555_v18 }
 0x334   : > { %4055 = vmatmul.mubr.bf16.gmra.mxu0 %v3552_v51 }
 0x335   : > { %4168 = vmatmul.mubr.bf16.gmra.mxu1 %v3554_v60  ;;  %4294 = vmatprep.mubr.bf16.mxu0 %v4259_v16 }
 0x3bc   : > { %v3986_v48 = vpop.f32.mrf.mxu0 }
 0x3bd   : > { %v4099_v2 = vpop.f32.mrf.mxu1  ;;  %v3987_v9 = vadd.f32 %v3986_v48, %v7009_v21 }
 0x3be   : > { %v3988_v26 = vpop.f32.mrf.mxu0 }
 0x3bf   : > { %v4101_v34 = vpop.f32.mrf.mxu1  ;;  %v4100_v17 = vadd.f32 %v4099_v2, %v3987_v9  ;;  %v3989_v13 = vadd.f32 %v3988_v26, %v7013_v0 }
 0x3c0   : > { %v3990_v14 = vpop.f32.mrf.mxu0 }
 0x3c1   : > { %v4103_v43 = vpop.f32.mrf.mxu1  ;;  %v4102_v30 = vadd.f32 %v4101_v34, %v3989_v13  ;;  %v3991_v45 = vadd.f32 %v3990_v14, %v7009_v21  ;;  %v4178_v61 = vmax.f32 %v4100_v17, 0.0 }
 0x3c2   : > { %v3992_v40 = vpop.f32.mrf.mxu0 }
 0x3c3   : > { %v4105_v11 = vpop.f32.mrf.mxu1  ;;  %v4104_v37 = vadd.f32 %v4103_v43, %v3991_v45  ;;  %v3993_v39 = vadd.f32 %v3992_v40, %v7013_v0  ;;  %v4179_v24 = vmax.f32 %v4102_v30, 0.0 }
 0x3c4   : > { %v3996_v46 = vpop.f32.mrf.mxu0 }
 0x3c5   : > { %v4109_v41 = vpop.f32.mrf.mxu1  ;;  %v4180_v22 = vmax.f32 %v4104_v37, 0.0  ;;  %v4106_v31 = vadd.f32 %v4105_v11, %v3993_v39  ;;  %v3997_v5 = vadd.f32 %v3996_v46, %v7009_v21 }
 0x3c6   : > { %v3998_v55 = vpop.f32.mrf.mxu0 }
 0x3c7   : > { %v4111_v57 = vpop.f32.mrf.mxu1  ;;  %v7030_v59 = vpack.c.bf16 %v4180_v22, %v4178_v61  ;;  %v4181_v7 = vmax.f32 %v4106_v31, 0.0  ;;  %v4110_v52 = vadd.f32 %v4109_v41, %v3997_v5  ;;  %v3999_v53 = vadd.f32 %v3998_v55, %v7013_v0 }
 0x3c8   : > { %v4000_v23 = vpop.f32.mrf.mxu0 }
 0x3c9   : > { %v4113_v56 = vpop.f32.mrf.mxu1  ;;  %v7033_v12 = vpack.c.bf16 %v4181_v7, %v4179_v24  ;;  %v4112_v44 = vadd.f32 %v4111_v57, %v3999_v53  ;;  %v4001_v54 = vadd.f32 %v4000_v23, %v7009_v21  ;;  %v4182_v36 = vmax.f32 %v4110_v52, 0.0 }
 0x3ca   : > { %v4002_v29 = vpop.f32.mrf.mxu0 }
 0x3cb   : > { %v4115_v27 = vpop.f32.mrf.mxu1  ;;  %v4114_v1 = vadd.f32 %v4113_v56, %v4001_v54  ;;  %v4003_v10 = vadd.f32 %v4002_v29, %v7013_v0  ;;  %v4183_v18 = vmax.f32 %v4112_v44, 0.0 }
 0x3cc   : > { %v4006_v15 = vpop.f32.mrf.mxu0 }
 0x3cd   : > { %v4119_v50 = vpop.f32.mrf.mxu1  ;;  %v4184_v19 = vmax.f32 %v4114_v1, 0.0  ;;  %v4116_v63 = vadd.f32 %v4115_v27, %v4003_v10  ;;  %v4007_v42 = vadd.f32 %v4006_v15, %v7009_v21 }
 0x3ce   : > { %v4008_v28 = vpop.f32.mrf.mxu0 }
 0x3cf   : > { %v4121_v3 = vpop.f32.mrf.mxu1  ;;  %v7038_v38 = vpack.c.bf16 %v4184_v19, %v4182_v36  ;;  %v4185_v47 = vmax.f32 %v4116_v63, 0.0  ;;  %v4120_v51 = vadd.f32 %v4119_v50, %v4007_v42  ;;  %v4009_v60 = vadd.f32 %v4008_v28, %v7013_v0 }
 0x3d0   : > { %v4010_v33 = vpop.f32.mrf.mxu0 }
 0x3d1   : > { %v4123_v62 = vpop.f32.mrf.mxu1  ;;  %v7041_v25 = vpack.c.bf16 %v4185_v47, %v4183_v18  ;;  %v4122_v48 = vadd.f32 %v4121_v3, %v4009_v60  ;;  %v4011_v2 = vadd.f32 %v4010_v33, %v7009_v21  ;;  %v4186_v13 = vmax.f32 %v4120_v51, 0.0 }
 0x3d2   : > { %v4012_v35 = vpop.f32.mrf.mxu0 }
 0x3d3   : > { %v4125_v9 = vpop.f32.mrf.mxu1  ;;  %v4124_v20 = vadd.f32 %v4123_v62, %v4011_v2  ;;  %v4013_v26 = vadd.f32 %v4012_v35, %v7013_v0  ;;  %v4187_v40 = vmax.f32 %v4122_v48, 0.0 }
 0x3d4   : > { %v4016_v34 = vpop.f32.mrf.mxu0 }
 0x3d5   : > { %v4129_v17 = vpop.f32.mrf.mxu1  ;;  %v4188_v14 = vmax.f32 %v4124_v20, 0.0  ;;  %v4126_v43 = vadd.f32 %v4125_v9, %v4013_v26  ;;  %v4017_v16 = vadd.f32 %v4016_v34, %v7009_v21 }
 0x3d6   : > { %v7046_v30 = vpop.f32.mrf.mxu0 }
 0x3d7   : > { %v7048_v45 = vpop.f32.mrf.mxu1  ;;  %v7050_v11 = vpack.c.bf16 %v4188_v14, %v4186_v13  ;;  %v4189_v37 = vmax.f32 %v4126_v43, 0.0  ;;  %v4130_v39 = vadd.f32 %v4129_v17, %v4017_v16 }
 0x3d8   : > { %v4020_v8 = vpop.f32.mrf.mxu0 }
 0x3d9   : > { %v4133_v46 = vpop.f32.mrf.mxu1  ;;  %v7052_v41 = vpack.c.bf16 %v4189_v37, %v4187_v40  ;;  %v4021_v49 = vadd.f32 %v4020_v8, %v7009_v21  ;;  %v4190_v55 = vmax.f32 %v4130_v39, 0.0 }
 0x3da   : > { %v7055_v61 = vpop.f32.mrf.mxu0 }
 0x3db   : > { %v7057_v22 = vpop.f32.mrf.mxu1  ;;  %v4134_v31 = vadd.f32 %v4133_v46, %v4021_v49 }
 0x3dc   : > { %v7059_v5 = vpop.f32.mrf.mxu0 }
 0x3dd   : > { %v7061_v24 = vpop.f32.mrf.mxu1  ;;  %v4192_v57 = vmax.f32 %v4134_v31, 0.0 }
 0x3de   : > { %v7063_v7 = vpop.f32.mrf.mxu0 }
 0x3df   : > { %v7065_v52 = vpop.f32.mrf.mxu1  ;;  %v7067_v53 = vpack.c.bf16 %v4192_v57, %v4190_v55 }
 0x3e0   : > { %v7069_v23 = vpop.f32.mrf.mxu0 }
 0x3e1   : > { %v7071_v56 = vpop.f32.mrf.mxu1 }
 0x3e2   : > { %v4032_v44 = vpop.f32.mrf.mxu0 }
 0x3e3   : > { %v7073_v54 = vpop.f32.mrf.mxu1 }
 0x3e4   : > { %v4036_v29 = vpop.f32.mrf.mxu0 }
 0x3e5   : > { %v7075_v27 = vpop.f32.mrf.mxu1 }
 0x3e6   : > { %v4038_v1 = vpop.f32.mrf.mxu0 }
 0x3e7   : > { %v4151_v10 = vpop.f32.mrf.mxu1 }
 0x3e8   : > { %v4040_v15 = vpop.f32.mrf.mxu0 }
 0x3e9   : > { %v4153_v50 = vpop.f32.mrf.mxu1 }
 0x3ea   : > { %v4042_v36 = vpop.f32.mrf.mxu0 }
 0x3eb   : > { %v4155_v19 = vpop.f32.mrf.mxu1  ;;  %v4043_v57 = vadd.f32 %v4042_v36, %v7013_v0  ;;  %v4041_v36 = vadd.f32 %v4040_v15, %v7009_v21 }
 0x3ec   : > { %v4046_v63 = vpop.f32.mrf.mxu0 }
 0x3ed   : > { %v4159_v42 = vpop.f32.mrf.mxu1 }
 0x3ee   : > { %v4048_v18 = vpop.f32.mrf.mxu0 }
 0x3ef   : > { %v4161_v28 = vpop.f32.mrf.mxu1  ;;  %v4049_v17 = vadd.f32 %v4048_v18, %v7013_v0 }
 0x3f0   : > { %v4050_v3 = vpop.f32.mrf.mxu0 }
 0x3f1   : > { %v4163_v47 = vpop.f32.mrf.mxu1  ;;  %v4162_v46 = vadd.f32 %v4161_v28, %v4049_v17  ;;  %v4051_v31 = vadd.f32 %v4050_v3, %v7009_v21 }
 0x3f2   : > { %v4052_v51 = vpop.f32.mrf.mxu0 }
 0x3f3   : > { %v4165_v60 = vpop.f32.mrf.mxu1  ;;  %v4053_v35 = vadd.f32 %v4052_v51, %v7013_v0 }
 0x3f4   : > { %v4056_v33 = vpop.f32.mrf.mxu0 }
 0x3f5   : > { %v4169_v62 = vpop.f32.mrf.mxu1  ;;  %v4057_v20 = vadd.f32 %v4056_v33, %v7009_v21  ;;  %v4166_v43 = vadd.f32 %v4165_v60, %v4053_v35  ;;  %v4039_v60 = vadd.f32 %v4038_v1, %v7013_v0 }
 0x3f6   : > { %v4058_v48 = vpop.f32.mrf.mxu0 }
 0x3f7   : > { %v4171_v2 = vpop.f32.mrf.mxu1  ;;  %v4059_v9 = vadd.f32 %v4058_v48, %v7013_v0  ;;  %v4170_v39 = vadd.f32 %v4169_v62, %v4057_v20  ;;  %v4205_v51 = vmax.f32 %v4166_v43, 0.0  ;;  %v4047_v48 = vadd.f32 %v4046_v63, %v7009_v21 }
 0x3f8   : > { %v4060_v26 = vpop.f32.mrf.mxu0  ;;  %v4156_v20 = vadd.f32 %v4155_v19, %v4043_v57  ;;  %v4152_v3 = vadd.f32 %v4151_v10, %v4039_v60  ;;  %v4154_v19 = vadd.f32 %v4153_v50, %v4041_v36  ;;  %v4027_v50 = vadd.f32 %v7059_v5, %v7009_v21 }
 0x3f9   : > { %v4173_v34 = vpop.f32.mrf.mxu1  ;;  %v4061_v13 = vadd.f32 %v4060_v26, %v7009_v21  ;;  %v4172_v16 = vadd.f32 %v4171_v2, %v4059_v9  ;;  %v4206_v26 = vmax.f32 %v4170_v39, 0.0  ;;  %v4203_v2 = vmax.f32 %v4162_v46, 0.0 }
 0x3fa   : > { %v4062_v14 = vpop.f32.mrf.mxu0  ;;  %v4164_v9 = vadd.f32 %v4163_v47, %v4051_v31  ;;  %v4201_v63 = vmax.f32 %v4156_v20, 0.0  ;;  %v4029_v47 = vadd.f32 %v7063_v7, %v7013_v0  ;;  %v4199_v43 = vmax.f32 %v4152_v3, 0.0 }
 0x3fb   : > { %v4174_v40 = vadd.f32 %v4173_v34, %v4061_v13  ;;  %v4063_v37 = vadd.f32 %v4062_v14, %v7013_v0  ;;  %v4175_v8 = vpop.f32.mrf.mxu1  ;;  %v4207_v33 = vmax.f32 %v4172_v16, 0.0  ;;  %v4223_v28 = vpack.c.bf16 %v4205_v51, %v4203_v2 }
 0x3fc   : > { %v4160_v34 = vadd.f32 %v4159_v42, %v4047_v48  ;;  %v4204_v17 = vmax.f32 %v4164_v9, 0.0  ;;  %v4033_v13 = vadd.f32 %v4032_v44, %v7013_v0  ;;  %v4037_v14 = vadd.f32 %v4036_v29, %v7009_v21 }
 0x3fd   : > { %v4176_v49 = vadd.f32 %v4175_v8, %v4063_v37  ;;  %v4208_v55 = vmax.f32 %v4174_v40, 0.0  ;;  %v4221_v40 = vpack.c.bf16 %v4201_v63, %v4199_v43  ;;  %v4142_v15 = vadd.f32 %v7065_v52, %v4029_v47 }
 0x3fe   : > { %v4202_v1 = vmax.f32 %v4160_v34, 0.0  ;;  %v4146_v42 = vadd.f32 %v7073_v54, %v4033_v13  ;;  %v4150_v10 = vadd.f32 %v7075_v27, %v4037_v14  ;;  %v4031_v44 = vadd.f32 %v7069_v23, %v7009_v21 }
 0x3ff   : > { %v4209_v18 = vmax.f32 %v4176_v49, 0.0  ;;  %v4224_v62 = vpack.c.bf16 %v4208_v55, %v4206_v26  ;;  %v4200_v29 = vmax.f32 %v4154_v19, 0.0  ;;  %v4023_v37 = vadd.f32 %v7055_v61, %v7013_v0 }
 0x400   : > { %v4222_v16 = vpack.c.bf16 %v4204_v17, %v4202_v1  ;;  %v4197_v7 = vmax.f32 %v4146_v42, 0.0  ;;  %v4198_v39 = vmax.f32 %v4150_v10, 0.0  ;;  %v4019_v54 = vadd.f32 %v7046_v30, %v7013_v0  ;;  %v4231_v0 = vpop.permute.xlu0 %4230 }
 0x401   : > { %v4225_v35 = vpack.c.bf16 %v4209_v18, %v4207_v33  ;;  %v4195_v27 = vmax.f32 %v4142_v15, 0.0  ;;  %v4144_v8 = vadd.f32 %v7071_v56, %v4031_v44  ;;  %v4136_v46 = vadd.f32 %v7057_v22, %v4023_v37 }
 0x402   : > { %v4220_v52 = vpack.c.bf16 %v4200_v29, %v4198_v39  ;;  %v4140_v23 = vadd.f32 %v7061_v24, %v4027_v50  ;;  %v4132_v61 = vadd.f32 %v7048_v45, %v4019_v54  ;;  %v4236_v30 = vrot.slane %v4231_v0, %v6936_v6 }
 0x403   : > { %4262 = vmatprep.subr.bf16.mxu0 %v4225_v35  ;;  %v4219_v49 = vpack.c.bf16 %v4197_v7, %v4195_v27  ;;  %v4196_v31 = vmax.f32 %v4144_v8, 0.0  ;;  %v4193_v55 = vmax.f32 %v4136_v46, 0.0 }
 0x404   : > { %4263 = vmatpush1.bf16.xpose.msra.mxu0 %v4224_v62  ;;  %v4194_v21 = vmax.f32 %v4140_v23, 0.0  ;;  %v4191_v5 = vmax.f32 %v4132_v61, 0.0 }
 0x405   : > { %4264 = vmatprep.subr.bf16.mxu0 %v4223_v28 }
 0x406   : > { %v4218_v57 = vpack.c.bf16 %v4196_v31, %v4194_v21  ;;  %v4217_v51 = vpack.c.bf16 %v4193_v55, %v4191_v5 }
 0x40c   : > { %4265 = vmatpush1.bf16.xpose.msra.mxu0 %v4222_v16 }
 0x40d   : > { %4266 = vmatprep.subr.bf16.mxu0 %v4221_v40 }
 0x414   : > { %4267 = vmatpush1.bf16.xpose.msra.mxu0 %v4220_v52 }
 0x415   : > { %4268 = vmatprep.subr.bf16.mxu0 %v4219_v49 }
 0x41c   : > { %4269 = vmatpush1.bf16.xpose.msra.mxu0 %v4218_v57 }
 0x41d   : > { %4270 = vmatprep.subr.bf16.mxu0 %v4217_v51 }
 0x424   : > { %4271 = vmatpush1.bf16.xpose.msra.mxu0 %v7067_v53 }
 0x425   : > { %4272 = vmatprep.subr.bf16.mxu0 %v7052_v41 }
 0x42c   : > { %4273 = vmatpush1.bf16.xpose.msra.mxu0 %v7050_v11 }
 0x42d   : > { %4274 = vmatprep.subr.bf16.mxu0 %v7041_v25 }
 0x434   : > { %4275 = vmatpush1.bf16.xpose.msra.mxu0 %v7038_v38 }
 0x435   : > { %4276 = vmatprep.subr.bf16.mxu0 %v7033_v12 }
 0x43c   : > { %4277 = vmatpush1.bf16.xpose.msra.mxu0 %v7030_v59 }
 0x443   : > { %4295 = vmatmul.mubr.bf16.vlgmr.msra.gmra.mxu0 %v4252_v58 }
 0x503   : > { %v4296_v45 = vpop.f32.mrf.mxu0 }
 0x504   : > { %v4297_v22 = vadd.f32 %v4296_v45, %v4236_v30 }
 0x505   : > { %v4298_v41 = vpop.f32.mrf.mxu0 }
 0x506   : > { %4302 = vst [vmem:[#allocation15] sm:$0x1] %v4297_v22 }
 0x507   : > { %v4299_v11 = vpop.f32.mrf.mxu0 }
 0x509   : > { %v4300_v24 = vpop.f32.mrf.mxu0 }
 0x50a PF: > { %p4832_p6 = scmp.eq.s32.totalorder %s5715_s6, 2  ;;  %s5642_s29 = smov [#allocation15]  }
 0x50b   : > { %s4312_s13 = sshll.u32 %s5642_s29, 4  ;;  %s4313_s13 = int_to_ptr.vmem [resolvable:$true] %s4312_s13 }
 0x50c   : > { %s5530_s15 = scalar_lea.vmem %s4313_s13, 16  ;;  %s5536_s23 = scalar_lea.vmem %s4313_s13, 32 }
 0x50d   : > { %p5531_p7 = scmp.ne.s32.totalorder %s4313_s13, %s5530_s15  ;;  %p5537_p5 = scmp.lt.s32.totalorder %s4313_s13, %s4313_s13 }
 0x50e   : > { %p5538_p8 = scmp.lt.s32.totalorder %s5536_s23, %s5530_s15 }
 0x50f   : > { %p5532_p9 = pnand %p5531_p7, %p4832_p6 }
 0x510   : > { %p5539_p3 = por %p5538_p8, %p5537_p5 }
 0x511   : > { %p5533_p11 = pneg %p5532_p9 }
 0x513   : > { %p5540_p10 = pnand %p5539_p3, %p5533_p11 }
 0x515   : > { %5543 = shalt.err (!%p5540_p10)
}
 0x516   : > { %4808 = dma.vmem_to_hbm [thread:$0]  (%p4832_p6), %s4313_s13, 16, %s7155_s7, [#allocation6]  }
 0x517   : > { %5599 = dma.done.wait (%p4832_p6), [#allocation6], 16  }
 0x518   : > { %5601 = vsyncadd (%p4832_p6), [#allocation6], 4294967280 }
 0x519 PF: > { %s28_s8 = sadd.s32 1, %s5624_s8   ;;  %s7292_s26 = smov %s5608_s27 }
 0x51a   : > { %p25_p12 = scmp.ge.s32.totalorder %s28_s8, 5   ;;  %s7293_s27 = smov %s5612_s28 }
 0x51b   : > { %s7294_s28 = smov %s5741_s14  ;;  %s7295_s29 = smov %s5620_s30 }
 0x51c   : > { %s7296_s30 = smov %s7298_s9  ;;  %27 = sbr.rel (!%p25_p12) target bundleno = 14 (0xe), region = 123 }
 0x521   :  { %4325 = vsyncpa [#allocation5], 1 }
 0x522   :  { %4327 = vsyncpa [#allocation5 + $0x1], 1 }
 0x523   :  { %4328 = vsyncpa [#allocation8], 1 }
 0x524   :  { %4330 = vsyncpa [#allocation8 + $0x1], 1 }
 0x525   :  { %4331 = vsyncpa [#allocation11], 1 }
 0x526   :  { %4332 = vsyncpa [#allocation14], 1 }
 0x527   :  { %4333 = vsyncpa [#allocation6], 1 }
 0x528   :  { %4335 = vsyncpa [#allocation6 + $0x1], 1 }

</bundles_post_ra>
